<compile_context>
chip_gen: v5e
topology: v5e:2x2
jax: 0.10.0
libtpu: 0.0.40
codegen_flags: <defaults>
</compile_context>

<pallas_src>
import math

import numpy as np
import jax
import jax.numpy as jnp
from jax.experimental import pallas as pl
from jax.experimental.pallas import tpu as pltpu

CHANNELS = 3
IN_DIM = CHANNELS + 1                          # [x, t]
NUM_FREQ = 6
FOURIER_DIM = IN_DIM * NUM_FREQ * 2 + IN_DIM   # 52
HIDDEN = 512
FEAT_PAD = 128                                 # lane-dense padded feature width
OUT_PAD = 128                                  # lane-dense padded output width
TILE_N_MAX = 512                               # max rows per grid step


def _choose_tile_n(n):
    """Rows per grid step.  Big tiles amortize the ~0.35us per-step overhead;
    keep >=2 balanced steps for medium N so ("parallel",) can shard rows across
    both TensorCores on dual-TC chips (v7x)."""
    if n >= 2 * TILE_N_MAX:
        return TILE_N_MAX
    if n > 256:                                    # two balanced tiles
        return pl.cdiv(pl.cdiv(n, 2), 8) * 8
    return max(8, pl.cdiv(n, 8) * 8)               # tiny N: single tile


def _build_encoding_tables():
    """enc_w[row i, lane] = 2*pi*2**j scattered into the sin/cos lanes
    (padded to 128x128 so the argument build is a single MXU dot);
    enc_b[lane] = +pi/2 phase for the cos lanes.  Lanes 0..IN_DIM-1 and >=52
    stay zero so `feat = h + sin(arg)` recovers the include_input columns."""
    ew = np.zeros((FEAT_PAD, FEAT_PAD), np.float32)
    eb = np.zeros((1, FEAT_PAD), np.float32)
    for i in range(IN_DIM):
        for j in range(NUM_FREQ):
            w = 2.0 * math.pi * (2.0 ** j)
            ew[i, IN_DIM + i * NUM_FREQ + j] = w                           # sin(arg)
            ew[i, IN_DIM + IN_DIM * NUM_FREQ + i * NUM_FREQ + j] = w       # sin(arg+pi/2)
    eb[0, IN_DIM + IN_DIM * NUM_FREQ: IN_DIM + 2 * IN_DIM * NUM_FREQ] = math.pi / 2.0
    return jnp.asarray(ew), jnp.asarray(eb)


def _fmcond_kernel(h_ref, encw_ref, encb_ref,
                   w1_ref, b1_ref, w2_ref, b2_ref, w3_ref, b3_ref,
                   w4_ref, b4_ref, w5_ref, b5_ref, o_ref):
    # h_ref: (TILE_N, FEAT_PAD) f32; lanes 0..3 hold [x, t], other lanes are 0.
    h = h_ref[...]

    # Fourier arguments on the MXU: each output lane has exactly one nonzero
    # product (2*pi*2^j * h_i), so this equals the elementwise construction.
    # Kept in f32 (arguments reach ~2*pi*32, bf16 would lose the phase).
    arg = jnp.dot(h, encw_ref[...], preferred_element_type=jnp.float32) + encb_ref[...]
    # include_input: arg lanes 0..3 are 0 -> sin()=0 there, adding h restores [x, t].
    feat = h + jnp.sin(arg)                     # (TILE_N, FEAT_PAD) f32

    def swish(z):
        # z * sigmoid(z) == 0.5 * z * (1 + tanh(z/2)): one EUP op instead of
        # exp + divide, keeping the kernel MXU-bound after the bf16 matmuls.
        return 0.5 * z * (1.0 + jnp.tanh(0.5 * z))

    def layer(z, w_ref, b_ref):
        # bf16 operands, f32 accumulation on the MXU; bias add in f32.
        acc = jnp.dot(z.astype(jnp.bfloat16), w_ref[...],
                      preferred_element_type=jnp.float32)
        return acc + b_ref[...]

    z = swish(layer(feat, w1_ref, b1_ref))
    z = swish(layer(z, w2_ref, b2_ref))
    z = swish(layer(z, w3_ref, b3_ref))
    z = swish(layer(z, w4_ref, b4_ref))
    o_ref[...] = layer(z, w5_ref, b5_ref)       # (TILE_N, OUT_PAD); lanes 0..2 real


def pack_params(params):
    """One-time padding / dtype prep so the forward path is a single pallas_call
    plus the (unavoidable) input concat/pad.  Weights stored in bf16; biases and
    encoding tables stay f32."""
    enc_w, enc_b = _build_encoding_tables()
    w1p = (jnp.zeros((FEAT_PAD, HIDDEN), jnp.float32)
           .at[:FOURIER_DIM, :].set(params["w1"])).astype(jnp.bfloat16)
    w5p = (jnp.zeros((HIDDEN, OUT_PAD), jnp.float32)
           .at[:, :CHANNELS].set(params["w5"])).astype(jnp.bfloat16)
    b5p = jnp.zeros((1, OUT_PAD), jnp.float32).at[0, :CHANNELS].set(params["b5"])
    return dict(
        enc_w=enc_w, enc_b=enc_b,
        w1=w1p, b1=params["b1"].reshape(1, HIDDEN).astype(jnp.float32),
        w2=params["w2"].astype(jnp.bfloat16),
        b2=params["b2"].reshape(1, HIDDEN).astype(jnp.float32),
        w3=params["w3"].astype(jnp.bfloat16),
        b3=params["b3"].reshape(1, HIDDEN).astype(jnp.float32),
        w4=params["w4"].astype(jnp.bfloat16),
        b4=params["b4"].reshape(1, HIDDEN).astype(jnp.float32),
        w5=w5p, b5=b5p,
    )


def fmcond_forward(x, sigma, packed):
    """x: (N, CHANNELS); sigma: scalar / (1,) / (N,). Returns float32 (N, CHANNELS)."""
    n = x.shape[0]
    x32 = x.astype(jnp.float32)
    t = jnp.broadcast_to(jnp.asarray(sigma, jnp.float32).reshape(-1, 1), (n, 1))
    h = jnp.concatenate([x32, t], axis=1)                          # (N, IN_DIM)

    tile_n = _choose_tile_n(n)
    n_pad = pl.cdiv(n, tile_n) * tile_n
    h_pad = jnp.zeros((n_pad, FEAT_PAD), jnp.float32).at[:n, :IN_DIM].set(h)

    row = lambda i: (i, 0)     # tiles marching down N
    const = lambda i: (0, 0)   # weights / tables resident across all row tiles

    out = pl.pallas_call(
        _fmcond_kernel,
        out_shape=jax.ShapeDtypeStruct((n_pad, OUT_PAD), jnp.float32),
        grid=(n_pad // tile_n,),
        in_specs=[
            pl.BlockSpec((tile_n, FEAT_PAD), row),       # h (padded lanes)
            pl.BlockSpec((FEAT_PAD, FEAT_PAD), const),   # encoding weights (f32)
            pl.BlockSpec((1, FEAT_PAD), const),          # encoding phases  (f32)
            pl.BlockSpec((FEAT_PAD, HIDDEN), const),     # W1 (bf16, padded rows)
            pl.BlockSpec((1, HIDDEN), const),            # b1
            pl.BlockSpec((HIDDEN, HIDDEN), const),       # W2 (bf16)
            pl.BlockSpec((1, HIDDEN), const),            # b2
            pl.BlockSpec((HIDDEN, HIDDEN), const),       # W3 (bf16)
            pl.BlockSpec((1, HIDDEN), const),            # b3
            pl.BlockSpec((HIDDEN, HIDDEN), const),       # W4 (bf16)
            pl.BlockSpec((1, HIDDEN), const),            # b4
            pl.BlockSpec((HIDDEN, OUT_PAD), const),      # W5 (bf16, padded cols)
            pl.BlockSpec((1, OUT_PAD), const),           # b5 (padded)
        ],
        out_specs=pl.BlockSpec((tile_n, OUT_PAD), row),
        compiler_params=pltpu.CompilerParams(
            dimension_semantics=("parallel",),
            vmem_limit_bytes=32 * 1024 * 1024),
    )(h_pad, packed["enc_w"], packed["enc_b"],
      packed["w1"], packed["b1"], packed["w2"], packed["b2"],
      packed["w3"], packed["b3"], packed["w4"], packed["b4"],
      packed["w5"], packed["b5"])

    return out[:n, :CHANNELS]   # float32, matches FMCond.forward


def init_params(key):
    ks = jax.random.split(key, 5)

    def lin(k, din, dout):
        kw, kb = jax.random.split(k)
        w = jax.random.normal(kw, (din, dout), jnp.float32) / math.sqrt(din)
        b = jax.random.normal(kb, (dout,), jnp.float32) * 0.01
        return w, b

    w1, b1 = lin(ks[0], FOURIER_DIM, HIDDEN)
    w2, b2 = lin(ks[1], HIDDEN, HIDDEN)
    w3, b3 = lin(ks[2], HIDDEN, HIDDEN)
    w4, b4 = lin(ks[3], HIDDEN, HIDDEN)
    w5, b5 = lin(ks[4], HIDDEN, CHANNELS)
    return dict(w1=w1, b1=b1, w2=w2, b2=b2, w3=w3, b3=b3, w4=w4, b4=b4, w5=w5, b5=b5)


def ref_forward(x, sigma, params):
    """Pure-JAX f32 reference mirroring PyTorch FMCond/MLP/FourierFeatsEncoding."""
    n = x.shape[0]
    x32 = x.astype(jnp.float32)
    t = jnp.broadcast_to(jnp.asarray(sigma, jnp.float32).reshape(-1, 1), (n, 1))
    h = jnp.concatenate([x32, t], axis=1)
    scaled = 2.0 * jnp.pi * h
    freqs = 2.0 ** jnp.linspace(0.0, NUM_FREQ - 1.0, NUM_FREQ)
    si = (scaled[..., None] * freqs).reshape(n, -1)
    enc = jnp.sin(jnp.concatenate([si, si + jnp.pi / 2.0], axis=-1))
    feat = jnp.concatenate([h, enc], axis=-1)

    def swish(z):
        return z * (1.0 / (1.0 + jnp.exp(-z)))

    z = swish(feat @ params["w1"] + params["b1"])
    z = swish(z @ params["w2"] + params["b2"])
    z = swish(z @ params["w3"] + params["b3"])
    z = swish(z @ params["w4"] + params["b4"])
    return (z @ params["w5"] + params["b5"]).astype(jnp.float32)


if __name__ == "__main__":
    key = jax.random.PRNGKey(0)
    k_p, k_x, k_s = jax.random.split(key, 3)

    batch = 8
    params = init_params(k_p)
    packed = pack_params(params)     # one-time padding / bf16 cast / enc tables

    # Inputs roughly in [0, 1] as the FourierFeatsEncoding docstring suggests.
    x = jax.random.uniform(k_x, (batch, CHANNELS), jnp.float32)
    sigma = jax.random.uniform(k_s, (batch,), jnp.float32)

    y = fmcond_forward(x, sigma, packed)
    y = jax.block_until_ready(y)

    y_ref = ref_forward(x, sigma, params)
    assert y.shape == (batch, CHANNELS)
    assert y.dtype == jnp.float32
    max_err = float(jnp.max(jnp.abs(y - y_ref)))
    assert jnp.allclose(y, y_ref, atol=2e-2, rtol=2e-2), f"max abs err = {max_err}"

    print("KERNEL_OK")
</pallas_src>

<mosaic_0001>
module attributes {stable_mosaic.version = 11 : i64} {
  func.func @_fmcond_kernel(%arg0: i32, %arg1: memref<8x128xf32, #tpu.memory_space<vmem>>, %arg2: memref<128x128xf32, #tpu.memory_space<vmem>>, %arg3: memref<1x128xf32, #tpu.memory_space<vmem>>, %arg4: memref<128x512xbf16, #tpu.memory_space<vmem>>, %arg5: memref<1x512xf32, #tpu.memory_space<vmem>>, %arg6: memref<512x512xbf16, #tpu.memory_space<vmem>>, %arg7: memref<1x512xf32, #tpu.memory_space<vmem>>, %arg8: memref<512x512xbf16, #tpu.memory_space<vmem>>, %arg9: memref<1x512xf32, #tpu.memory_space<vmem>>, %arg10: memref<512x512xbf16, #tpu.memory_space<vmem>>, %arg11: memref<1x512xf32, #tpu.memory_space<vmem>>, %arg12: memref<512x128xbf16, #tpu.memory_space<vmem>>, %arg13: memref<1x128xf32, #tpu.memory_space<vmem>>, %arg14: memref<8x128xf32, #tpu.memory_space<vmem>>) attributes {dimension_semantics = [#tpu.dimension_semantics<parallel>], iteration_bounds = array<i64: 1>, scalar_prefetch = 0 : i64, scratch_operands = 0 : i64, tpu.core_type = #tpu.core_type<tc>, window_params = [{transform_indices = @transform_0, window_bounds = array<i64: 8, 128>}, {pipeline_mode = #tpu.pipeline_mode<synchronous>, transform_indices = @transform_1, window_bounds = array<i64: 128, 128>}, {pipeline_mode = #tpu.pipeline_mode<synchronous>, transform_indices = @transform_2, window_bounds = array<i64: 1, 128>}, {pipeline_mode = #tpu.pipeline_mode<synchronous>, transform_indices = @transform_3, window_bounds = array<i64: 128, 512>}, {pipeline_mode = #tpu.pipeline_mode<synchronous>, transform_indices = @transform_4, window_bounds = array<i64: 1, 512>}, {pipeline_mode = #tpu.pipeline_mode<synchronous>, transform_indices = @transform_5, window_bounds = array<i64: 512, 512>}, {pipeline_mode = #tpu.pipeline_mode<synchronous>, transform_indices = @transform_6, window_bounds = array<i64: 1, 512>}, {pipeline_mode = #tpu.pipeline_mode<synchronous>, transform_indices = @transform_7, window_bounds = array<i64: 512, 512>}, {pipeline_mode = #tpu.pipeline_mode<synchronous>, transform_indices = @transform_8, window_bounds = array<i64: 1, 512>}, {pipeline_mode = #tpu.pipeline_mode<synchronous>, transform_indices = @transform_9, window_bounds = array<i64: 512, 512>}, {pipeline_mode = #tpu.pipeline_mode<synchronous>, transform_indices = @transform_10, window_bounds = array<i64: 1, 512>}, {pipeline_mode = #tpu.pipeline_mode<synchronous>, transform_indices = @transform_11, window_bounds = array<i64: 512, 128>}, {pipeline_mode = #tpu.pipeline_mode<synchronous>, transform_indices = @transform_12, window_bounds = array<i64: 1, 128>}, {transform_indices = @transform_13, window_bounds = array<i64: 8, 128>}]} {
    %c0 = arith.constant 0 : index
    %c0_0 = arith.constant 0 : index
    %0 = vector.load %arg1[%c0, %c0_0] : memref<8x128xf32, #tpu.memory_space<vmem>>, vector<8x128xf32>
    %c0_1 = arith.constant 0 : index
    %c0_2 = arith.constant 0 : index
    %1 = vector.load %arg2[%c0_1, %c0_2] : memref<128x128xf32, #tpu.memory_space<vmem>>, vector<128x128xf32>
    %cst = arith.constant dense<0.000000e+00> : vector<8x128xf32>
    %2 = tpu.matmul %0, %1, %cst {dimension_numbers = #tpu.dot_dimension_numbers<[1], [0], [0], [1], [0, 0, 1, 1], [], []>} : vector<8x128xf32>, vector<128x128xf32>, vector<8x128xf32> -> vector<8x128xf32>
    %c0_3 = arith.constant 0 : index
    %c0_4 = arith.constant 0 : index
    %3 = vector.load %arg3[%c0_3, %c0_4] : memref<1x128xf32, #tpu.memory_space<vmem>>, vector<1x128xf32>
    %4 = vector.broadcast %3 : vector<1x128xf32> to vector<8x128xf32>
    %5 = arith.addf %2, %4 : vector<8x128xf32>
    %6 = math.sin %5 : vector<8x128xf32>
    %7 = arith.addf %0, %6 : vector<8x128xf32>
    %8 = arith.truncf %7 : vector<8x128xf32> to vector<8x128xbf16>
    %c0_5 = arith.constant 0 : index
    %c0_6 = arith.constant 0 : index
    %9 = vector.load %arg4[%c0_5, %c0_6] : memref<128x512xbf16, #tpu.memory_space<vmem>>, vector<128x512xbf16>
    %cst_7 = arith.constant dense<0.000000e+00> : vector<8x512xf32>
    %10 = tpu.matmul %8, %9, %cst_7 {dimension_numbers = #tpu.dot_dimension_numbers<[1], [0], [0], [1], [0, 0, 1, 1], [], []>} : vector<8x128xbf16>, vector<128x512xbf16>, vector<8x512xf32> -> vector<8x512xf32>
    %c0_8 = arith.constant 0 : index
    %c0_9 = arith.constant 0 : index
    %11 = vector.load %arg5[%c0_8, %c0_9] : memref<1x512xf32, #tpu.memory_space<vmem>>, vector<1x512xf32>
    %12 = vector.broadcast %11 : vector<1x512xf32> to vector<8x512xf32>
    %13 = arith.addf %10, %12 : vector<8x512xf32>
    %cst_10 = arith.constant 5.000000e-01 : f32
    %14 = vector.broadcast %cst_10 : f32 to vector<8x512xf32>
    %15 = arith.mulf %14, %13 : vector<8x512xf32>
    %cst_11 = arith.constant 5.000000e-01 : f32
    %16 = vector.broadcast %cst_11 : f32 to vector<8x512xf32>
    %17 = arith.mulf %16, %13 : vector<8x512xf32>
    %18 = math.tanh %17 : vector<8x512xf32>
    %cst_12 = arith.constant 1.000000e+00 : f32
    %19 = vector.broadcast %cst_12 : f32 to vector<8x512xf32>
    %20 = arith.addf %19, %18 : vector<8x512xf32>
    %21 = arith.mulf %15, %20 : vector<8x512xf32>
    %22 = arith.truncf %21 : vector<8x512xf32> to vector<8x512xbf16>
    %c0_13 = arith.constant 0 : index
    %c0_14 = arith.constant 0 : index
    %23 = vector.load %arg6[%c0_13, %c0_14] : memref<512x512xbf16, #tpu.memory_space<vmem>>, vector<512x512xbf16>
    %cst_15 = arith.constant dense<0.000000e+00> : vector<8x512xf32>
    %24 = tpu.matmul %22, %23, %cst_15 {dimension_numbers = #tpu.dot_dimension_numbers<[1], [0], [0], [1], [0, 0, 1, 1], [], []>} : vector<8x512xbf16>, vector<512x512xbf16>, vector<8x512xf32> -> vector<8x512xf32>
    %c0_16 = arith.constant 0 : index
    %c0_17 = arith.constant 0 : index
    %25 = vector.load %arg7[%c0_16, %c0_17] : memref<1x512xf32, #tpu.memory_space<vmem>>, vector<1x512xf32>
    %26 = vector.broadcast %25 : vector<1x512xf32> to vector<8x512xf32>
    %27 = arith.addf %24, %26 : vector<8x512xf32>
    %cst_18 = arith.constant 5.000000e-01 : f32
    %28 = vector.broadcast %cst_18 : f32 to vector<8x512xf32>
    %29 = arith.mulf %28, %27 : vector<8x512xf32>
    %cst_19 = arith.constant 5.000000e-01 : f32
    %30 = vector.broadcast %cst_19 : f32 to vector<8x512xf32>
    %31 = arith.mulf %30, %27 : vector<8x512xf32>
    %32 = math.tanh %31 : vector<8x512xf32>
    %cst_20 = arith.constant 1.000000e+00 : f32
    %33 = vector.broadcast %cst_20 : f32 to vector<8x512xf32>
    %34 = arith.addf %33, %32 : vector<8x512xf32>
    %35 = arith.mulf %29, %34 : vector<8x512xf32>
    %36 = arith.truncf %35 : vector<8x512xf32> to vector<8x512xbf16>
    %c0_21 = arith.constant 0 : index
    %c0_22 = arith.constant 0 : index
    %37 = vector.load %arg8[%c0_21, %c0_22] : memref<512x512xbf16, #tpu.memory_space<vmem>>, vector<512x512xbf16>
    %cst_23 = arith.constant dense<0.000000e+00> : vector<8x512xf32>
    %38 = tpu.matmul %36, %37, %cst_23 {dimension_numbers = #tpu.dot_dimension_numbers<[1], [0], [0], [1], [0, 0, 1, 1], [], []>} : vector<8x512xbf16>, vector<512x512xbf16>, vector<8x512xf32> -> vector<8x512xf32>
    %c0_24 = arith.constant 0 : index
    %c0_25 = arith.constant 0 : index
    %39 = vector.load %arg9[%c0_24, %c0_25] : memref<1x512xf32, #tpu.memory_space<vmem>>, vector<1x512xf32>
    %40 = vector.broadcast %39 : vector<1x512xf32> to vector<8x512xf32>
    %41 = arith.addf %38, %40 : vector<8x512xf32>
    %cst_26 = arith.constant 5.000000e-01 : f32
    %42 = vector.broadcast %cst_26 : f32 to vector<8x512xf32>
    %43 = arith.mulf %42, %41 : vector<8x512xf32>
    %cst_27 = arith.constant 5.000000e-01 : f32
    %44 = vector.broadcast %cst_27 : f32 to vector<8x512xf32>
    %45 = arith.mulf %44, %41 : vector<8x512xf32>
    %46 = math.tanh %45 : vector<8x512xf32>
    %cst_28 = arith.constant 1.000000e+00 : f32
    %47 = vector.broadcast %cst_28 : f32 to vector<8x512xf32>
    %48 = arith.addf %47, %46 : vector<8x512xf32>
    %49 = arith.mulf %43, %48 : vector<8x512xf32>
    %50 = arith.truncf %49 : vector<8x512xf32> to vector<8x512xbf16>
    %c0_29 = arith.constant 0 : index
    %c0_30 = arith.constant 0 : index
    %51 = vector.load %arg10[%c0_29, %c0_30] : memref<512x512xbf16, #tpu.memory_space<vmem>>, vector<512x512xbf16>
    %cst_31 = arith.constant dense<0.000000e+00> : vector<8x512xf32>
    %52 = tpu.matmul %50, %51, %cst_31 {dimension_numbers = #tpu.dot_dimension_numbers<[1], [0], [0], [1], [0, 0, 1, 1], [], []>} : vector<8x512xbf16>, vector<512x512xbf16>, vector<8x512xf32> -> vector<8x512xf32>
    %c0_32 = arith.constant 0 : index
    %c0_33 = arith.constant 0 : index
    %53 = vector.load %arg11[%c0_32, %c0_33] : memref<1x512xf32, #tpu.memory_space<vmem>>, vector<1x512xf32>
    %54 = vector.broadcast %53 : vector<1x512xf32> to vector<8x512xf32>
    %55 = arith.addf %52, %54 : vector<8x512xf32>
    %cst_34 = arith.constant 5.000000e-01 : f32
    %56 = vector.broadcast %cst_34 : f32 to vector<8x512xf32>
    %57 = arith.mulf %56, %55 : vector<8x512xf32>
    %cst_35 = arith.constant 5.000000e-01 : f32
    %58 = vector.broadcast %cst_35 : f32 to vector<8x512xf32>
    %59 = arith.mulf %58, %55 : vector<8x512xf32>
    %60 = math.tanh %59 : vector<8x512xf32>
    %cst_36 = arith.constant 1.000000e+00 : f32
    %61 = vector.broadcast %cst_36 : f32 to vector<8x512xf32>
    %62 = arith.addf %61, %60 : vector<8x512xf32>
    %63 = arith.mulf %57, %62 : vector<8x512xf32>
    %64 = arith.truncf %63 : vector<8x512xf32> to vector<8x512xbf16>
    %c0_37 = arith.constant 0 : index
    %c0_38 = arith.constant 0 : index
    %65 = vector.load %arg12[%c0_37, %c0_38] : memref<512x128xbf16, #tpu.memory_space<vmem>>, vector<512x128xbf16>
    %cst_39 = arith.constant dense<0.000000e+00> : vector<8x128xf32>
    %66 = tpu.matmul %64, %65, %cst_39 {dimension_numbers = #tpu.dot_dimension_numbers<[1], [0], [0], [1], [0, 0, 1, 1], [], []>} : vector<8x512xbf16>, vector<512x128xbf16>, vector<8x128xf32> -> vector<8x128xf32>
    %c0_40 = arith.constant 0 : index
    %c0_41 = arith.constant 0 : index
    %67 = vector.load %arg13[%c0_40, %c0_41] : memref<1x128xf32, #tpu.memory_space<vmem>>, vector<1x128xf32>
    %68 = vector.broadcast %67 : vector<1x128xf32> to vector<8x128xf32>
    %69 = arith.addf %66, %68 : vector<8x128xf32>
    %c0_42 = arith.constant 0 : index
    %c0_43 = arith.constant 0 : index
    %70 = vector.load %arg14[%c0_42, %c0_43] : memref<8x128xf32, #tpu.memory_space<vmem>>, vector<8x128xf32>
    tpu.vector_store %arg14[%c0_42, %c0_43], %69 {strides = array<i32>} : memref<8x128xf32, #tpu.memory_space<vmem>>, vector<8x128xf32>,
    return
  }
  func.func @transform_0(%arg0: i32) -> (i32, i32) {
    %c0_i32 = arith.constant 0 : i32
    %c0_i32_0 = arith.constant 0 : i32
    return %arg0, %c0_i32 : i32, i32
  }
  func.func @transform_1(%arg0: i32) -> (i32, i32) {
    %c0_i32 = arith.constant 0 : i32
    %c0_i32_0 = arith.constant 0 : i32
    %c0_i32_1 = arith.constant 0 : i32
    return %c0_i32, %c0_i32_0 : i32, i32
  }
  func.func @transform_2(%arg0: i32) -> (i32, i32) {
    %c0_i32 = arith.constant 0 : i32
    %c0_i32_0 = arith.constant 0 : i32
    %c0_i32_1 = arith.constant 0 : i32
    return %c0_i32, %c0_i32_0 : i32, i32
  }
  func.func @transform_3(%arg0: i32) -> (i32, i32) {
    %c0_i32 = arith.constant 0 : i32
    %c0_i32_0 = arith.constant 0 : i32
    %c0_i32_1 = arith.constant 0 : i32
    return %c0_i32, %c0_i32_0 : i32, i32
  }
  func.func @transform_4(%arg0: i32) -> (i32, i32) {
    %c0_i32 = arith.constant 0 : i32
    %c0_i32_0 = arith.constant 0 : i32
    %c0_i32_1 = arith.constant 0 : i32
    return %c0_i32, %c0_i32_0 : i32, i32
  }
  func.func @transform_5(%arg0: i32) -> (i32, i32) {
    %c0_i32 = arith.constant 0 : i32
    %c0_i32_0 = arith.constant 0 : i32
    %c0_i32_1 = arith.constant 0 : i32
    return %c0_i32, %c0_i32_0 : i32, i32
  }
  func.func @transform_6(%arg0: i32) -> (i32, i32) {
    %c0_i32 = arith.constant 0 : i32
    %c0_i32_0 = arith.constant 0 : i32
    %c0_i32_1 = arith.constant 0 : i32
    return %c0_i32, %c0_i32_0 : i32, i32
  }
  func.func @transform_7(%arg0: i32) -> (i32, i32) {
    %c0_i32 = arith.constant 0 : i32
    %c0_i32_0 = arith.constant 0 : i32
    %c0_i32_1 = arith.constant 0 : i32
    return %c0_i32, %c0_i32_0 : i32, i32
  }
  func.func @transform_8(%arg0: i32) -> (i32, i32) {
    %c0_i32 = arith.constant 0 : i32
    %c0_i32_0 = arith.constant 0 : i32
    %c0_i32_1 = arith.constant 0 : i32
    return %c0_i32, %c0_i32_0 : i32, i32
  }
  func.func @transform_9(%arg0: i32) -> (i32, i32) {
    %c0_i32 = arith.constant 0 : i32
    %c0_i32_0 = arith.constant 0 : i32
    %c0_i32_1 = arith.constant 0 : i32
    return %c0_i32, %c0_i32_0 : i32, i32
  }
  func.func @transform_10(%arg0: i32) -> (i32, i32) {
    %c0_i32 = arith.constant 0 : i32
    %c0_i32_0 = arith.constant 0 : i32
    %c0_i32_1 = arith.constant 0 : i32
    return %c0_i32, %c0_i32_0 : i32, i32
  }
  func.func @transform_11(%arg0: i32) -> (i32, i32) {
    %c0_i32 = arith.constant 0 : i32
    %c0_i32_0 = arith.constant 0 : i32
    %c0_i32_1 = arith.constant 0 : i32
    return %c0_i32, %c0_i32_0 : i32, i32
  }
  func.func @transform_12(%arg0: i32) -> (i32, i32) {
    %c0_i32 = arith.constant 0 : i32
    %c0_i32_0 = arith.constant 0 : i32
    %c0_i32_1 = arith.constant 0 : i32
    return %c0_i32, %c0_i32_0 : i32, i32
  }
  func.func @transform_13(%arg0: i32) -> (i32, i32) {
    %c0_i32 = arith.constant 0 : i32
    %c0_i32_0 = arith.constant 0 : i32
    return %arg0, %c0_i32 : i32, i32
  }
}

</mosaic_0001>

<bundles_post_ra>
// kernel: tpu_custom_call.1
= control target key start
LH: loop header
LB: loop body
LE: loop exit
PB: predicated region body
PF: predicated region fallthrough
CT: control target
= control target key end

     0   :  { %18 = vsyncpa [#allocation3], 0  ;;  %s6985_s0 = inlined_call_operand.hbm [shape: f32[8,128], index: 0, kind: input, shape index: {}]   ;;  %s6986_s1 = inlined_call_operand.hbm [shape: f32[128,128], index: 1, kind: input, shape index: {}]   ;;  %s6987_s2 = inlined_call_operand.hbm [shape: f32[1,128], index: 2, kind: input, shape index: {}]   ;;  %s6988_s3 = inlined_call_operand.hbm [shape: bf16[128,512], index: 3, kind: input, shape index: {}]   ;;  %s6989_s4 = inlined_call_operand.hbm [shape: f32[1,512], index: 4, kind: input, shape index: {}]   ;;  %s6990_s5 = inlined_call_operand.hbm [shape: bf16[512,512], index: 5, kind: input, shape index: {}]   ;;  %s6991_s6 = inlined_call_operand.vmem [shape: f32[1,512], index: 6, kind: input, shape index: {}]   ;;  %s6992_s7 = inlined_call_operand.hbm [shape: bf16[512,512], index: 7, kind: input, shape index: {}]   ;;  %s6993_s8 = inlined_call_operand.hbm [shape: f32[1,512], index: 8, kind: input, shape index: {}]   ;;  %s6994_s9 = inlined_call_operand.hbm [shape: bf16[512,512], index: 9, kind: input, shape index: {}]   ;;  %s6995_s10 = inlined_call_operand.vmem [shape: f32[1,512], index: 10, kind: input, shape index: {}]   ;;  %s6996_s11 = inlined_call_operand.hbm [shape: bf16[512,128], index: 11, kind: input, shape index: {}]   ;;  %s6997_s12 = inlined_call_operand.vmem [shape: f32[1,128], index: 12, kind: input, shape index: {}]   ;;  %s6998_s13 = inlined_call_operand.hbm [shape: f32[8,128], index: 13, kind: output, shape index: {}]  }
   0x1   :  { %19 = vsyncpa [#allocation6], 0 }
   0x2   :  { %20 = vsyncpa [#allocation9], 0 }
   0x3   :  { %21 = vsyncpa [#allocation12], 0 }
   0x4   :  { %22 = vsyncpa [#allocation15], 0 }
   0x5   :  { %23 = vsyncpa [#allocation18], 0  ;;  %s40_s27 = sshll.u32 %s6986_s1, 4  ;;  %s41_s27 = int_to_ptr.hbm [resolvable:$true] %s40_s27 }
   0x6   :  { %24 = vsyncpa [#allocation4], 0  ;;  %s6597_s28 = smov [#allocation5]   ;;  %s64_s15 = sshll.u32 %s6988_s3, 4  ;;  %s65_s15 = int_to_ptr.hbm [resolvable:$true] %s64_s15 }
   0x7   :  { %s42_s29 = sshll.u32 %s6597_s28, 4  ;;  %s6598_s16 = smov 128   ;;  %s43_s29 = int_to_ptr.vmem [resolvable:$true] %s42_s29 }
   0x8   :  { %s6599_s17 = smov 8   ;;  %s6600_s18 = smov [#allocation8]  }
   0x9   :  { %48 = dma.hbm_to_vmem [thread:$0]  %s41_s27, 2048, %s43_s29, [#allocation6], %s6598_s16, %s6598_s16, %s6599_s17  }
   0xa   :  { %s66_s19 = sshll.u32 %s6600_s18, 4  ;;  %s6601_s20 = smov 256   ;;  %s67_s19 = int_to_ptr.vmem [resolvable:$true] %s66_s19 }
   0xb   :  { %s6602_s21 = smov 16   ;;  %s88_s23 = sshll.u32 %s6990_s5, 4  ;;  %s89_s23 = int_to_ptr.hbm [resolvable:$true] %s88_s23 }
   0xc   :  { %72 = dma.hbm_to_vmem [thread:$0]  %s65_s15, 4096, %s67_s19, [#allocation9], %s6601_s20, %s6601_s20, %s6602_s21  }
   0xd   :  { %s6603_s24 = smov [#allocation11]   ;;  %s117_s27 = sshll.u32 %s6993_s8, 4  ;;  %s118_s27 = int_to_ptr.hbm [resolvable:$true] %s117_s27 }
   0xe   :  { %s90_s3 = sshll.u32 %s6603_s24, 4  ;;  %s6604_s28 = smov [#allocation14]   ;;  %s91_s3 = int_to_ptr.vmem [resolvable:$true] %s90_s3 }
   0xf   :  { %96 = dma.hbm_to_vmem [thread:$0]  %s89_s23, 16384, %s91_s3, [#allocation12], %s6601_s20, %s6601_s20, %s6602_s21  }
  0x10   :  { %s119_s29 = sshll.u32 %s6604_s28, 4  ;;  %s30_s15 = sshll.u32 %s6985_s0, 4  ;;  %s120_s29 = int_to_ptr.vmem [resolvable:$true] %s119_s29  ;;  %s31_s15 = int_to_ptr.hbm [resolvable:$true] %s30_s15 }
  0x11   :  { %122 = dma.hbm_to_vmem [thread:$0]  %s118_s27, 64, %s120_s29, [#allocation15]  }
  0x12   :  { %s54_s17 = sshll.u32 %s6987_s2, 4  ;;  %s6605_s18 = smov [#allocation2]   ;;  %s55_s17 = int_to_ptr.hbm [resolvable:$true] %s54_s17 }
  0x13   :  { %s32_s8 = sshll.u32 %s6605_s18, 4  ;;  %s6606_s19 = smov [#allocation7]   ;;  %s33_s8 = int_to_ptr.vmem [resolvable:$true] %s32_s8 }
  0x14   :  { %35 = dma.hbm_to_vmem [thread:$0]  %s31_s15, 128, %s33_s8, [#allocation3]  }
  0x15   :  { %s56_s1 = sshll.u32 %s6606_s19, 4  ;;  %s78_s24 = sshll.u32 %s6989_s4, 4  ;;  %s57_s1 = int_to_ptr.vmem [resolvable:$true] %s56_s1  ;;  %s79_s24 = int_to_ptr.hbm [resolvable:$true] %s78_s24 }
  0x16   :  { %59 = dma.hbm_to_vmem [thread:$0]  %s55_s17, 16, %s57_s1, [#allocation6]  }
  0x17   :  { %s103_s25 = sshll.u32 %s6992_s7, 4  ;;  %s6607_s26 = smov [#allocation10]   ;;  %s104_s25 = int_to_ptr.hbm [resolvable:$true] %s103_s25 }
  0x18   :  { %s80_s2 = sshll.u32 %s6607_s26, 4  ;;  %s6608_s27 = smov [#allocation13]   ;;  %s81_s2 = int_to_ptr.vmem [resolvable:$true] %s80_s2 }
  0x19   :  { %83 = dma.hbm_to_vmem [thread:$0]  %s79_s24, 64, %s81_s2, [#allocation9]  }
  0x1a   :  { %s105_s28 = sshll.u32 %s6608_s27, 4  ;;  %s127_s14 = sshll.u32 %s6994_s9, 4  ;;  %s106_s28 = int_to_ptr.vmem [resolvable:$true] %s105_s28  ;;  %s128_s14 = int_to_ptr.hbm [resolvable:$true] %s127_s14 }
  0x1b   :  { %111 = dma.hbm_to_vmem [thread:$0]  %s104_s25, 16384, %s106_s28, [#allocation12], %s6601_s20, %s6601_s20, %s6602_s21  }
  0x1c   :  { %s142_s7 = sshll.u32 %s6996_s11, 4  ;;  %s6609_s5 = smov [#allocation16]   ;;  %s143_s7 = int_to_ptr.hbm [resolvable:$true] %s142_s7 }
  0x1d   :  { %s129_s16 = sshll.u32 %s6609_s5, 4  ;;  %s6610_s17 = smov [#allocation17]   ;;  %s130_s16 = int_to_ptr.vmem [resolvable:$true] %s129_s16 }
  0x1e   :  { %135 = dma.hbm_to_vmem [thread:$0]  %s128_s14, 16384, %s130_s16, [#allocation15], %s6601_s20, %s6601_s20, %s6602_s21  }
  0x1f   :  { %s144_s9 = sshll.u32 %s6610_s17, 4  ;;  %s6611_s18 = smov 64   ;;  %s145_s9 = int_to_ptr.vmem [resolvable:$true] %s144_s9 }
  0x20   :  { %s6612_s8 = smov 4  }
  0x21   :  { %150 = dma.hbm_to_vmem [thread:$0]  %s143_s7, 4096, %s145_s9, [#allocation18], %s6611_s18, %s6611_s18, %s6612_s8  }
  0x22   :  { %6583 = dma.done.wait [#allocation3], 128  }
  0x23   :  { %6584 = vsyncadd [#allocation3], 4294967168 }
  0x24   :  { %6585 = dma.done.wait [#allocation6], 2064  }
  0x25   :  { %6586 = vsyncadd [#allocation6], 4294965232 }
  0x26   :  { %6587 = dma.done.wait [#allocation9], 4160  }
  0x27   :  { %6588 = vsyncadd [#allocation9], 4294963136 }
  0x28   :  { %6589 = dma.done.wait [#allocation12], 32768  }
  0x29   :  { %6590 = vsyncadd [#allocation12], 4294934528 }
  0x2a   :  { %6591 = dma.done.wait [#allocation15], 16448  }
  0x2b   :  { %6592 = vsyncadd [#allocation15], 4294950848 }
  0x2c   :  { %6593 = dma.done.wait [#allocation18], 4096  }
  0x2d   :  { %6594 = vsyncadd [#allocation18], 4294963200  ;;  %v209_v0 = vld [vmem:[#allocation5 + $0x78] sm:$0xff]  ;;  %v208_v1 = vld [vmem:[#allocation5 + $0x70] sm:$0xff]  ;;  %v6613_v31 = vmov 683565275  }
  0x2e   :  { %214 = vmatpush.msra.mxu0 %v209_v0  ;;  %v207_v2 = vld [vmem:[#allocation5 + $0x68] sm:$0xff]  ;;  %v206_v3 = vld [vmem:[#allocation5 + $0x60] sm:$0xff]  ;;  %v205_v4 = vld [vmem:[#allocation5 + $0x58] sm:$0xff]  ;;  %v6614_v33 = vmov 2475754826   ;;  %s6620_s1 = smov [#allocation19]  }
  0x2f   :  { %v204_v5 = vld [vmem:[#allocation5 + $0x50] sm:$0xff]  ;;  %v203_v6 = vld [vmem:[#allocation5 + $0x48] sm:$0xff]  ;;  %v202_v7 = vld [vmem:[#allocation5 + $0x40] sm:$0xff]  ;;  %v6615_v36 = vmov 2131351028   ;;  %s4001_s22 = sshll.u32 %s6620_s1, 4  ;;  %s4002_s22 = int_to_ptr.vmem [resolvable:$true] %s4001_s22 }
  0x30   :  { %215 = vmatpush.msra.mxu0 %v208_v1  ;;  %v201_v8 = vld [vmem:[#allocation5 + $0x38] sm:$0xff]  ;;  %v200_v9 = vld [vmem:[#allocation5 + $0x30] sm:$0xff]  ;;  %v199_v10 = vld [vmem:[#allocation5 + $0x28] sm:$0xff]  ;;  %v6616_v39 = vmov 2102212464   ;;  %s4003_s0 = sshll.u32 %s6998_s13, 4  ;;  %s4004_s0 = int_to_ptr.hbm [resolvable:$true] %s4003_s0 }
  0x31   :  { %v198_v11 = vld [vmem:[#allocation5 + $0x20] sm:$0xff]  ;;  %v197_v12 = vld [vmem:[#allocation5 + $0x18] sm:$0xff]  ;;  %v196_v13 = vld [vmem:[#allocation5 + $0x10] sm:$0xff]  ;;  %v6617_v42 = vmov 920167782  }
  0x32   :  { %216 = vmatpush.msra.mxu0 %v207_v2  ;;  %v195_v14 = vld [vmem:[#allocation5 + $0x8] sm:$0xff]  ;;  %v194_v15 = vld [vmem:[#allocation5] sm:$0xff]  ;;  %v6733_v16 = vld [vmem:[#allocation2] sm:$0xff]  ;;  %v6618_v45 = vmov 1326507024  }
  0x33   :  { %v6285_v17 = vld [vmem:[#allocation7] ss:$0 sm:$0xff] }
  0x34   :  { %217 = vmatpush.msra.mxu0 %v206_v3 }
  0x36   :  { %218 = vmatpush.msra.mxu0 %v205_v4 }
  0x38   :  { %219 = vmatpush.msra.mxu0 %v204_v5 }
  0x3a   :  { %220 = vmatpush.msra.mxu0 %v203_v6 }
  0x3c   :  { %221 = vmatpush.msra.mxu0 %v202_v7 }
  0x3e   :  { %222 = vmatpush.msra.mxu0 %v201_v8 }
  0x40   :  { %223 = vmatpush.msra.mxu0 %v200_v9 }
  0x42   :  { %224 = vmatpush.msra.mxu0 %v199_v10 }
  0x44   :  { %225 = vmatpush.msra.mxu0 %v198_v11 }
  0x46   :  { %226 = vmatpush.msra.mxu0 %v197_v12 }
  0x48   :  { %227 = vmatpush.msra.mxu0 %v196_v13 }
  0x4a   :  { %228 = vmatpush.msra.mxu0 %v195_v14 }
  0x4c   :  { %229 = vmatpush.msra.mxu0 %v194_v15  ;;  %v6619_v15 = vmov 0  }
  0x4d   :  { %230 = vmatmul.f32.vlgmr.msra.gmra.mxu0 %v6733_v16 }
  0xca   :  { %v231_v18 = vpop.f32.mrf.mxu0 }
  0xcb   :  { %v6736_v19 = vadd.f32 %v6285_v17, %v231_v18 }
  0xcd   :  { %v237_v20 = vand.u32 2139095040, %v6736_v19  ;;  %v234_v23 = vand.u32 2147483647, %v6736_v19  ;;  %vm236_vm13 = vcmp.lt.s32.totalorder %v6736_v19, 0 }
  0xcf   :  { %v238_v21 = vshrl.u32 %v237_v20, 23  ;;  %v241_v25 = vand.u32 8388607, %v234_v23  ;;  %vm6806_vm12 = vcmp.le.f32.partialorder %v234_v23, 0.7853982 }
  0xd0   :  { %v4631_v23 = vld [vmem:[#allocation11 + $0x3c0] sm:$0xf] }
  0xd1   :  { %v4018_v22 = vadd.s32 4294967169, %v238_v21  ;;  %v242_v29 = vor.u32 8388608, %v241_v25 }
  0xd3   :  { %v244_v24 = vadd.s32 1, %v4018_v22  ;;  %v6753_v52 = vshll.u32 %v242_v29, 8 }
  0xd5   :  { %vm245_vm0 = vcmp.gt.s32.totalorder %v244_v24, 0  ;;  %v283_v61 = vand.u32 65535, %v6753_v52  ;;  %v284_v62 = vshrl.u32 %v6753_v52, 16 }
  0xd6   :  { %v246_v26 = vsel %vm245_vm0, %v244_v24, 0 }
  0xd7   :  { %v248_v27 = vand.u32 31, %v246_v26  ;;  %v6744_v30 = vshrl.u32 %v246_v26, 5 }
  0xd9   :  { %v6742_v28 = vsub.s32 32, %v248_v27  ;;  %v251_v32 = vshll.u32 %v6613_v31, %v248_v27  ;;  %v254_v34 = vshll.u32 %v6614_v33, %v248_v27  ;;  %v257_v38 = vshll.u32 %v6615_v36, %v248_v27 }
  0xda   :  { %v260_v41 = vshll.u32 %v6616_v39, %v248_v27  ;;  %v263_v44 = vshll.u32 %v6617_v42, %v248_v27  ;;  %vm266_vm1 = vcmp.lt.s32.totalorder %v6744_v30, 1  ;;  %vm269_vm2 = vcmp.lt.s32.totalorder %v6744_v30, 4 }
  0xdb   :  { %v252_v35 = vshrl.u32 %v6614_v33, %v6742_v28  ;;  %v255_v37 = vshrl.u32 %v6615_v36, %v6742_v28  ;;  %v258_v40 = vshrl.u32 %v6616_v39, %v6742_v28  ;;  %v261_v43 = vshrl.u32 %v6617_v42, %v6742_v28 }
  0xdc   :  { %v264_v46 = vshrl.u32 %v6618_v45, %v6742_v28  ;;  %vm268_vm3 = vcmp.lt.s32.totalorder %v6744_v30, 3  ;;  %vm267_vm4 = vcmp.lt.s32.totalorder %v6744_v30, 2  ;;  %v250_v27 = vshrl.u32 %v6613_v31, %v6742_v28  ;;  %v5843_v45 = vld [vmem:[#allocation8 + $0xec] sm:$0xf0] }
  0xdd   :  { %v253_v47 = vor.u32 %v252_v35, %v251_v32  ;;  %v256_v48 = vor.u32 %v255_v37, %v254_v34  ;;  %v259_v49 = vor.u32 %v258_v40, %v257_v38  ;;  %v262_v50 = vor.u32 %v261_v43, %v260_v41 }
  0xde   :  { %v265_v51 = vor.u32 %v264_v46, %v263_v44  ;;  %v4135_v44 = vld [vmem:[#allocation8 + $0xe0] sm:$0xf]  ;;  %v5841_v46 = vld [vmem:[#allocation8 + $0xe4] sm:$0xf] }
  0xdf   :  { %v274_v53 = vsel %vm266_vm1, %v253_v47, %v256_v48  ;;  %v278_v54 = vsel %vm266_vm1, %v256_v48, %v259_v49  ;;  %v275_v55 = vsel %vm269_vm2, %v262_v50, 920167782  ;;  %v271_v24 = vsel %vm269_vm2, %v259_v49, 2102212464 }
  0xe0   :  { %v279_v56 = vsel %vm269_vm2, %v265_v51, 1326507024  ;;  %v276_v57 = vsel %vm268_vm3, %v259_v49, %v275_v55  ;;  %v270_v36 = vsel %vm266_vm1, %v250_v27, %v253_v47  ;;  %v272_v37 = vsel %vm268_vm3, %v256_v48, %v271_v24  ;;  %v4137_v48 = vld [vmem:[#allocation8 + $0xf0] sm:$0xf0]  ;;  %v4143_v49 = vld [vmem:[#allocation8 + $0xe8] sm:$0xf] }
  0xe1   :  { %v280_v58 = vsel %vm268_vm3, %v262_v50, %v279_v56  ;;  %v277_v59 = vsel %vm267_vm4, %v274_v53, %v276_v57  ;;  %v273_v28 = vsel %vm267_vm4, %v270_v36, %v272_v37  ;;  %v4136_v47 = vor.u32 %v5843_v45, %v4135_v44  ;;  %v5844_v50 = vld [vmem:[#allocation8 + $0xf4] sm:$0xf0]  ;;  %v5842_v55 = vld [vmem:[#allocation8 + $0xec] sm:$0xf]  ;;  %v4145_v56 = vld [vmem:[#allocation8 + $0xf8] sm:$0xf0] }
  0xe2   :  { %v281_v60 = vsel %vm267_vm4, %v278_v54, %v280_v58  ;;  %v307_v1 = vand.u32 65535, %v277_v59  ;;  %v308_v2 = vshrl.u32 %v277_v59, 16  ;;  %v4140_v53 = vor.u32 %v5841_v46, %v4137_v48  ;;  %v4119_v59 = vld [vmem:[#allocation8 + $0xc0] sm:$0xf]  ;;  %v5829_v27 = vld [vmem:[#allocation8 + $0x84] sm:$0xf] }
  0xe3   :  { %v285_v63 = vand.u32 65535, %v281_v60  ;;  %v286_v0 = vshrl.u32 %v281_v60, 16  ;;  %v4144_v54 = vor.u32 %v5844_v50, %v4143_v49  ;;  %v327_v57 = vmul.u32 %v6753_v52, %v273_v28  ;;  %593 = vmatpush.bf16.msra.mxu1 %v4136_v47  ;;  %v5839_v60 = vld [vmem:[#allocation8 + $0xcc] sm:$0xf0]  ;;  %v4071_v28 = vld [vmem:[#allocation8 + $0x60] sm:$0xf] }
  0xe4   :  { %v310_v5 = vmul.u32 %v308_v2, %v283_v61  ;;  %v311_v6 = vmul.u32 %v307_v1, %v284_v62  ;;  %v309_v10 = vmul.u32 %v307_v1, %v283_v61  ;;  %v312_v14 = vmul.u32 %v308_v2, %v284_v62  ;;  %606 = vmatpush.bf16.msra.mxu2 %v4140_v53  ;;  %v4127_v1 = vld [vmem:[#allocation8 + $0xc8] sm:$0xf]  ;;  %v5840_v2 = vld [vmem:[#allocation8 + $0xd4] sm:$0xf0]  ;;  %v5825_v44 = vld [vmem:[#allocation8 + $0x64] sm:$0xf] }
  0xe5   :  { %v288_v3 = vmul.u32 %v286_v0, %v283_v61  ;;  %v289_v4 = vmul.u32 %v285_v63, %v284_v62  ;;  %v287_v7 = vmul.u32 %v285_v63, %v283_v61  ;;  %v290_v9 = vmul.u32 %v286_v0, %v284_v62  ;;  %619 = vmatpush.bf16.msra.mxu3 %v4144_v54  ;;  %v5837_v61 = vld [vmem:[#allocation8 + $0xc4] sm:$0xf]  ;;  %v4121_v0 = vld [vmem:[#allocation8 + $0xd0] sm:$0xf0]  ;;  %v4079_v48 = vld [vmem:[#allocation8 + $0x68] sm:$0xf] }
  0xe6   :  { %v313_v11 = vshll.u32 %v310_v5, 16  ;;  %v315_v18 = vshll.u32 %v311_v6, 16  ;;  %v314_v34 = vshrl.u32 %v310_v5, 16  ;;  %v316_v40 = vshrl.u32 %v311_v6, 16  ;;  %v5838_v5 = vld [vmem:[#allocation8 + $0xcc] sm:$0xf] }
  0xe7   :  { %v291_v8 = vshll.u32 %v288_v3, 16  ;;  %v293_v12 = vshll.u32 %v289_v4, 16  ;;  %v292_v29 = vshrl.u32 %v288_v3, 16  ;;  %v294_v38 = vshrl.u32 %v289_v4, 16  ;;  %v4129_v6 = vld [vmem:[#allocation8 + $0xd8] sm:$0xf0] }
  0xe8   :  { %vm317_vm6 = vc.u32 %v309_v10, %v313_v11  ;;  %v319_v20 = vadd.s32 %v313_v11, %v309_v10  ;;  %v4148_v30 = vor.u32 %v5842_v55, %v4145_v56  ;;  %v4120_v63 = vor.u32 %v5839_v60, %v4119_v59  ;;  %v5833_v10 = vld [vmem:[#allocation8 + $0xa4] sm:$0xf]  ;;  %v4073_v47 = vld [vmem:[#allocation8 + $0x70] sm:$0xf0]  ;;  %v5828_v49 = vld [vmem:[#allocation8 + $0x74] sm:$0xf0] }
  0xe9   :  { %vm295_vm5 = vc.u32 %v287_v7, %v291_v8  ;;  %v297_v13 = vadd.s32 %v291_v8, %v287_v7  ;;  %v318_v22 = vsel %vm317_vm6, 1, %v6619_v15  ;;  %v4124_v3 = vor.u32 %v5837_v61, %v4121_v0  ;;  %v4103_v8 = vld [vmem:[#allocation8 + $0xa0] sm:$0xf]  ;;  %v5826_v54 = vld [vmem:[#allocation8 + $0x6c] sm:$0xf] }
  0xea   :  { %v296_v17 = vsel %vm295_vm5, 1, %v6619_v15  ;;  %v320_v26 = vadd.s32 %v318_v22, %v312_v14  ;;  %vm321_vm8 = vc.u32 %v319_v20, %v315_v18  ;;  %v6786_v43 = vadd.s32 %v319_v20, %v315_v18  ;;  %632 = vmatpush.bf16.msrb.mxu0 %v4148_v30  ;;  %594 = vmatpush.bf16.msra.mxu1 %v4120_v63  ;;  %v4111_v14 = vld [vmem:[#allocation8 + $0xa8] sm:$0xf]  ;;  %v5834_v18 = vld [vmem:[#allocation8 + $0xac] sm:$0xf] }
  0xeb   :  { %v298_v21 = vadd.s32 %v296_v17, %v290_v9  ;;  %vm299_vm7 = vc.u32 %v297_v13, %v293_v12  ;;  %v322_v33 = vsel %vm321_vm8, 1, %v6619_v15  ;;  %v4128_v4 = vor.u32 %v5840_v2, %v4127_v1  ;;  %607 = vmatpush.bf16.msra.mxu2 %v4124_v3  ;;  %v5835_v9 = vld [vmem:[#allocation8 + $0xac] sm:$0xf0]  ;;  %v4105_v13 = vld [vmem:[#allocation8 + $0xb0] sm:$0xf0] }
  0xec   :  { %v300_v25 = vsel %vm299_vm7, 1, %v6619_v15  ;;  %v324_v35 = vadd.s32 %v322_v33, %v320_v26  ;;  %v4132_v52 = vor.u32 %v5838_v5, %v4129_v6  ;;  %v4104_v12 = vor.u32 %v5835_v9, %v4103_v8  ;;  %v5836_v17 = vld [vmem:[#allocation8 + $0xb4] sm:$0xf0]  ;;  %v4113_v20 = vld [vmem:[#allocation8 + $0xb8] sm:$0xf0] }
  0xed   :  { %v302_v32 = vadd.s32 %v300_v25, %v298_v21  ;;  %620 = vmatpush.bf16.msra.mxu3 %v4128_v4  ;;  %v4108_v15 = vor.u32 %v5833_v10, %v4105_v13  ;;  %v4112_v22 = vor.u32 %v5836_v17, %v4111_v14  ;;  %v4116_v24 = vor.u32 %v5834_v18, %v4113_v20  ;;  %v4087_v25 = vld [vmem:[#allocation8 + $0x80] sm:$0xf]  ;;  %v5831_v26 = vld [vmem:[#allocation8 + $0x8c] sm:$0xf0]  ;;  %v4089_v33 = vld [vmem:[#allocation8 + $0x90] sm:$0xf0] }
  0xee   :  { %v325_v41 = vadd.s32 %v324_v35, %v314_v34  ;;  %633 = vmatpush.bf16.msrb.mxu0 %v4132_v52  ;;  %595 = vmatpush.bf16.msra.mxu1 %v4104_v12  ;;  %v4095_v34 = vld [vmem:[#allocation8 + $0x88] sm:$0xf]  ;;  %v5832_v35 = vld [vmem:[#allocation8 + $0x94] sm:$0xf0]  ;;  %v4092_v36 = vor.u32 %v5829_v27, %v4089_v33  ;;  %v4080_v53 = vor.u32 %v5828_v49, %v4079_v48  ;;  %v4081_v55 = vld [vmem:[#allocation8 + $0x78] sm:$0xf0]  ;;  %vm377_vm1 = vweird.f32 %v6736_v19 }
  0xef   :  { %v303_v39 = vadd.s32 %v302_v32, %v292_v29  ;;  %608 = vmatpush.bf16.msra.mxu2 %v4108_v15  ;;  %v4088_v32 = vor.u32 %v5831_v26, %v4087_v25  ;;  %v4096_v37 = vor.u32 %v5832_v35, %v4095_v34  ;;  %v4084_v56 = vor.u32 %v5826_v54, %v4081_v55  ;;  %v4055_v30 = vld [vmem:[#allocation8 + $0x40] sm:$0xf]  ;;  %v5821_v60 = vld [vmem:[#allocation8 + $0x44] sm:$0xf]  ;;  %v4057_v61 = vld [vmem:[#allocation8 + $0x50] sm:$0xf0] }
  0xf0   :  { %v326_v31 = vadd.s32 %v325_v41, %v316_v40  ;;  %v4060_v63 = vor.u32 %v5821_v60, %v4057_v61  ;;  %v5824_v0 = vld [vmem:[#allocation8 + $0x54] sm:$0xf0]  ;;  %v5822_v1 = vld [vmem:[#allocation8 + $0x4c] sm:$0xf]  ;;  %v4065_v4 = vld [vmem:[#allocation8 + $0x58] sm:$0xf0] }
  0xf1   :  { %v6784_v42 = vadd.s32 %v303_v39, %v294_v38  ;;  %621 = vmatpush.bf16.msra.mxu3 %v4112_v22  ;;  %v5830_v38 = vld [vmem:[#allocation8 + $0x8c] sm:$0xf]  ;;  %v4097_v39 = vld [vmem:[#allocation8 + $0x98] sm:$0xf0]  ;;  %v4039_v5 = vld [vmem:[#allocation8 + $0x20] sm:$0xf]  ;;  %v4068_v8 = vor.u32 %v5822_v1, %v4065_v4 }
  0xf2   :  { %v330_v51 = vadd.s32 1, %v326_v31  ;;  %634 = vmatpush.bf16.msrb.mxu0 %v4116_v24  ;;  %596 = vmatpush.bf16.msra.mxu1 %v4088_v32  ;;  %v4100_v41 = vor.u32 %v5830_v38, %v4097_v39  ;;  %v5819_v9 = vld [vmem:[#allocation8 + $0x2c] sm:$0xf0]  ;;  %v5817_v10 = vld [vmem:[#allocation8 + $0x24] sm:$0xf] }
  0xf3   :  { %vm329_vm9 = vc.u32 %v6784_v42, %v6786_v43  ;;  %609 = vmatpush.bf16.msra.mxu2 %v4092_v36  ;;  %v328_v6 = vadd.s32 %v6786_v43, %v6784_v42  ;;  %v4040_v13 = vor.u32 %v5819_v9, %v4039_v5  ;;  %v4041_v14 = vld [vmem:[#allocation8 + $0x30] sm:$0xf0]  ;;  %v4047_v15 = vld [vmem:[#allocation8 + $0x28] sm:$0xf]  ;;  %v5820_v17 = vld [vmem:[#allocation8 + $0x34] sm:$0xf0] }
  0xf4   :  { %v331_v58 = vsel %vm329_vm9, %v330_v51, %v326_v31  ;;  %v5827_v31 = vld [vmem:[#allocation8 + $0x6c] sm:$0xf0]  ;;  %v4076_v51 = vor.u32 %v5825_v44, %v4073_v47  ;;  %v4048_v22 = vor.u32 %v5820_v17, %v4047_v15  ;;  %v5818_v24 = vld [vmem:[#allocation8 + $0x2c] sm:$0xf]  ;;  %v4049_v42 = vld [vmem:[#allocation8 + $0x38] sm:$0xf0] }
  0xf5   :  { %v332_v62 = vadd.s32 %v331_v58, %v327_v57  ;;  %622 = vmatpush.bf16.msra.mxu3 %v4096_v37  ;;  %v4072_v46 = vor.u32 %v5827_v31, %v4071_v28  ;;  %v5823_v58 = vld [vmem:[#allocation8 + $0x4c] sm:$0xf0]  ;;  %v4052_v43 = vor.u32 %v5818_v24, %v4049_v42  ;;  %v4023_v25 = vld [vmem:[#allocation8] sm:$0xf]  ;;  %v5813_v27 = vld [vmem:[#allocation8 + $0x4] sm:$0xf] }
  0xf6   :  { %635 = vmatpush.bf16.msrb.mxu0 %v4100_v41  ;;  %v4056_v59 = vor.u32 %v5823_v58, %v4055_v30  ;;  %v5815_v26 = vld [vmem:[#allocation8 + $0xc] sm:$0xf0]  ;;  %v4025_v34 = vld [vmem:[#allocation8 + $0x10] sm:$0xf0]  ;;  %v4031_v35 = vld [vmem:[#allocation8 + $0x8] sm:$0xf] }
  0xf7   :  { %v333_v7 = vadd.s32 536870912, %v332_v62  ;;  %597 = vmatpush.bf16.msra.mxu1 %v4072_v46  ;;  %610 = vmatpush.bf16.msra.mxu2 %v4076_v51  ;;  %v4028_v36 = vor.u32 %v5813_v27, %v4025_v34  ;;  %v5816_v37 = vld [vmem:[#allocation8 + $0x14] sm:$0xf0]  ;;  %v5814_v38 = vld [vmem:[#allocation8 + $0xc] sm:$0xf] }
  0xf8   :  { %v4033_v39 = vld [vmem:[#allocation8 + $0x18] sm:$0xf0]  ;;  %v4032_v41 = vor.u32 %v5816_v37, %v4031_v35  ;;  %v4263_v47 = vld [vmem:[#allocation11 + $0xe0] sm:$0xf]  ;;  %v5875_v48 = vld [vmem:[#allocation11 + $0xec] sm:$0xf0] }
  0xf9   :  { %v6793_v11 = vshrl.u32 %v333_v7, 30  ;;  %623 = vmatpush.bf16.msra.mxu3 %v4080_v53  ;;  %v4036_v28 = vor.u32 %v5814_v38, %v4033_v39  ;;  %v4647_v49 = vld [vmem:[#allocation11 + $0x3e0] sm:$0xf]  ;;  %v5971_v51 = vld [vmem:[#allocation11 + $0x3ec] sm:$0xf0] }
  0xfa   :  { %636 = vmatpush.bf16.msrb.mxu0 %v4084_v56  ;;  %v4247_v53 = vld [vmem:[#allocation11 + $0xc0] sm:$0xf]  ;;  %v5871_v54 = vld [vmem:[#allocation11 + $0xcc] sm:$0xf0] }
  0xfb   :  { %v335_v21 = vshll.u32 %v6793_v11, 30  ;;  %598 = vmatpush.bf16.msra.mxu1 %v4056_v59  ;;  %611 = vmatpush.bf16.msra.mxu2 %v4060_v63  ;;  %v358_v56 = vsub.s32 4, %v6793_v11  ;;  %v5967_v30 = vld [vmem:[#allocation11 + $0x3cc] sm:$0xf0]  ;;  %v4248_v58 = vor.u32 %v5871_v54, %v4247_v53  ;;  %v4391_v59 = vld [vmem:[#allocation11 + $0x1e0] sm:$0xf] }
  0xfc   :  { %v5907_v60 = vld [vmem:[#allocation11 + $0x1ec] sm:$0xf0]  ;;  %v4519_v61 = vld [vmem:[#allocation11 + $0x2e0] sm:$0xf]  ;;  %v4632_v63 = vor.u32 %v5967_v30, %v4631_v23 }
  0xfd   :  { %v6796_v29 = vsub.s32 %v332_v62, %v335_v21  ;;  %v4063_v62 = vld [vmem:[#allocation8 + $0x48] sm:$0xf]  ;;  %v4044_v21 = vor.u32 %v5817_v10, %v4041_v14  ;;  %v5939_v1 = vld [vmem:[#allocation11 + $0x2ec] sm:$0xf0]  ;;  %v4503_v10 = vld [vmem:[#allocation11 + $0x2c0] sm:$0xf] }
  0xfe   :  { %v4064_v3 = vor.u32 %v5824_v0, %v4063_v62  ;;  %637 = vmatpush.bf16.msrb.mxu0 %v4068_v8  ;;  %v4392_v0 = vor.u32 %v5907_v60, %v4391_v59  ;;  %v4520_v5 = vor.u32 %v5939_v1, %v4519_v61  ;;  %v5903_v9 = vld [vmem:[#allocation11 + $0x1cc] sm:$0xf0]  ;;  %v4215_v17 = vld [vmem:[#allocation11 + $0x80] sm:$0xf] }
  0xff   :  { %vm337_vm10 = vcmp.lt.s32.totalorder %v6796_v29, 0  ;;  %v338_v40 = vsub.s32 0, %v6796_v29  ;;  %599 = vmatpush.bf16.msra.mxu1 %v4040_v13  ;;  %612 = vmatpush.bf16.msra.mxu2 %v4044_v21  ;;  %v359_v21 = vsel %vm236_vm13, %v358_v56, %v6793_v11  ;;  %v4487_v27 = vld [vmem:[#allocation11 + $0x2a0] sm:$0xf]  ;;  %v5931_v34 = vld [vmem:[#allocation11 + $0x2ac] sm:$0xf0] }
 0x100   :  { %624 = vmatpush.bf16.msra.mxu3 %v4064_v3  ;;  %v5867_v3 = vld [vmem:[#allocation11 + $0xac] sm:$0xf0]  ;;  %v361_v35 = vsel %vm6806_vm12, 0, %v359_v21  ;;  %v4488_v11 = vor.u32 %v5931_v34, %v4487_v27  ;;  %v4199_v37 = vld [vmem:[#allocation11 + $0x60] sm:$0xf] }
 0x101   :  { %v339_v45 = vsel %vm337_vm10, %v338_v40, %v6796_v29  ;;  %v5859_v38 = vld [vmem:[#allocation11 + $0x6c] sm:$0xf0]  ;;  %v4455_v60 = vld [vmem:[#allocation11 + $0x260] sm:$0xf] }
 0x102   :  { %v340_v50 = vclz %v339_v45  ;;  %638 = vmatpush.bf16.msrb.mxu0 %v4052_v43  ;;  %v5959_v43 = vld [vmem:[#allocation11 + $0x38c] sm:$0xf0]  ;;  %v378_v45 = vadd.s32 3, %v361_v35  ;;  %v4200_v53 = vor.u32 %v5859_v38, %v4199_v37  ;;  %v4151_v27 = vld [vmem:[#allocation11] sm:$0xf] }
 0x103   :  { %613 = vmatpush.bf16.msra.mxu2 %v4028_v36  ;;  %v5855_v56 = vld [vmem:[#allocation11 + $0x4c] sm:$0xf0] }
 0x104   :  { %v4019_v57 = vadd.s32 4294967294, %v340_v50  ;;  %625 = vmatpush.bf16.msra.mxu3 %v4048_v22  ;;  %v4264_v50 = vor.u32 %v5875_v48, %v4263_v47  ;;  %v4471_v47 = vld [vmem:[#allocation11 + $0x280] sm:$0xf]  ;;  %v5927_v48 = vld [vmem:[#allocation11 + $0x28c] sm:$0xf0] }
 0x105   :  { %v4472_v54 = vor.u32 %v5927_v48, %v4471_v47  ;;  %v5891_v59 = vld [vmem:[#allocation11 + $0x16c] sm:$0xf0]  ;;  %v5905_v48 = vld [vmem:[#allocation11 + $0x1e4] sm:$0xf] }
 0x106   :  { %vm4020_vm11 = vcmp.lt.s32.totalorder %v4019_v57, 0  ;;  %639 = vmatpush.bf16.msrb.mxu0 %v4036_v28  ;;  %v4583_v28 = vld [vmem:[#allocation11 + $0x360] sm:$0xf]  ;;  %v5923_v61 = vld [vmem:[#allocation11 + $0x26c] sm:$0xf0] }
 0x107   :  { %v343_v2 = vsel %vm4020_vm11, 0, %v4019_v57  ;;  %v4648_v57 = vor.u32 %v5971_v51, %v4647_v49  ;;  %1456 = vmatpush.bf16.msrb.mxu2 %v4392_v0  ;;  %v5943_v34 = vld [vmem:[#allocation11 + $0x30c] sm:$0xf0] }
 0x108   :  { %v344_v7 = vsub.s32 32, %v343_v2  ;;  %v348_v52 = vsub.s32 4294967266, %v343_v2  ;;  %v345_v12 = vshll.u32 %v6796_v29, %v343_v2  ;;  %v4024_v29 = vor.u32 %v5815_v26, %v4023_v25  ;;  %626 = vmatpush.bf16.msra.mxu3 %v4032_v41  ;;  %v4231_v2 = vld [vmem:[#allocation11 + $0xa0] sm:$0xf]  ;;  %v5899_v26 = vld [vmem:[#allocation11 + $0x1ac] sm:$0xf0] }
 0x109   :  { %v4232_v13 = vor.u32 %v5867_v3, %v4231_v2  ;;  %v4359_v25 = vld [vmem:[#allocation11 + $0x1a0] sm:$0xf]  ;;  %v379_v2 = vand.u32 3, %v378_v45 }
 0x10a   :  { %v346_v18 = vshrl.u32 %v328_v6, %v344_v7  ;;  %v349_v20 = vadd.s32 127, %v348_v52  ;;  %600 = vmatpush.bf16.msra.mxu1 %v4024_v29  ;;  %1482 = vmatpush.bf16.msra.mxu0 %v4648_v57  ;;  %v4615_v6 = vld [vmem:[#allocation11 + $0x3a0] sm:$0xf]  ;;  %v5963_v7 = vld [vmem:[#allocation11 + $0x3ac] sm:$0xf0]  ;;  %v4360_v29 = vor.u32 %v5899_v26, %v4359_v25 }
 0x10b   :  { %v4375_v52 = vld [vmem:[#allocation11 + $0x1c0] sm:$0xf]  ;;  %v4616_v42 = vor.u32 %v5963_v7, %v4615_v6  ;;  %v4456_v7 = vor.u32 %v5923_v61, %v4455_v60  ;;  %vm381_vm14 = vcmp.eq.s32.totalorder %v379_v2, 0  ;;  %vm384_vm15 = vcmp.eq.s32.totalorder %v379_v2, 2  ;;  %v5901_v60 = vld [vmem:[#allocation11 + $0x1c4] sm:$0xf] }
 0x10c   :  { %v347_v32 = vor.u32 %v346_v18, %v345_v12  ;;  %v350_v33 = vshll.u32 %v349_v20, 23  ;;  %v5935_v12 = vld [vmem:[#allocation11 + $0x2cc] sm:$0xf0]  ;;  %1469 = vmatpush.bf16.msrb.mxu3 %v4520_v5  ;;  %v4376_v14 = vor.u32 %v5903_v9, %v4375_v52  ;;  %v4599_v20 = vld [vmem:[#allocation11 + $0x380] sm:$0xf]  ;;  %vm380_vm0 = vcmp.lt.s32.totalorder %v379_v2, 2 }
 0x10d   :  { %v4504_v15 = vor.u32 %v5935_v12, %v4503_v10  ;;  %v5863_v18 = vld [vmem:[#allocation11 + $0x8c] sm:$0xf0]  ;;  %v4600_v41 = vor.u32 %v5959_v43, %v4599_v20  ;;  %v4327_v57 = vld [vmem:[#allocation11 + $0x160] sm:$0xf]  ;;  %v4377_v61 = vld [vmem:[#allocation11 + $0x1d0] sm:$0xf0] }
 0x10e   :  { %v351_v40 = vor.u32 4788187, %v350_v33  ;;  %v354_v44 = vcvt.s32.f32 %v347_v32  ;;  %1443 = vmatpush.bf16.msrb.mxu1 %v4264_v50  ;;  %1483 = vmatpush.bf16.msra.mxu0 %v4632_v63  ;;  %v4216_v36 = vor.u32 %v5863_v18, %v4215_v17  ;;  %v5951_v63 = vld [vmem:[#allocation11 + $0x34c] sm:$0xf0]  ;;  %v4328_v3 = vor.u32 %v5891_v59, %v4327_v57  ;;  %v4167_v5 = vld [vmem:[#allocation11 + $0x20] sm:$0xf] }
 0x10f   :  { %1457 = vmatpush.bf16.msrb.mxu2 %v4376_v14  ;;  %v5851_v52 = vld [vmem:[#allocation11 + $0x2c] sm:$0xf0]  ;;  %v4311_v9 = vld [vmem:[#allocation11 + $0x140] sm:$0xf]  ;;  %v4521_v59 = vld [vmem:[#allocation11 + $0x2f0] sm:$0xf0] }
 0x110   :  { %v352_v31 = vand.u32 2147483647, %v351_v40  ;;  %1470 = vmatpush.bf16.msrb.mxu3 %v4504_v15  ;;  %v4439_v14 = vld [vmem:[#allocation11 + $0x240] sm:$0xf]  ;;  %v5919_v15 = vld [vmem:[#allocation11 + $0x24c] sm:$0xf0] }
 0x111   :  { %v4551_v17 = vld [vmem:[#allocation11 + $0x320] sm:$0xf]  ;;  %v5947_v18 = vld [vmem:[#allocation11 + $0x32c] sm:$0xf0]  ;;  %v4233_v2 = vld [vmem:[#allocation11 + $0xb0] sm:$0xf0] }
 0x112   :  { %v355_v46 = vmul.f32 %v354_v44, %v352_v31  ;;  %1444 = vmatpush.bf16.msrb.mxu1 %v4248_v58  ;;  %1484 = vmatpush.bf16.msra.mxu0 %v4616_v42  ;;  %v4343_v31 = vld [vmem:[#allocation11 + $0x180] sm:$0xf]  ;;  %v5895_v44 = vld [vmem:[#allocation11 + $0x18c] sm:$0xf0]  ;;  %v4552_v26 = vor.u32 %v5947_v18, %v4551_v17  ;;  %v4601_v18 = vld [vmem:[#allocation11 + $0x390] sm:$0xf0] }
 0x113   :  { %1458 = vmatpush.bf16.msrb.mxu2 %v4360_v29  ;;  %v4344_v51 = vor.u32 %v5895_v44, %v4343_v31  ;;  %v4295_v42 = vld [vmem:[#allocation11 + $0x120] sm:$0xf]  ;;  %v5883_v43 = vld [vmem:[#allocation11 + $0x12c] sm:$0xf0] }
 0x114   :  { %v356_v55 = vxor.u32 2147483648, %v355_v46  ;;  %1471 = vmatpush.bf16.msrb.mxu3 %v4488_v11  ;;  %v4535_v29 = vld [vmem:[#allocation11 + $0x300] sm:$0xf]  ;;  %v4265_v11 = vld [vmem:[#allocation11 + $0xf0] sm:$0xf0]  ;;  %v4296_v37 = vor.u32 %v5883_v43, %v4295_v42 }
 0x115   :  { %v4279_v31 = vld [vmem:[#allocation11 + $0x100] sm:$0xf]  ;;  %v4536_v47 = vor.u32 %v5943_v34, %v4535_v29  ;;  %v4489_v43 = vld [vmem:[#allocation11 + $0x2b0] sm:$0xf0]  ;;  %v5893_v34 = vld [vmem:[#allocation11 + $0x184] sm:$0xf] }
 0x116   :  { %v357_v62 = vsel %vm236_vm13, %v356_v55, %v355_v46  ;;  %1445 = vmatpush.bf16.msrb.mxu1 %v4232_v13  ;;  %v5955_v46 = vld [vmem:[#allocation11 + $0x36c] sm:$0xf0]  ;;  %v4183_v55 = vld [vmem:[#allocation11 + $0x40] sm:$0xf]  ;;  %1485 = vmatpush.bf16.msra.mxu0 %v4600_v41 }
 0x117   :  { %v6817_v4 = vsel %vm6806_vm12, %v6736_v19, %v357_v62  ;;  %v4584_v58 = vor.u32 %v5955_v46, %v4583_v28  ;;  %v4567_v62 = vld [vmem:[#allocation11 + $0x340] sm:$0xf]  ;;  %1459 = vmatpush.bf16.msrb.mxu2 %v4344_v51  ;;  %v4184_v6 = vor.u32 %v5855_v56, %v4183_v55  ;;  %v5915_v28 = vld [vmem:[#allocation11 + $0x22c] sm:$0xf0]  ;;  %v5869_v51 = vld [vmem:[#allocation11 + $0xc4] sm:$0xf] }
 0x118   :  { %v362_v8 = vmul.f32 %v6817_v4, %v6817_v4  ;;  %1472 = vmatpush.bf16.msrb.mxu3 %v4472_v54  ;;  %v4568_v13 = vor.u32 %v5951_v63, %v4567_v62  ;;  %v4423_v41 = vld [vmem:[#allocation11 + $0x220] sm:$0xf]  ;;  %v5879_v19 = vld [vmem:[#allocation11 + $0x10c] sm:$0xf0]  ;;  %v5965_v54 = vld [vmem:[#allocation11 + $0x3c4] sm:$0xf] }
 0x119   :  { %v4633_v55 = vld [vmem:[#allocation11 + $0x3d0] sm:$0xf0]  ;;  %v4280_v56 = vor.u32 %v5879_v19, %v4279_v31  ;;  %v4407_v57 = vld [vmem:[#allocation11 + $0x200] sm:$0xf] }
 0x11a   :  { %v370_v22 = vmul.f32 -0.00019511016, %v362_v8  ;;  %v363_v24 = vmul.f32 -0.001358992, %v362_v8  ;;  %1446 = vmatpush.bf16.msrb.mxu1 %v4216_v36  ;;  %1486 = vmatpush.bf16.msra.mxu0 %v4584_v58  ;;  %v5873_v36 = vld [vmem:[#allocation11 + $0xe4] sm:$0xf]  ;;  %v4636_v63 = vor.u32 %v5965_v54, %v4633_v55 }
 0x11b   :  { %1460 = vmatpush.bf16.msrb.mxu2 %v4328_v3  ;;  %v5937_v58 = vld [vmem:[#allocation11 + $0x2e4] sm:$0xf]  ;;  %v4569_v31 = vld [vmem:[#allocation11 + $0x350] sm:$0xf0] }
 0x11c   :  { %v371_v32 = vadd.f32 0.008332121, %v370_v22  ;;  %v364_v33 = vadd.f32 0.041655596, %v363_v24  ;;  %1473 = vmatpush.bf16.msrb.mxu3 %v4456_v7  ;;  %v4168_v22 = vor.u32 %v5851_v52, %v4167_v5  ;;  %v4440_v24 = vor.u32 %v5919_v15, %v4439_v14  ;;  %v5961_v3 = vld [vmem:[#allocation11 + $0x3a4] sm:$0xf] }
 0x11d   :  { %v4617_v5 = vld [vmem:[#allocation11 + $0x3b0] sm:$0xf0]  ;;  %v4380_v7 = vor.u32 %v5901_v60, %v4377_v61  ;;  %v5933_v52 = vld [vmem:[#allocation11 + $0x2c4] sm:$0xf] }
 0x11e   :  { %v372_v39 = vmul.f32 %v371_v32, %v362_v8  ;;  %v365_v40 = vmul.f32 %v364_v33, %v362_v8  ;;  %1447 = vmatpush.bf16.msrb.mxu1 %v4200_v53  ;;  %1487 = vmatpush.bf16.msra.mxu0 %v4568_v13  ;;  %v5847_v33 = vld [vmem:[#allocation11 + $0xc] sm:$0xf0]  ;;  %v4249_v53 = vld [vmem:[#allocation11 + $0xd0] sm:$0xf0]  ;;  %v5861_v13 = vld [vmem:[#allocation11 + $0x84] sm:$0xf] }
 0x11f   :  { %v4152_v46 = vor.u32 %v5847_v33, %v4151_v27  ;;  %v4252_v62 = vor.u32 %v5869_v51, %v4249_v53  ;;  %v4217_v14 = vld [vmem:[#allocation11 + $0x90] sm:$0xf0]  ;;  %v5957_v15 = vld [vmem:[#allocation11 + $0x384] sm:$0xf] }
 0x120   :  { %v373_v49 = vadd.f32 -0.16666654, %v372_v39  ;;  %v366_v50 = vadd.f32 -0.4999988, %v365_v40  ;;  %1474 = vmatpush.bf16.msrb.mxu3 %v4440_v24  ;;  %v5969_v39 = vld [vmem:[#allocation11 + $0x3e4] sm:$0xf]  ;;  %v4220_v17 = vor.u32 %v5861_v13, %v4217_v14 }
 0x121   :  { %v4649_v40 = vld [vmem:[#allocation11 + $0x3f0] sm:$0xf0]  ;;  %v5929_v24 = vld [vmem:[#allocation11 + $0x2a4] sm:$0xf]  ;;  %v423_v14 = vld [vmem:[#allocation10] sm:$0xf] }
 0x122   :  { %v374_v23 = vmul.f32 %v373_v49, %v362_v8  ;;  %v367_v30 = vmul.f32 %v366_v50, %v362_v8  ;;  %v5887_v8 = vld [vmem:[#allocation11 + $0x14c] sm:$0xf0]  ;;  %1448 = vmatpush.bf16.msrb.mxu1 %v4184_v6  ;;  %1488 = vmatpush.bf16.msra.mxu0 %v4552_v26  ;;  %v4393_v49 = vld [vmem:[#allocation11 + $0x1f0] sm:$0xf0]  ;;  %v4268_v50 = vor.u32 %v5873_v36, %v4265_v11  ;;  %v5953_v27 = vld [vmem:[#allocation11 + $0x364] sm:$0xf] }
 0x123   :  { %v4312_v21 = vor.u32 %v5887_v8, %v4311_v9  ;;  %v4652_v45 = vor.u32 %v5969_v39, %v4649_v40  ;;  %v4524_v6 = vor.u32 %v5937_v58, %v4521_v59  ;;  %v4505_v9 = vld [vmem:[#allocation11 + $0x2d0] sm:$0xf0]  ;;  %v5925_v36 = vld [vmem:[#allocation11 + $0x284] sm:$0xf] }
 0x124   :  { %v375_v0 = vadd.f32 1.0, %v374_v23  ;;  %v368_v1 = vadd.f32 1.0, %v367_v30  ;;  %v5911_v23 = vld [vmem:[#allocation11 + $0x20c] sm:$0xf0]  ;;  %v4396_v30 = vor.u32 %v5905_v48, %v4393_v49  ;;  %v4201_v26 = vld [vmem:[#allocation11 + $0x70] sm:$0xf0] }
 0x125   :  { %1461 = vmatpush.bf16.msrb.mxu2 %v4312_v21  ;;  %v5897_v21 = vld [vmem:[#allocation11 + $0x1a4] sm:$0xf]  ;;  %v4585_v33 = vld [vmem:[#allocation11 + $0x370] sm:$0xf0] }
 0x126   :  { %v376_v10 = vmul.f32 %v375_v0, %v6817_v4  ;;  %v385_v12 = vxor.u32 2147483648, %v368_v1  ;;  %1449 = vmatpush.bf16.msrb.mxu1 %v4168_v22  ;;  %1489 = vmatpush.bf16.msra.mxu0 %v4536_v47  ;;  %v5865_v0 = vld [vmem:[#allocation11 + $0xa4] sm:$0xf]  ;;  %v4361_v22 = vld [vmem:[#allocation11 + $0x1b0] sm:$0xf0]  ;;  %v4588_v29 = vor.u32 %v5953_v27, %v4585_v33 }
 0x127   :  { %v4236_v8 = vor.u32 %v5865_v0, %v4233_v2  ;;  %v4364_v42 = vor.u32 %v5897_v21, %v4361_v22  ;;  %v5853_v39 = vld [vmem:[#allocation11 + $0x44] sm:$0xf]  ;;  %v4185_v40 = vld [vmem:[#allocation11 + $0x50] sm:$0xf0] }
 0x128   :  { %v382_v20 = vxor.u32 2147483648, %v376_v10  ;;  %v386_v25 = vsel %vm384_vm15, %v385_v12, %v376_v10  ;;  %v4620_v10 = vor.u32 %v5961_v3, %v4617_v5  ;;  %v4508_v12 = vor.u32 %v5933_v52, %v4505_v9  ;;  %v5921_v47 = vld [vmem:[#allocation11 + $0x264] sm:$0xf]  ;;  %v4457_v49 = vld [vmem:[#allocation11 + $0x270] sm:$0xf0] }
 0x129   :  { %1462 = vmatpush.bf16.msrb.mxu2 %v4296_v37  ;;  %v4473_v37 = vld [vmem:[#allocation11 + $0x290] sm:$0xf0]  ;;  %v5845_v60 = vld [vmem:[#allocation11 + $0x4] sm:$0xf] }
 0x12a   :  { %v383_v4 = vsel %vm381_vm14, %v368_v1, %v382_v20  ;;  %1450 = vmatpush.bf16.msrb.mxu1 %v4152_v46  ;;  %v4408_v1 = vor.u32 %v5911_v23, %v4407_v57  ;;  %v4604_v20 = vor.u32 %v5957_v15, %v4601_v18  ;;  %v4329_v46 = vld [vmem:[#allocation11 + $0x170] sm:$0xf0]  ;;  %v5917_v23 = vld [vmem:[#allocation11 + $0x244] sm:$0xf]  ;;  %v428_v18 = vperm.slane %v423_v14, 3 }
 0x12b   :  { %v387_v32 = vsel %vm380_vm0, %v383_v4, %v386_v25  ;;  %v4492_v4 = vor.u32 %v5929_v24, %v4489_v43  ;;  %v5857_v25 = vld [vmem:[#allocation11 + $0x64] sm:$0xf]  ;;  %v4169_v51 = vld [vmem:[#allocation11 + $0x30] sm:$0xf0]  ;;  %v426_v43 = vperm.slane %v423_v14, 1 }
 0x12c   :  { %v388_v35 = vsel %vm377_vm1, nan, %v387_v32  ;;  %v4204_v32 = vor.u32 %v5857_v25, %v4201_v26  ;;  %v4553_v54 = vld [vmem:[#allocation11 + $0x330] sm:$0xf0]  ;;  %v5881_v2 = vld [vmem:[#allocation11 + $0x124] sm:$0xf]  ;;  %v427_v25 = vperm.slane %v423_v14, 2 }
 0x12d   :  { %v389_v38 = vadd.f32 %v388_v35, %v6733_v16  ;;  %v4424_v16 = vor.u32 %v5915_v28, %v4423_v41  ;;  %1463 = vmatpush.bf16.msrb.mxu2 %v4280_v56  ;;  %v4345_v35 = vld [vmem:[#allocation11 + $0x190] sm:$0xf0]  ;;  %v5949_v41 = vld [vmem:[#allocation11 + $0x344] sm:$0xf]  ;;  %v4188_v28 = vor.u32 %v5853_v39, %v4185_v40  ;;  %v4271_v39 = vld [vmem:[#allocation11 + $0xe8] sm:$0xf] }
 0x12e   :  { %v4348_v11 = vor.u32 %v5893_v34, %v4345_v35  ;;  %v4572_v19 = vor.u32 %v5949_v41, %v4569_v31  ;;  %v5885_v56 = vld [vmem:[#allocation11 + $0x144] sm:$0xf]  ;;  %v4313_v57 = vld [vmem:[#allocation11 + $0x150] sm:$0xf0]  ;;  %v5876_v40 = vld [vmem:[#allocation11 + $0xf4] sm:$0xf0] }
 0x12f   :  { %v390_v44 = vpack.c.bf16 %v389_v38, %v389_v38  ;;  %1475 = vmatpush.bf16.msrb.mxu3 %v4424_v16  ;;  %v4476_v38 = vor.u32 %v5925_v36, %v4473_v37  ;;  %v5945_v16 = vld [vmem:[#allocation11 + $0x324] sm:$0xf]  ;;  %v4441_v58 = vld [vmem:[#allocation11 + $0x250] sm:$0xf0]  ;;  %v5972_v31 = vld [vmem:[#allocation11 + $0x3f4] sm:$0xf0] }
 0x130   :  { %v4556_v55 = vor.u32 %v5945_v16, %v4553_v54  ;;  %v4444_v59 = vor.u32 %v5917_v23, %v4441_v58  ;;  %v4153_v61 = vld [vmem:[#allocation11 + $0x10] sm:$0xf0]  ;;  %v5913_v5 = vld [vmem:[#allocation11 + $0x224] sm:$0xf]  ;;  %v4639_v54 = vld [vmem:[#allocation11 + $0x3c8] sm:$0xf] }
 0x131   :  { %601 = vmatmul.bf16.vlgmr.msra.gmra.mxu1 %v390_v44  ;;  %614 = vmatmul.bf16.vlgmr.msra.gmra.mxu2 %v390_v44  ;;  %v4537_v0 = vld [vmem:[#allocation11 + $0x310] sm:$0xf0]  ;;  %v5877_v9 = vld [vmem:[#allocation11 + $0x104] sm:$0xf]  ;;  %v4399_v23 = vld [vmem:[#allocation11 + $0x1e8] sm:$0xf] }
 0x132   :  { %627 = vmatmul.bf16.vlgmr.msra.gmra.mxu3 %v390_v44  ;;  %640 = vmatmul.bf16.vlgmr.msrb.gmra.mxu0 %v390_v44  ;;  %v5889_v44 = vld [vmem:[#allocation11 + $0x164] sm:$0xf]  ;;  %v4297_v3 = vld [vmem:[#allocation11 + $0x130] sm:$0xf0] }
 0x133   :  { %1495 = vmatpush.bf16.msra.mxu1 %v4268_v50  ;;  %1534 = vmatpush.bf16.msrb.mxu0 %v4652_v45  ;;  %v4332_v48 = vor.u32 %v5889_v44, %v4329_v46  ;;  %v4460_v50 = vor.u32 %v5921_v47, %v4457_v49  ;;  %v5849_v45 = vld [vmem:[#allocation11 + $0x24] sm:$0xf]  ;;  %v4409_v13 = vld [vmem:[#allocation11 + $0x210] sm:$0xf0] }
 0x134   :  { %1508 = vmatpush.bf16.msra.mxu2 %v4396_v30  ;;  %1476 = vmatpush.bf16.msrb.mxu3 %v4408_v1  ;;  %v4172_v53 = vor.u32 %v5849_v45, %v4169_v51  ;;  %v4316_v30 = vor.u32 %v5885_v56, %v4313_v57  ;;  %v4255_v45 = vld [vmem:[#allocation11 + $0xc8] sm:$0xf]  ;;  %v5872_v51 = vld [vmem:[#allocation11 + $0xd4] sm:$0xf0] }
 0x137   :  { %1496 = vmatpush.bf16.msra.mxu1 %v4252_v62  ;;  %1535 = vmatpush.bf16.msrb.mxu0 %v4636_v63  ;;  %v5941_v62 = vld [vmem:[#allocation11 + $0x304] sm:$0xf]  ;;  %v4156_v63 = vor.u32 %v5845_v60, %v4153_v61  ;;  %v4527_v60 = vld [vmem:[#allocation11 + $0x2e8] sm:$0xf]  ;;  %v5940_v61 = vld [vmem:[#allocation11 + $0x2f4] sm:$0xf0] }
 0x138   :  { %1521 = vmatpush.bf16.msra.mxu3 %v4524_v6  ;;  %1509 = vmatpush.bf16.msra.mxu2 %v4380_v7  ;;  %v4540_v1 = vor.u32 %v5941_v62, %v4537_v0  ;;  %v4425_v6 = vld [vmem:[#allocation11 + $0x230] sm:$0xf0]  ;;  %v4300_v7 = vor.u32 %v5881_v2, %v4297_v3  ;;  %v4239_v0 = vld [vmem:[#allocation11 + $0xa8] sm:$0xf] }
 0x139   :  { %v4428_v52 = vor.u32 %v5913_v5, %v4425_v6  ;;  %v4623_v5 = vld [vmem:[#allocation11 + $0x3a8] sm:$0xf]  ;;  %v5964_v6 = vld [vmem:[#allocation11 + $0x3b4] sm:$0xf0] }
 0x13b   :  { %1497 = vmatpush.bf16.msra.mxu1 %v4236_v8  ;;  %1536 = vmatpush.bf16.msrb.mxu0 %v4620_v10  ;;  %v4281_v8 = vld [vmem:[#allocation11 + $0x110] sm:$0xf0] }
 0x13c   :  { %1522 = vmatpush.bf16.msra.mxu3 %v4508_v12  ;;  %1510 = vmatpush.bf16.msra.mxu2 %v4364_v42  ;;  %v4284_v10 = vor.u32 %v5877_v9, %v4281_v8  ;;  %v5909_v12 = vld [vmem:[#allocation11 + $0x204] sm:$0xf]  ;;  %v4383_v9 = vld [vmem:[#allocation11 + $0x1c8] sm:$0xf]  ;;  %v5904_v8 = vld [vmem:[#allocation11 + $0x1d4] sm:$0xf0] }
 0x13d   :  { %v4412_v15 = vor.u32 %v5909_v12, %v4409_v13  ;;  %v4511_v13 = vld [vmem:[#allocation11 + $0x2c8] sm:$0xf] }
 0x13f   :  { %1498 = vmatpush.bf16.msra.mxu1 %v4220_v17  ;;  %1537 = vmatpush.bf16.msrb.mxu0 %v4604_v20  ;;  %v425_v17 = vperm.slane %v423_v14, 0  ;;  %v5936_v14 = vld [vmem:[#allocation11 + $0x2d4] sm:$0xf0] }
 0x140   :  { %1523 = vmatpush.bf16.msra.mxu3 %v4492_v4  ;;  %1511 = vmatpush.bf16.msra.mxu2 %v4348_v11 }
 0x143   :  { %1499 = vmatpush.bf16.msra.mxu1 %v4204_v32  ;;  %1538 = vmatpush.bf16.msrb.mxu0 %v4588_v29 }
 0x144   :  { %1524 = vmatpush.bf16.msra.mxu3 %v4476_v38  ;;  %1512 = vmatpush.bf16.msra.mxu2 %v4332_v48  ;;  %v4272_v48 = vor.u32 %v5876_v40, %v4271_v39  ;;  %v4479_v39 = vld [vmem:[#allocation11 + $0x288] sm:$0xf]  ;;  %v5928_v40 = vld [vmem:[#allocation11 + $0x294] sm:$0xf0] }
 0x147   :  { %1500 = vmatpush.bf16.msra.mxu1 %v4188_v28  ;;  %1539 = vmatpush.bf16.msrb.mxu0 %v4572_v19  ;;  %v4655_v28 = vld [vmem:[#allocation11 + $0x3e8] sm:$0xf] }
 0x148   :  { %1525 = vmatpush.bf16.msra.mxu3 %v4460_v50  ;;  %1513 = vmatpush.bf16.msra.mxu2 %v4316_v30  ;;  %v4656_v50 = vor.u32 %v5972_v31, %v4655_v28  ;;  %v5908_v30 = vld [vmem:[#allocation11 + $0x1f4] sm:$0xf0]  ;;  %v4191_v28 = vld [vmem:[#allocation11 + $0x48] sm:$0xf] }
 0x149   :  { %v4400_v3 = vor.u32 %v5908_v30, %v4399_v23  ;;  %v5856_v31 = vld [vmem:[#allocation11 + $0x54] sm:$0xf0]  ;;  %v4559_v23 = vld [vmem:[#allocation11 + $0x328] sm:$0xf] }
 0x14a   :  { %v5948_v30 = vld [vmem:[#allocation11 + $0x334] sm:$0xf0] }
 0x14b   :  { %1501 = vmatpush.bf16.msra.mxu1 %v4172_v53  ;;  %1540 = vmatpush.bf16.msrb.mxu0 %v4556_v55  ;;  %v5968_v55 = vld [vmem:[#allocation11 + $0x3d4] sm:$0xf0] }
 0x14c   :  { %1526 = vmatpush.bf16.msra.mxu3 %v4444_v59  ;;  %1514 = vmatpush.bf16.msra.mxu2 %v4300_v7  ;;  %v4256_v59 = vor.u32 %v5872_v51, %v4255_v45  ;;  %v4192_v45 = vor.u32 %v5856_v31, %v4191_v28  ;;  %v4463_v51 = vld [vmem:[#allocation11 + $0x268] sm:$0xf]  ;;  %v4241_v28 = vld [vmem:[#allocation11 + $0xb8] sm:$0xf0] }
 0x14f   :  { %1502 = vmatpush.bf16.msra.mxu1 %v4156_v63  ;;  %1541 = vmatpush.bf16.msrb.mxu0 %v4540_v1  ;;  %v4640_v63 = vor.u32 %v5968_v55, %v4639_v54  ;;  %v5868_v1 = vld [vmem:[#allocation11 + $0xb4] sm:$0xf0]  ;;  %v4175_v55 = vld [vmem:[#allocation11 + $0x28] sm:$0xf] }
 0x150   :  { %1527 = vmatpush.bf16.msra.mxu3 %v4428_v52  ;;  %1515 = vmatpush.bf16.msra.mxu2 %v4284_v10  ;;  %v4528_v52 = vor.u32 %v5940_v61, %v4527_v60  ;;  %v4240_v12 = vor.u32 %v5868_v1, %v4239_v0  ;;  %v5888_v60 = vld [vmem:[#allocation11 + $0x154] sm:$0xf0]  ;;  %v4159_v0 = vld [vmem:[#allocation11 + $0x8] sm:$0xf]  ;;  %v4560_v1 = vor.u32 %v5948_v30, %v4559_v23  ;;  %v5958_v23 = vld [vmem:[#allocation11 + $0x38c] sm:$0xf] }
 0x151   :  { %v4609_v30 = vld [vmem:[#allocation11 + $0x398] sm:$0xf0] }
 0x154   :  { %1528 = vmatpush.bf16.msra.mxu3 %v4412_v15  ;;  %v4624_v15 = vor.u32 %v5964_v6, %v4623_v5  ;;  %v5944_v5 = vld [vmem:[#allocation11 + $0x314] sm:$0xf0] }
 0x1ae   :  { %v602_v20 = vpop.f32.mrf.mxu1 }
 0x1af   :  { %v603_v21 = vadd.f32 %v602_v20, %v425_v17  ;;  %v641_v22 = vpop.f32.mrf.mxu0  ;;  %v4223_v17 = vld [vmem:[#allocation11 + $0x88] sm:$0xf]  ;;  %v4384_v20 = vor.u32 %v5904_v8, %v4383_v9  ;;  %v4273_v9 = vld [vmem:[#allocation11 + $0xf8] sm:$0xf0]  ;;  %v5970_v8 = vld [vmem:[#allocation11 + $0x3ec] sm:$0xf] }
 0x1b0   :  { %v642_v24 = vadd.f32 %v641_v22, %v428_v18  ;;  %v5864_v18 = vld [vmem:[#allocation11 + $0x94] sm:$0xf0] }
 0x1b1   :  { %v645_v42 = vmul.f32 0.5, %v603_v21  ;;  %v4607_v21 = vld [vmem:[#allocation11 + $0x388] sm:$0xf]  ;;  %v5960_v22 = vld [vmem:[#allocation11 + $0x394] sm:$0xf0] }
 0x1b2   :  { %v648_v4 = vmul.f32 0.5, %v642_v24  ;;  %v4512_v24 = vor.u32 %v5936_v14, %v4511_v13  ;;  %v4657_v13 = vld [vmem:[#allocation11 + $0x3f8] sm:$0xf0]  ;;  %v4303_v14 = vld [vmem:[#allocation11 + $0x128] sm:$0xf] }
 0x1b3   :  { %6287 = vtanh.f32 %v645_v42 }
 0x1b4   :  { %6289 = vtanh.f32 %v648_v4  ;;  %v615_v26 = vpop.f32.mrf.mxu2 }
 0x1b5   :  { %v616_v27 = vadd.f32 %v615_v26, %v426_v43  ;;  %v628_v32 = vpop.f32.mrf.mxu3  ;;  %v5900_v43 = vld [vmem:[#allocation11 + $0x1b4] sm:$0xf0] }
 0x1b6   :  { %v629_v33 = vadd.f32 %v628_v32, %v427_v25  ;;  %v604_v29 = vpop.f32.mrf.mxu1  ;;  %v4495_v25 = vld [vmem:[#allocation11 + $0x2a8] sm:$0xf]  ;;  %v5932_v26 = vld [vmem:[#allocation11 + $0x2b4] sm:$0xf0] }
 0x1b7   :  { %v646_v34 = vmul.f32 0.5, %v616_v27  ;;  %v643_v35 = vpop.f32.mrf.mxu0  ;;  %v4608_v27 = vor.u32 %v5960_v22, %v4607_v21  ;;  %v4207_v32 = vld [vmem:[#allocation11 + $0x68] sm:$0xf] }
 0x1b8   :  { %v647_v36 = vmul.f32 0.5, %v629_v33  ;;  %v5860_v33 = vld [vmem:[#allocation11 + $0x74] sm:$0xf0] }
 0x1b9   :  { %v6288_v11 = vpop.eup %6287  ;;  %6291 = vtanh.f32 %v646_v34  ;;  %v5956_v35 = vld [vmem:[#allocation11 + $0x374] sm:$0xf0] }
 0x1ba   :  { %v6290_v37 = vpop.eup %6289  ;;  %v653_v38 = vadd.f32 1.0, %v6288_v11  ;;  %6293 = vtanh.f32 %v647_v36  ;;  %v4351_v11 = vld [vmem:[#allocation11 + $0x188] sm:$0xf] }
 0x1bb   :  { %v656_v41 = vadd.f32 1.0, %v6290_v37  ;;  %v5896_v37 = vld [vmem:[#allocation11 + $0x194] sm:$0xf0] }
 0x1bc   :  { %v657_v19 = vmul.f32 %v653_v38, %v645_v42  ;;  %v617_v44 = vpop.f32.mrf.mxu2  ;;  %v4367_v42 = vld [vmem:[#allocation11 + $0x1a8] sm:$0xf]  ;;  %v4208_v38 = vor.u32 %v5860_v33, %v4207_v32  ;;  %v5880_v33 = vld [vmem:[#allocation11 + $0x114] sm:$0xf0] }
 0x1bd   :  { %v660_v46 = vmul.f32 %v656_v41, %v648_v4  ;;  %v630_v47 = vpop.f32.mrf.mxu3  ;;  %v4224_v4 = vor.u32 %v5864_v18, %v4223_v17  ;;  %v4368_v29 = vor.u32 %v5900_v43, %v4367_v42  ;;  %v4575_v44 = vld [vmem:[#allocation11 + $0x348] sm:$0xf]  ;;  %v4660_v42 = vor.u32 %v5970_v8, %v4657_v13  ;;  %v4353_v8 = vld [vmem:[#allocation11 + $0x198] sm:$0xf0]  ;;  %v5926_v13 = vld [vmem:[#allocation11 + $0x28c] sm:$0xf] }
 0x1be   :  { %v6829_v49 = vpack.c.bf16 %v657_v19, %v657_v19  ;;  %v4352_v19 = vor.u32 %v5896_v37, %v4351_v11  ;;  %v4480_v47 = vor.u32 %v5928_v40, %v4479_v39  ;;  %v4431_v18 = vld [vmem:[#allocation11 + $0x228] sm:$0xf]  ;;  %v5938_v37 = vld [vmem:[#allocation11 + $0x2ec] sm:$0xf] }
 0x1bf   :  { %v6292_v16 = vpop.eup %6291  ;;  %v6831_v53 = vpack.c.bf16 %v660_v46, %v660_v46  ;;  %v5952_v46 = vld [vmem:[#allocation11 + $0x354] sm:$0xf0]  ;;  %v4287_v32 = vld [vmem:[#allocation11 + $0x108] sm:$0xf] }
 0x1c0   :  { %v6294_v56 = vpop.eup %6293  ;;  %v654_v57 = vadd.f32 1.0, %v6292_v16  ;;  %1451 = vmatmul.bf16.vlgmr.msrb.gmra.mxu1 %v6829_v49  ;;  %v5924_v16 = vld [vmem:[#allocation11 + $0x274] sm:$0xf0]  ;;  %v4576_v54 = vor.u32 %v5952_v46, %v4575_v44  ;;  %v4288_v40 = vor.u32 %v5880_v33, %v4287_v32  ;;  %v5962_v44 = vld [vmem:[#allocation11 + $0x3ac] sm:$0xf] }
 0x1c1   :  { %v655_v58 = vadd.f32 1.0, %v6294_v56  ;;  %1490 = vmatmul.bf16.vlgmr.msra.gmra.mxu0 %v6831_v53  ;;  %1547 = vmatpush.bf16.msrb.mxu1 %v4272_v48  ;;  %v4335_v48 = vld [vmem:[#allocation11 + $0x168] sm:$0xf]  ;;  %v5852_v56 = vld [vmem:[#allocation11 + $0x34] sm:$0xf0] }
 0x1c2   :  { %v658_v62 = vmul.f32 %v654_v57, %v646_v34  ;;  %1586 = vmatpush.bf16.msra.mxu0 %v4656_v50  ;;  %v4591_v34 = vld [vmem:[#allocation11 + $0x368] sm:$0xf]  ;;  %v5892_v50 = vld [vmem:[#allocation11 + $0x174] sm:$0xf0]  ;;  %v4176_v61 = vor.u32 %v5852_v56, %v4175_v55  ;;  %v4625_v46 = vld [vmem:[#allocation11 + $0x3b8] sm:$0xf0] }
 0x1c3   :  { %v659_v2 = vmul.f32 %v655_v58, %v647_v36  ;;  %v4496_v36 = vor.u32 %v5932_v26, %v4495_v25  ;;  %v4592_v41 = vor.u32 %v5956_v35, %v4591_v34  ;;  %v4336_v57 = vor.u32 %v5892_v50, %v4335_v48  ;;  %v5966_v25 = vld [vmem:[#allocation11 + $0x3cc] sm:$0xf]  ;;  %v4641_v26 = vld [vmem:[#allocation11 + $0x3d8] sm:$0xf0]  ;;  %v5912_v34 = vld [vmem:[#allocation11 + $0x214] sm:$0xf0] }
 0x1c4   :  { %v6835_v7 = vpack.c.bf16 %v658_v62, %v658_v62  ;;  %v4464_v58 = vor.u32 %v5924_v16, %v4463_v51  ;;  %v4447_v62 = vld [vmem:[#allocation11 + $0x248] sm:$0xf]  ;;  %v5906_v35 = vld [vmem:[#allocation11 + $0x1ec] sm:$0xf]  ;;  %v4644_v39 = vor.u32 %v5966_v25, %v4641_v26  ;;  %v4385_v50 = vld [vmem:[#allocation11 + $0x1d8] sm:$0xf0] }
 0x1c5   :  { %v6837_v10 = vpack.c.bf16 %v659_v2, %v659_v2  ;;  %1548 = vmatpush.bf16.msrb.mxu1 %v4256_v59  ;;  %v4319_v59 = vld [vmem:[#allocation11 + $0x148] sm:$0xf]  ;;  %v5848_v2 = vld [vmem:[#allocation11 + $0x14] sm:$0xf0]  ;;  %v5902_v48 = vld [vmem:[#allocation11 + $0x1cc] sm:$0xf] }
 0x1c6   :  { %1587 = vmatpush.bf16.msra.mxu0 %v4640_v63  ;;  %1464 = vmatmul.bf16.vlgmr.msrb.gmra.mxu2 %v6835_v7  ;;  %v5920_v63 = vld [vmem:[#allocation11 + $0x254] sm:$0xf0]  ;;  %v4320_v6 = vor.u32 %v5888_v60, %v4319_v59  ;;  %v4160_v17 = vor.u32 %v5848_v2, %v4159_v0  ;;  %v5934_v51 = vld [vmem:[#allocation11 + $0x2cc] sm:$0xf]  ;;  %v4513_v16 = vld [vmem:[#allocation11 + $0x2d8] sm:$0xf0]  ;;  %v4612_v0 = vor.u32 %v5958_v23, %v4609_v30 }
 0x1c7   :  { %1477 = vmatmul.bf16.vlgmr.msrb.gmra.mxu3 %v6837_v10  ;;  %1560 = vmatpush.bf16.msrb.mxu2 %v4400_v3  ;;  %v4543_v3 = vld [vmem:[#allocation11 + $0x308] sm:$0xf]  ;;  %v5862_v55 = vld [vmem:[#allocation11 + $0x8c] sm:$0xf]  ;;  %v4225_v56 = vld [vmem:[#allocation11 + $0x98] sm:$0xf0] }
 0x1c8   :  { %1573 = vmatpush.bf16.msrb.mxu3 %v4528_v52  ;;  %v5874_v52 = vld [vmem:[#allocation11 + $0xec] sm:$0xf]  ;;  %v4544_v21 = vor.u32 %v5944_v5, %v4543_v3  ;;  %v4369_v60 = vld [vmem:[#allocation11 + $0x1b8] sm:$0xf0]  ;;  %v4759_v30 = vld [vmem:[#allocation13 + $0xc0] sm:$0xf] }
 0x1c9   :  { %1549 = vmatpush.bf16.msrb.mxu1 %v4240_v12  ;;  %v4448_v12 = vor.u32 %v5920_v63, %v4447_v62  ;;  %v4276_v22 = vor.u32 %v5874_v52, %v4273_v9  ;;  %v5898_v59 = vld [vmem:[#allocation11 + $0x1ac] sm:$0xf]  ;;  %v4497_v63 = vld [vmem:[#allocation11 + $0x2b8] sm:$0xf0] }
 0x1ca   :  { %1588 = vmatpush.bf16.msra.mxu0 %v4624_v15  ;;  %v5884_v15 = vld [vmem:[#allocation11 + $0x134] sm:$0xf0]  ;;  %v5930_v62 = vld [vmem:[#allocation11 + $0x2ac] sm:$0xf]  ;;  %v4209_v2 = vld [vmem:[#allocation11 + $0x78] sm:$0xf0]  ;;  %v4372_v3 = vor.u32 %v5898_v59, %v4369_v60 }
 0x1cb   :  { %1561 = vmatpush.bf16.msrb.mxu2 %v4384_v20  ;;  %v5916_v20 = vld [vmem:[#allocation11 + $0x234] sm:$0xf0]  ;;  %v4304_v43 = vor.u32 %v5884_v15, %v4303_v14  ;;  %v5954_v5 = vld [vmem:[#allocation11 + $0x36c] sm:$0xf]  ;;  %v4500_v52 = vor.u32 %v5930_v62, %v4497_v63  ;;  %v4481_v14 = vld [vmem:[#allocation11 + $0x298] sm:$0xf0] }
 0x1cc   :  { %1574 = vmatpush.bf16.msrb.mxu3 %v4512_v24  ;;  %v5870_v24 = vld [vmem:[#allocation11 + $0xcc] sm:$0xf]  ;;  %v4465_v26 = vld [vmem:[#allocation11 + $0x278] sm:$0xf0] }
 0x1cd   :  { %1550 = vmatpush.bf16.msrb.mxu1 %v4224_v4  ;;  %v4257_v4 = vld [vmem:[#allocation11 + $0xd8] sm:$0xf0]  ;;  %v5894_v9 = vld [vmem:[#allocation11 + $0x18c] sm:$0xf] }
 0x1ce   :  { %1589 = vmatpush.bf16.msra.mxu0 %v4608_v27  ;;  %v4432_v27 = vor.u32 %v5916_v20, %v4431_v18  ;;  %v4260_v11 = vor.u32 %v5870_v24, %v4257_v4  ;;  %v4193_v18 = vld [vmem:[#allocation11 + $0x58] sm:$0xf0]  ;;  %v4356_v20 = vor.u32 %v5894_v9, %v4353_v8  ;;  %v4484_v24 = vor.u32 %v5926_v13, %v4481_v14  ;;  %v5922_v25 = vld [vmem:[#allocation11 + $0x26c] sm:$0xf]  ;;  %v4887_v8 = vld [vmem:[#allocation13 + $0x1c0] sm:$0xf] }
 0x1cf   :  { %1562 = vmatpush.bf16.msrb.mxu2 %v4368_v29  ;;  %v4415_v29 = vld [vmem:[#allocation11 + $0x208] sm:$0xf]  ;;  %v5850_v32 = vld [vmem:[#allocation11 + $0x2c] sm:$0xf]  ;;  %v4177_v33 = vld [vmem:[#allocation11 + $0x38] sm:$0xf0] }
 0x1d0   :  { %1575 = vmatpush.bf16.msrb.mxu3 %v4496_v36  ;;  %1503 = vmatmul.bf16.vlgmr.msra.gmra.mxu1 %v6829_v49  ;;  %v4401_v36 = vld [vmem:[#allocation11 + $0x1f8] sm:$0xf0]  ;;  %v4416_v31 = vor.u32 %v5912_v34, %v4415_v29  ;;  %v5946_v34 = vld [vmem:[#allocation11 + $0x32c] sm:$0xf]  ;;  %v4727_v14 = vld [vmem:[#allocation13 + $0x80] sm:$0xf] }
 0x1d1   :  { %1542 = vmatmul.bf16.vlgmr.msrb.gmra.mxu0 %v6831_v53  ;;  %1551 = vmatpush.bf16.msrb.mxu1 %v4208_v38  ;;  %v4529_v38 = vld [vmem:[#allocation11 + $0x2f8] sm:$0xf0]  ;;  %v5878_v60 = vld [vmem:[#allocation11 + $0x10c] sm:$0xf] }
 0x1d2   :  { %1590 = vmatpush.bf16.msra.mxu0 %v4592_v41  ;;  %v5866_v41 = vld [vmem:[#allocation11 + $0xac] sm:$0xf]  ;;  %v4417_v63 = vld [vmem:[#allocation11 + $0x218] sm:$0xf0] }
 0x1d3   :  { %1563 = vmatpush.bf16.msrb.mxu2 %v4352_v19  ;;  %v4404_v19 = vor.u32 %v5906_v35, %v4401_v36  ;;  %v4561_v35 = vld [vmem:[#allocation11 + $0x338] sm:$0xf0]  ;;  %v4468_v36 = vor.u32 %v5922_v25, %v4465_v26  ;;  %v5910_v62 = vld [vmem:[#allocation11 + $0x20c] sm:$0xf]  ;;  %v6027_v26 = vld [vmem:[#allocation13 + $0x1ac] sm:$0xf0] }
 0x1d4   :  { %1576 = vmatpush.bf16.msrb.mxu3 %v4480_v47  ;;  %v4532_v47 = vor.u32 %v5938_v37, %v4529_v38  ;;  %v4321_v37 = vld [vmem:[#allocation11 + $0x158] sm:$0xf0]  ;;  %v4180_v38 = vor.u32 %v5850_v32, %v4177_v33  ;;  %v4855_v33 = vld [vmem:[#allocation13 + $0x180] sm:$0xf] }
 0x1d5   :  { %1552 = vmatpush.bf16.msrb.mxu1 %v4192_v45  ;;  %v4244_v45 = vor.u32 %v5866_v41, %v4241_v28  ;;  %v4564_v41 = vor.u32 %v5946_v34, %v4561_v35  ;;  %v5846_v28 = vld [vmem:[#allocation11 + $0xc] sm:$0xf]  ;;  %v4777_v35 = vld [vmem:[#allocation13 + $0xf0] sm:$0xf0] }
 0x1d6   :  { %1591 = vmatpush.bf16.msra.mxu0 %v4576_v54  ;;  %1516 = vmatmul.bf16.vlgmr.msra.gmra.mxu2 %v6835_v7  ;;  %v4628_v54 = vor.u32 %v5962_v44, %v4625_v46  ;;  %v4545_v46 = vld [vmem:[#allocation11 + $0x318] sm:$0xf0] }
 0x1d7   :  { %1529 = vmatmul.bf16.vlgmr.msra.gmra.mxu3 %v6837_v10  ;;  %1564 = vmatpush.bf16.msrb.mxu2 %v4336_v57  ;;  %v4388_v57 = vor.u32 %v5902_v48, %v4385_v50  ;;  %v6003_v48 = vld [vmem:[#allocation13 + $0xec] sm:$0xf0] }
 0x1d8   :  { %1577 = vmatpush.bf16.msrb.mxu3 %v4464_v58  ;;  %v4516_v58 = vor.u32 %v5934_v51, %v4513_v16  ;;  %v4305_v51 = vld [vmem:[#allocation11 + $0x138] sm:$0xf0] }
 0x1d9   :  { %1553 = vmatpush.bf16.msrb.mxu1 %v4176_v61  ;;  %v4228_v61 = vor.u32 %v5862_v55, %v4225_v56  ;;  %v4433_v55 = vld [vmem:[#allocation11 + $0x238] sm:$0xf0] }
 0x1da   :  { %1592 = vmatpush.bf16.msra.mxu0 %v4560_v1  ;;  %v5858_v1 = vld [vmem:[#allocation11 + $0x6c] sm:$0xf] }
 0x1db   :  { %1565 = vmatpush.bf16.msrb.mxu2 %v4320_v6  ;;  %v4593_v6 = vld [vmem:[#allocation11 + $0x378] sm:$0xf0] }
 0x1dc   :  { %1578 = vmatpush.bf16.msrb.mxu3 %v4448_v12  ;;  %v4212_v12 = vor.u32 %v5858_v1, %v4209_v2  ;;  %v4596_v15 = vor.u32 %v5954_v5, %v4593_v6  ;;  %v6035_v1 = vld [vmem:[#allocation13 + $0x1ec] sm:$0xf0]  ;;  %v4743_v5 = vld [vmem:[#allocation13 + $0xa0] sm:$0xf] }
 0x1dd   :  { %1554 = vmatpush.bf16.msrb.mxu1 %v4160_v17  ;;  %v5854_v17 = vld [vmem:[#allocation11 + $0x4c] sm:$0xf]  ;;  %v5995_v6 = vld [vmem:[#allocation13 + $0xac] sm:$0xf0] }
 0x1de   :  { %1593 = vmatpush.bf16.msra.mxu0 %v4544_v21  ;;  %v5950_v21 = vld [vmem:[#allocation11 + $0x34c] sm:$0xf]  ;;  %v4196_v4 = vor.u32 %v5854_v17, %v4193_v18  ;;  %v4744_v13 = vor.u32 %v5995_v6, %v4743_v5  ;;  %v5985_v5 = vld [vmem:[#allocation13 + $0x64] sm:$0xf]  ;;  %v4713_v6 = vld [vmem:[#allocation13 + $0x70] sm:$0xf0] }
 0x1df   :  { %1566 = vmatpush.bf16.msrb.mxu2 %v4304_v43  ;;  %v4337_v43 = vld [vmem:[#allocation11 + $0x178] sm:$0xf0] }
 0x1e0   :  { %1579 = vmatpush.bf16.msrb.mxu3 %v4432_v27  ;;  %1555 = vmatmul.bf16.vlgmr.msrb.gmra.mxu1 %v6829_v49 }
 0x1e1   :  { %1599 = vmatpush.bf16.msra.mxu1 %v4276_v22  ;;  %1594 = vmatmul.bf16.vlgmr.msra.gmra.mxu0 %v6831_v53  ;;  %v4577_v22 = vld [vmem:[#allocation11 + $0x358] sm:$0xf0] }
 0x1e2   :  { %1638 = vmatpush.bf16.msrb.mxu0 %v4660_v42  ;;  %v5890_v42 = vld [vmem:[#allocation11 + $0x16c] sm:$0xf]  ;;  %v4580_v27 = vor.u32 %v5950_v21, %v4577_v22  ;;  %v4695_v21 = vld [vmem:[#allocation13 + $0x40] sm:$0xf]  ;;  %v5983_v22 = vld [vmem:[#allocation13 + $0x4c] sm:$0xf0] }
 0x1e3   :  { %1567 = vmatpush.bf16.msrb.mxu2 %v4288_v40  ;;  %v4340_v29 = vor.u32 %v5890_v42, %v4337_v43  ;;  %v4449_v40 = vld [vmem:[#allocation11 + $0x258] sm:$0xf0]  ;;  %v4679_v42 = vld [vmem:[#allocation13 + $0x20] sm:$0xf]  ;;  %v5979_v43 = vld [vmem:[#allocation13 + $0x2c] sm:$0xf0] }
 0x1e4   :  { %1580 = vmatpush.bf16.msrb.mxu3 %v4416_v31  ;;  %v4161_v31 = vld [vmem:[#allocation11 + $0x18] sm:$0xf0]  ;;  %v4680_v25 = vor.u32 %v5979_v43, %v4679_v42  ;;  %v6047_v42 = vld [vmem:[#allocation13 + $0x24c] sm:$0xf0] }
 0x1e5   :  { %1600 = vmatpush.bf16.msra.mxu1 %v4260_v11  ;;  %v5886_v11 = vld [vmem:[#allocation11 + $0x14c] sm:$0xf]  ;;  %v4164_v16 = vor.u32 %v5846_v28, %v4161_v31  ;;  %v5997_v28 = vld [vmem:[#allocation13 + $0xc4] sm:$0xf]  ;;  %v4761_v31 = vld [vmem:[#allocation13 + $0xd0] sm:$0xf0] }
 0x1e6   :  { %1639 = vmatpush.bf16.msrb.mxu0 %v4644_v39  ;;  %1568 = vmatmul.bf16.vlgmr.msrb.gmra.mxu2 %v6835_v7  ;;  %v5918_v39 = vld [vmem:[#allocation11 + $0x24c] sm:$0xf]  ;;  %v4324_v44 = vor.u32 %v5886_v11, %v4321_v37  ;;  %v4839_v37 = vld [vmem:[#allocation13 + $0x160] sm:$0xf] }
 0x1e7   :  { %1612 = vmatpush.bf16.msra.mxu2 %v4404_v19  ;;  %1581 = vmatmul.bf16.vlgmr.msrb.gmra.mxu3 %v6837_v10  ;;  %v5942_v19 = vld [vmem:[#allocation11 + $0x30c] sm:$0xf]  ;;  %v4452_v50 = vor.u32 %v5918_v39, %v4449_v40  ;;  %v5031_v39 = vld [vmem:[#allocation13 + $0x2e0] sm:$0xf] }
 0x1e8   :  { %1625 = vmatpush.bf16.msra.mxu3 %v4532_v47  ;;  %v4775_v47 = vld [vmem:[#allocation13 + $0xe0] sm:$0xf]  ;;  %v4548_v56 = vor.u32 %v5942_v19, %v4545_v46 }
 0x1e9   :  { %1601 = vmatpush.bf16.msra.mxu1 %v4244_v45  ;;  %v5882_v45 = vld [vmem:[#allocation11 + $0x12c] sm:$0xf]  ;;  %v4823_v46 = vld [vmem:[#allocation13 + $0x140] sm:$0xf] }
 0x1ea   :  { %1640 = vmatpush.bf16.msrb.mxu0 %v4628_v54  ;;  %v5914_v54 = vld [vmem:[#allocation11 + $0x22c] sm:$0xf]  ;;  %v4308_v23 = vor.u32 %v5882_v45, %v4305_v51  ;;  %v6063_v45 = vld [vmem:[#allocation13 + $0x2cc] sm:$0xf0]  ;;  %v5993_v51 = vld [vmem:[#allocation13 + $0xa4] sm:$0xf] }
 0x1eb   :  { %1613 = vmatpush.bf16.msra.mxu2 %v4388_v57  ;;  %v4776_v57 = vor.u32 %v6003_v48, %v4775_v47  ;;  %v4436_v59 = vor.u32 %v5914_v54, %v4433_v55  ;;  %v6015_v47 = vld [vmem:[#allocation13 + $0x14c] sm:$0xf0]  ;;  %v5015_v48 = vld [vmem:[#allocation13 + $0x2c0] sm:$0xf] }
 0x1ec   :  { %1626 = vmatpush.bf16.msra.mxu3 %v4516_v58  ;;  %v5999_v58 = vld [vmem:[#allocation13 + $0xcc] sm:$0xf0]  ;;  %v5016_v54 = vor.u32 %v6063_v45, %v5015_v48  ;;  %v4841_v48 = vld [vmem:[#allocation13 + $0x170] sm:$0xf0] }
 0x1ed   :  { %1602 = vmatpush.bf16.msra.mxu1 %v4228_v61  ;;  %v4289_v61 = vld [vmem:[#allocation11 + $0x118] sm:$0xf0]  ;;  %v4760_v2 = vor.u32 %v5999_v58, %v4759_v30  ;;  %v6059_v58 = vld [vmem:[#allocation13 + $0x2ac] sm:$0xf0] }
 0x1ee   :  { %1641 = vmatpush.bf16.msrb.mxu0 %v4612_v0  ;;  %v4903_v0 = vld [vmem:[#allocation13 + $0x1e0] sm:$0xf] }
 0x1ef   :  { %1614 = vmatpush.bf16.msra.mxu2 %v4372_v3  ;;  %v4292_v3 = vor.u32 %v5878_v60, %v4289_v61  ;;  %v4904_v9 = vor.u32 %v6035_v1, %v4903_v0  ;;  %v4729_v60 = vld [vmem:[#allocation13 + $0x90] sm:$0xf0]  ;;  %v6007_v0 = vld [vmem:[#allocation13 + $0x10c] sm:$0xf0]  ;;  %v4983_v1 = vld [vmem:[#allocation13 + $0x280] sm:$0xf] }
 0x1f0   :  { %1627 = vmatpush.bf16.msra.mxu3 %v4500_v52  ;;  %v4420_v52 = vor.u32 %v5910_v62, %v4417_v63  ;;  %v4791_v63 = vld [vmem:[#allocation13 + $0x100] sm:$0xf] }
 0x1f1   :  { %1603 = vmatpush.bf16.msra.mxu1 %v4212_v12  ;;  %v6031_v12 = vld [vmem:[#allocation13 + $0x1cc] sm:$0xf0] }
 0x1f2   :  { %1642 = vmatpush.bf16.msrb.mxu0 %v4596_v15  ;;  %v5991_v15 = vld [vmem:[#allocation13 + $0x8c] sm:$0xf0]  ;;  %v4888_v17 = vor.u32 %v6031_v12, %v4887_v8  ;;  %v6033_v8 = vld [vmem:[#allocation13 + $0x1e4] sm:$0xf]  ;;  %v4905_v12 = vld [vmem:[#allocation13 + $0x1f0] sm:$0xf0] }
 0x1f3   :  { %1615 = vmatpush.bf16.msra.mxu2 %v4356_v20  ;;  %v4728_v18 = vor.u32 %v5991_v15, %v4727_v14  ;;  %v5987_v20 = vld [vmem:[#allocation13 + $0x6c] sm:$0xf0]  ;;  %v4967_v14 = vld [vmem:[#allocation13 + $0x260] sm:$0xf] }
 0x1f4   :  { %1628 = vmatpush.bf16.msra.mxu3 %v4484_v24  ;;  %v4696_v24 = vor.u32 %v5983_v22, %v4695_v21  ;;  %v6051_v15 = vld [vmem:[#allocation13 + $0x26c] sm:$0xf0]  ;;  %v4889_v21 = vld [vmem:[#allocation13 + $0x1d0] sm:$0xf0] }
 0x1f5   :  { %1604 = vmatpush.bf16.msra.mxu1 %v4196_v4  ;;  %v4871_v4 = vld [vmem:[#allocation13 + $0x1a0] sm:$0xf] }
 0x1f6   :  { %1643 = vmatpush.bf16.msrb.mxu0 %v4580_v27  ;;  %v5975_v27 = vld [vmem:[#allocation13 + $0xc] sm:$0xf0]  ;;  %v4872_v32 = vor.u32 %v6027_v26, %v4871_v4  ;;  %v5977_v4 = vld [vmem:[#allocation13 + $0x24] sm:$0xf] }
 0x1f7   :  { %1616 = vmatpush.bf16.msra.mxu2 %v4340_v29  ;;  %v6001_v29 = vld [vmem:[#allocation13 + $0xe4] sm:$0xf] }
 0x1f8   :  { %1629 = vmatpush.bf16.msra.mxu3 %v4468_v36  ;;  %v4780_v11 = vor.u32 %v6001_v29, %v4777_v35  ;;  %v6025_v26 = vld [vmem:[#allocation13 + $0x1a4] sm:$0xf]  ;;  %v4935_v29 = vld [vmem:[#allocation13 + $0x220] sm:$0xf] }
 0x1f9   :  { %1605 = vmatpush.bf16.msra.mxu1 %v4180_v38  ;;  %v6019_v38 = vld [vmem:[#allocation13 + $0x16c] sm:$0xf0] }
 0x1fa   :  { %1644 = vmatpush.bf16.msrb.mxu0 %v4564_v41  ;;  %v4840_v40 = vor.u32 %v6019_v38, %v4839_v37  ;;  %v6067_v41 = vld [vmem:[#allocation13 + $0x2ec] sm:$0xf0]  ;;  %v6021_v37 = vld [vmem:[#allocation13 + $0x184] sm:$0xf] }
 0x1fb   :  { %1617 = vmatpush.bf16.msra.mxu2 %v4324_v44  ;;  %v5032_v19 = vor.u32 %v6067_v41, %v5031_v39  ;;  %v4764_v44 = vor.u32 %v5997_v28, %v4761_v31  ;;  %v4857_v39 = vld [vmem:[#allocation13 + $0x190] sm:$0xf0]  ;;  %v4919_v28 = vld [vmem:[#allocation13 + $0x200] sm:$0xf]  ;;  %v6039_v31 = vld [vmem:[#allocation13 + $0x20c] sm:$0xf0] }
 0x1fc   :  { %1630 = vmatpush.bf16.msra.mxu3 %v4452_v50  ;;  %v4824_v50 = vor.u32 %v6015_v47, %v4823_v46  ;;  %v4860_v41 = vor.u32 %v6021_v37, %v4857_v39  ;;  %v6099_v46 = vld [vmem:[#allocation13 + $0x3ec] sm:$0xf0]  ;;  %v6017_v47 = vld [vmem:[#allocation13 + $0x164] sm:$0xf] }
 0x1fd   :  { %1606 = vmatpush.bf16.msra.mxu1 %v4164_v16  ;;  %v4745_v16 = vld [vmem:[#allocation13 + $0xb0] sm:$0xf0] }
 0x1fe   :  { %1645 = vmatpush.bf16.msrb.mxu0 %v4548_v56  ;;  %v4748_v55 = vor.u32 %v5993_v51, %v4745_v16  ;;  %v4807_v56 = vld [vmem:[#allocation13 + $0x120] sm:$0xf]  ;;  %v4844_v51 = vor.u32 %v6017_v47, %v4841_v48  ;;  %v6065_v16 = vld [vmem:[#allocation13 + $0x2e4] sm:$0xf] }
 0x1ff   :  { %1618 = vmatpush.bf16.msra.mxu2 %v4308_v23  ;;  %v4999_v23 = vld [vmem:[#allocation13 + $0x2a0] sm:$0xf] }
 0x200   :  { %1631 = vmatpush.bf16.msra.mxu3 %v4436_v59  ;;  %1607 = vmatmul.bf16.vlgmr.msra.gmra.mxu1 %v6829_v49  ;;  %v4711_v49 = vld [vmem:[#allocation13 + $0x60] sm:$0xf]  ;;  %v5989_v59 = vld [vmem:[#allocation13 + $0x84] sm:$0xf]  ;;  %v5000_v61 = vor.u32 %v6059_v58, %v4999_v23 }
 0x201   :  { %2449 = vmatpush.bf16.msrb.mxu1 %v4776_v57  ;;  %1646 = vmatmul.bf16.vlgmr.msrb.gmra.mxu0 %v6831_v53  ;;  %v4712_v53 = vor.u32 %v5987_v20, %v4711_v49  ;;  %v6011_v57 = vld [vmem:[#allocation13 + $0x12c] sm:$0xf0]  ;;  %v4732_v62 = vor.u32 %v5989_v59, %v4729_v60  ;;  %v4697_v49 = vld [vmem:[#allocation13 + $0x50] sm:$0xf0]  ;;  %v6029_v20 = vld [vmem:[#allocation13 + $0x1c4] sm:$0xf] }
 0x202   :  { %v4808_v30 = vor.u32 %v6011_v57, %v4807_v56  ;;  %v4892_v22 = vor.u32 %v6029_v20, %v4889_v21  ;;  %v5143_v23 = vld [vmem:[#allocation13 + $0x3c0] sm:$0xf]  ;;  %v6013_v59 = vld [vmem:[#allocation13 + $0x144] sm:$0xf]  ;;  %v4825_v60 = vld [vmem:[#allocation13 + $0x150] sm:$0xf0] }
 0x203   :  { %1619 = vmatpush.bf16.msra.mxu2 %v4292_v3  ;;  %v6055_v3 = vld [vmem:[#allocation13 + $0x28c] sm:$0xf0]  ;;  %v5111_v21 = vld [vmem:[#allocation13 + $0x380] sm:$0xf] }
 0x204   :  { %1632 = vmatpush.bf16.msra.mxu3 %v4420_v52  ;;  %v4984_v52 = vor.u32 %v6055_v3, %v4983_v1 }
 0x205   :  { %2450 = vmatpush.bf16.msrb.mxu1 %v4760_v2  ;;  %v4792_v2 = vor.u32 %v6007_v0, %v4791_v63  ;;  %v4828_v63 = vor.u32 %v6013_v59, %v4825_v60  ;;  %v5017_v0 = vld [vmem:[#allocation13 + $0x2d0] sm:$0xf0] }
 0x206   :  { %1620 = vmatmul.bf16.vlgmr.msra.gmra.mxu2 %v6835_v7  ;;  %v4663_v7 = vld [vmem:[#allocation13] sm:$0xf]  ;;  %v4937_v59 = vld [vmem:[#allocation13 + $0x230] sm:$0xf0] }
 0x207   :  { %2462 = vmatpush.bf16.msrb.mxu2 %v4904_v9  ;;  %1633 = vmatmul.bf16.vlgmr.msra.gmra.mxu3 %v6837_v10  ;;  %v6023_v10 = vld [vmem:[#allocation13 + $0x18c] sm:$0xf0]  ;;  %v4664_v34 = vor.u32 %v5975_v27, %v4663_v7  ;;  %v4716_v9 = vor.u32 %v5985_v5, %v4713_v6  ;;  %v4873_v27 = vld [vmem:[#allocation13 + $0x1b0] sm:$0xf0]  ;;  %v5127_v6 = vld [vmem:[#allocation13 + $0x3a0] sm:$0xf] }
 0x208   :  { %v4856_v36 = vor.u32 %v6023_v10, %v4855_v33  ;;  %2475 = vmatpush.bf16.msrb.mxu3 %v5032_v19  ;;  %v4876_v33 = vor.u32 %v6025_v26, %v4873_v27  ;;  %v5159_v19 = vld [vmem:[#allocation13 + $0x3e0] sm:$0xf] }
 0x209   :  { %2451 = vmatpush.bf16.msrb.mxu1 %v4744_v13  ;;  %v4908_v13 = vor.u32 %v6033_v8, %v4905_v12  ;;  %v5160_v45 = vor.u32 %v6099_v46, %v5159_v19  ;;  %v6009_v8 = vld [vmem:[#allocation13 + $0x124] sm:$0xf]  ;;  %v4809_v12 = vld [vmem:[#allocation13 + $0x130] sm:$0xf0] }
 0x20a   :  { %v6045_v19 = vld [vmem:[#allocation13 + $0x244] sm:$0xf] }
 0x20b   :  { %2463 = vmatpush.bf16.msrb.mxu2 %v4888_v17  ;;  %v4968_v17 = vor.u32 %v6051_v15, %v4967_v14  ;;  %2488 = vmatpush.bf16.msra.mxu0 %v5160_v45  ;;  %v4812_v15 = vor.u32 %v6009_v8, %v4809_v12  ;;  %v6037_v8 = vld [vmem:[#allocation13 + $0x204] sm:$0xf]  ;;  %v4921_v12 = vld [vmem:[#allocation13 + $0x210] sm:$0xf0] }
 0x20c   :  { %2476 = vmatpush.bf16.msrb.mxu3 %v5016_v54  ;;  %v5033_v54 = vld [vmem:[#allocation13 + $0x2f0] sm:$0xf0] }
 0x20d   :  { %2452 = vmatpush.bf16.msrb.mxu1 %v4728_v18  ;;  %v5981_v18 = vld [vmem:[#allocation13 + $0x44] sm:$0xf]  ;;  %v5036_v56 = vor.u32 %v6065_v16, %v5033_v54  ;;  %v6004_v16 = vld [vmem:[#allocation13 + $0xf4] sm:$0xf0] }
 0x20f   :  { %2464 = vmatpush.bf16.msrb.mxu2 %v4872_v32 }
 0x210   :  { %2477 = vmatpush.bf16.msrb.mxu3 %v5000_v61  ;;  %v6061_v61 = vld [vmem:[#allocation13 + $0x2c4] sm:$0xf] }
 0x211   :  { %2453 = vmatpush.bf16.msrb.mxu1 %v4712_v53  ;;  %v4700_v53 = vor.u32 %v5981_v18, %v4697_v49 }
 0x213   :  { %2465 = vmatpush.bf16.msrb.mxu2 %v4856_v36  ;;  %v5973_v36 = vld [vmem:[#allocation13 + $0x4] sm:$0xf] }
 0x214   :  { %2478 = vmatpush.bf16.msrb.mxu3 %v4984_v52  ;;  %v6091_v52 = vld [vmem:[#allocation13 + $0x3ac] sm:$0xf0] }
 0x215   :  { %2454 = vmatpush.bf16.msrb.mxu1 %v4696_v24  ;;  %v4951_v24 = vld [vmem:[#allocation13 + $0x240] sm:$0xf] }
 0x216   :  { %v4952_v43 = vor.u32 %v6047_v42, %v4951_v24  ;;  %v6005_v42 = vld [vmem:[#allocation13 + $0x104] sm:$0xf] }
 0x217   :  { %2466 = vmatpush.bf16.msrb.mxu2 %v4840_v40  ;;  %v6858_v40 = vld [vmem:[%s6991_s6] sm:$0xf] }
 0x218   :  { %2479 = vmatpush.bf16.msrb.mxu3 %v4968_v17  ;;  %v5001_v17 = vld [vmem:[#allocation13 + $0x2b0] sm:$0xf0] }
 0x219   :  { %2455 = vmatpush.bf16.msrb.mxu1 %v4680_v25  ;;  %v4681_v25 = vld [vmem:[#allocation13 + $0x30] sm:$0xf0] }
 0x21a   :  { %v4684_v7 = vor.u32 %v5977_v4, %v4681_v25  ;;  %v6053_v4 = vld [vmem:[#allocation13 + $0x284] sm:$0xf] }
 0x21b   :  { %2467 = vmatpush.bf16.msrb.mxu2 %v4824_v50  ;;  %v795_v50 = vperm.slane %v6858_v40, 0 }
 0x21c   :  { %2480 = vmatpush.bf16.msrb.mxu3 %v4952_v43  ;;  %v4793_v43 = vld [vmem:[#allocation13 + $0x110] sm:$0xf0] }
 0x21d   :  { %2456 = vmatpush.bf16.msrb.mxu1 %v4664_v34  ;;  %v6043_v34 = vld [vmem:[#allocation13 + $0x22c] sm:$0xf0]  ;;  %v4796_v26 = vor.u32 %v6005_v42, %v4793_v43  ;;  %v5145_v42 = vld [vmem:[#allocation13 + $0x3d0] sm:$0xf0]  ;;  %v797_v43 = vperm.slane %v6858_v40, 2 }
 0x21e   :  { %v4936_v35 = vor.u32 %v6043_v34, %v4935_v29  ;;  %v5095_v29 = vld [vmem:[#allocation13 + $0x360] sm:$0xf] }
 0x21f   :  { %2468 = vmatpush.bf16.msrb.mxu2 %v4808_v30  ;;  %v6095_v30 = vld [vmem:[#allocation13 + $0x3cc] sm:$0xf0] }
 0x220   :  { %2481 = vmatpush.bf16.msrb.mxu3 %v4936_v35  ;;  %v5144_v58 = vor.u32 %v6095_v30, %v5143_v23  ;;  %v6049_v35 = vld [vmem:[#allocation13 + $0x264] sm:$0xf] }
 0x221   :  { %2501 = vmatpush.bf16.msra.mxu1 %v4780_v11  ;;  %v4665_v11 = vld [vmem:[#allocation13 + $0x10] sm:$0xf0] }
 0x222   :  { %v4668_v38 = vor.u32 %v5973_v36, %v4665_v11  ;;  %2489 = vmatpush.bf16.msra.mxu0 %v5144_v58  ;;  %v4969_v36 = vld [vmem:[#allocation13 + $0x270] sm:$0xf0]  ;;  %v796_v11 = vperm.slane %v6858_v40, 1  ;;  %v6041_v58 = vld [vmem:[#allocation13 + $0x224] sm:$0xf] }
 0x223   :  { %2469 = vmatpush.bf16.msrb.mxu2 %v4792_v2  ;;  %v5020_v2 = vor.u32 %v6061_v61, %v5017_v0  ;;  %v4972_v37 = vor.u32 %v6049_v35, %v4969_v36  ;;  %v4719_v36 = vld [vmem:[#allocation13 + $0x68] sm:$0xf] }
 0x225   :  { %2502 = vmatpush.bf16.msra.mxu1 %v4764_v44  ;;  %v4920_v44 = vor.u32 %v6039_v31, %v4919_v28  ;;  %v6079_v28 = vld [vmem:[#allocation13 + $0x34c] sm:$0xf0] }
 0x227   :  { %2514 = vmatpush.bf16.msra.mxu2 %v4908_v13  ;;  %2482 = vmatpush.bf16.msrb.mxu3 %v4920_v44  ;;  %v6057_v13 = vld [vmem:[#allocation13 + $0x2a4] sm:$0xf]  ;;  %v4953_v44 = vld [vmem:[#allocation13 + $0x250] sm:$0xf0] }
 0x228   :  { %v5004_v49 = vor.u32 %v6057_v13, %v5001_v17  ;;  %v4956_v48 = vor.u32 %v6045_v19, %v4953_v44  ;;  %v6097_v13 = vld [vmem:[#allocation13 + $0x3e4] sm:$0xf]  ;;  %v4924_v17 = vor.u32 %v6037_v8, %v4921_v12 }
 0x229   :  { %2503 = vmatpush.bf16.msra.mxu1 %v4748_v55 }
 0x22b   :  { %2515 = vmatpush.bf16.msra.mxu2 %v4892_v22  ;;  %2527 = vmatpush.bf16.msra.mxu3 %v5036_v56  ;;  %v6087_v22 = vld [vmem:[#allocation13 + $0x38c] sm:$0xf0]  ;;  %v5063_v56 = vld [vmem:[#allocation13 + $0x320] sm:$0xf] }
 0x22c   :  { %v5112_v24 = vor.u32 %v6087_v22, %v5111_v21 }
 0x22d   :  { %2504 = vmatpush.bf16.msra.mxu1 %v4732_v62 }
 0x22f   :  { %2516 = vmatpush.bf16.msra.mxu2 %v4876_v33  ;;  %2528 = vmatpush.bf16.msra.mxu3 %v5020_v2  ;;  %v6000_v2 = vld [vmem:[#allocation13 + $0xd4] sm:$0xf0] }
 0x231   :  { %2505 = vmatpush.bf16.msra.mxu1 %v4716_v9  ;;  %v5128_v9 = vor.u32 %v6091_v52, %v5127_v6  ;;  %v5047_v6 = vld [vmem:[#allocation13 + $0x300] sm:$0xf]  ;;  %v6071_v52 = vld [vmem:[#allocation13 + $0x30c] sm:$0xf0] }
 0x233   :  { %2517 = vmatpush.bf16.msra.mxu2 %v4860_v41  ;;  %2490 = vmatpush.bf16.msra.mxu0 %v5128_v9  ;;  %v5079_v41 = vld [vmem:[#allocation13 + $0x340] sm:$0xf]  ;;  %v5048_v9 = vor.u32 %v6071_v52, %v5047_v6  ;;  %v6077_v52 = vld [vmem:[#allocation13 + $0x344] sm:$0xf] }
 0x234   :  { %2529 = vmatpush.bf16.msra.mxu3 %v5004_v49  ;;  %v5080_v31 = vor.u32 %v6079_v28, %v5079_v41  ;;  %v4911_v41 = vld [vmem:[#allocation13 + $0x1e8] sm:$0xf]  ;;  %v6036_v28 = vld [vmem:[#allocation13 + $0x1f4] sm:$0xf0] }
 0x235   :  { %2506 = vmatpush.bf16.msra.mxu1 %v4700_v53 }
 0x237   :  { %2518 = vmatpush.bf16.msra.mxu2 %v4844_v51  ;;  %2491 = vmatpush.bf16.msra.mxu0 %v5112_v24  ;;  %v4783_v51 = vld [vmem:[#allocation13 + $0xe8] sm:$0xf]  ;;  %v6093_v24 = vld [vmem:[#allocation13 + $0x3c4] sm:$0xf] }
 0x238   :  { %v4784_v61 = vor.u32 %v6004_v16, %v4783_v51  ;;  %v4703_v51 = vld [vmem:[#allocation13 + $0x48] sm:$0xf] }
 0x239   :  { %2507 = vmatpush.bf16.msra.mxu1 %v4684_v7  ;;  %v4985_v7 = vld [vmem:[#allocation13 + $0x290] sm:$0xf0] }
 0x23b   :  { %2519 = vmatpush.bf16.msra.mxu2 %v4828_v63 }
 0x23d   :  { %v1452_v32 = vpop.f32.mrf.mxu1  ;;  %2508 = vmatpush.bf16.msra.mxu1 %v4668_v38 }
 0x23e   :  { %v6853_v10 = vpop.f32.mrf.mxu0  ;;  %v1453_v62 = vadd.f32 %v1452_v32, %v795_v50  ;;  %v4988_v32 = vor.u32 %v6053_v4, %v4985_v7  ;;  %v4735_v7 = vld [vmem:[#allocation13 + $0x88] sm:$0xf] }
 0x23f   :  { %2520 = vmatpush.bf16.msra.mxu2 %v4812_v15 }
 0x240   :  { %2530 = vmatpush.bf16.msra.mxu3 %v4988_v32 }
 0x243   :  { %2521 = vmatpush.bf16.msra.mxu2 %v4796_v26 }
 0x244   :  { %2531 = vmatpush.bf16.msra.mxu3 %v4972_v37 }
 0x245   :  { %v1454_v55 = vpop.f32.mrf.mxu1 }
 0x246   :  { %v1493_v57 = vpop.f32.mrf.mxu0 }
 0x247   :  { %v6075_v57 = vld [vmem:[#allocation13 + $0x32c] sm:$0xf0] }
 0x248   :  { %2532 = vmatpush.bf16.msra.mxu3 %v4956_v48  ;;  %v5064_v30 = vor.u32 %v6075_v57, %v5063_v56  ;;  %v6032_v56 = vld [vmem:[#allocation13 + $0x1d4] sm:$0xf0] }
 0x249   :  { %v1465_v1 = vpop.f32.mrf.mxu2 }
 0x24a   :  { %v1466_v3 = vadd.f32 %v1465_v1, %v1453_v62  ;;  %v1478_v5 = vpop.f32.mrf.mxu3  ;;  %v4940_v62 = vor.u32 %v6041_v58, %v4937_v59  ;;  %v4767_v1 = vld [vmem:[#allocation13 + $0xc8] sm:$0xf]  ;;  %v5097_v58 = vld [vmem:[#allocation13 + $0x370] sm:$0xf0] }
 0x24b   :  { %v4768_v15 = vor.u32 %v6000_v2, %v4767_v1  ;;  %v5980_v1 = vld [vmem:[#allocation13 + $0x34] sm:$0xf0]  ;;  %v4879_v2 = vld [vmem:[#allocation13 + $0x1a8] sm:$0xf] }
 0x24c   :  { %v1479_v14 = vadd.f32 %v1478_v5, %v1466_v3  ;;  %2533 = vmatpush.bf16.msra.mxu3 %v4940_v62  ;;  %v4687_v62 = vld [vmem:[#allocation13 + $0x28] sm:$0xf] }
 0x24d   :  { %v1504_v18 = vpop.f32.mrf.mxu1  ;;  %v4688_v8 = vor.u32 %v5980_v1, %v4687_v62  ;;  %v4799_v1 = vld [vmem:[#allocation13 + $0x108] sm:$0xf] }
 0x24e   :  { %v1492_v20 = vadd.f32 %v6853_v10, %v1479_v14  ;;  %v1543_v53 = vpop.f32.mrf.mxu0  ;;  %v6083_v10 = vld [vmem:[#allocation13 + $0x36c] sm:$0xf0]  ;;  %v1505_v47 = vadd.f32 %v1504_v18, %v796_v11  ;;  %v5161_v18 = vld [vmem:[#allocation13 + $0x3f0] sm:$0xf0]  ;;  %v5988_v11 = vld [vmem:[#allocation13 + $0x74] sm:$0xf0] }
 0x24f   :  { %v5096_v34 = vor.u32 %v6083_v10, %v5095_v29  ;;  %v5164_v21 = vor.u32 %v6097_v13, %v5161_v18  ;;  %v5129_v29 = vld [vmem:[#allocation13 + $0x3b0] sm:$0xf0]  ;;  %v4671_v13 = vld [vmem:[#allocation13 + $0x8] sm:$0xf] }
 0x250   :  { %v1651_v25 = vmul.f32 0.5, %v1492_v20  ;;  %v4751_v20 = vld [vmem:[#allocation13 + $0xa8] sm:$0xf]  ;;  %2534 = vmatpush.bf16.msra.mxu3 %v4924_v17  ;;  %v6024_v17 = vld [vmem:[#allocation13 + $0x194] sm:$0xf0] }
 0x251   :  { %v1467_v27 = vpop.f32.mrf.mxu2  ;;  %2492 = vmatpush.bf16.msra.mxu0 %v5096_v34 }
 0x252   :  { %6295 = vtanh.f32 %v1651_v25  ;;  %v1480_v33 = vpop.f32.mrf.mxu3  ;;  %v5992_v27 = vld [vmem:[#allocation13 + $0x94] sm:$0xf0] }
 0x253   :  { %v6089_v33 = vld [vmem:[#allocation13 + $0x3a4] sm:$0xf]  ;;  %v4736_v35 = vor.u32 %v5992_v27, %v4735_v7  ;;  %v5039_v7 = vld [vmem:[#allocation13 + $0x2e8] sm:$0xf] }
 0x254   :  { %v5132_v37 = vor.u32 %v6089_v33, %v5129_v29  ;;  %v6068_v33 = vld [vmem:[#allocation13 + $0x2f4] sm:$0xf0]  ;;  %v5998_v29 = vld [vmem:[#allocation13 + $0xcc] sm:$0xf] }
 0x255   :  { %v1506_v38 = vpop.f32.mrf.mxu1  ;;  %2493 = vmatpush.bf16.msra.mxu0 %v5080_v31 }
 0x256   :  { %v1545_v39 = vpop.f32.mrf.mxu0 }
 0x258   :  { %v6296_v46 = vpop.eup %6295 }
 0x259   :  { %v1659_v50 = vadd.f32 1.0, %v6296_v46  ;;  %v1517_v45 = vpop.f32.mrf.mxu2  ;;  %2494 = vmatpush.bf16.msra.mxu0 %v5064_v30  ;;  %v6085_v46 = vld [vmem:[#allocation13 + $0x384] sm:$0xf] }
 0x25a   :  { %v1518_v54 = vadd.f32 %v1517_v45, %v1505_v47  ;;  %v1530_v55 = vpop.f32.mrf.mxu3  ;;  %v5113_v47 = vld [vmem:[#allocation13 + $0x390] sm:$0xf0]  ;;  %v4912_v45 = vor.u32 %v6036_v28, %v4911_v41  ;;  %v6081_v30 = vld [vmem:[#allocation13 + $0x364] sm:$0xf]  ;;  %v4831_v28 = vld [vmem:[#allocation13 + $0x148] sm:$0xf] }
 0x25b   :  { %v1663_v23 = vmul.f32 %v1659_v50, %v1651_v25  ;;  %v5148_v25 = vor.u32 %v6093_v24, %v5145_v42  ;;  %v4720_v50 = vor.u32 %v5988_v11, %v4719_v36  ;;  %v5116_v57 = vor.u32 %v6085_v46, %v5113_v47  ;;  %v6069_v36 = vld [vmem:[#allocation13 + $0x304] sm:$0xf]  ;;  %v5049_v11 = vld [vmem:[#allocation13 + $0x310] sm:$0xf0]  ;;  %v5994_v46 = vld [vmem:[#allocation13 + $0xac] sm:$0xf] }
 0x25c   :  { %v1531_v60 = vadd.f32 %v1530_v55, %v1518_v54  ;;  %v5984_v54 = vld [vmem:[#allocation13 + $0x54] sm:$0xf0]  ;;  %v4895_v55 = vld [vmem:[#allocation13 + $0x1c8] sm:$0xf]  ;;  %v5100_v6 = vor.u32 %v6081_v30, %v5097_v58  ;;  %v4753_v47 = vld [vmem:[#allocation13 + $0xb8] sm:$0xf0] }
 0x25d   :  { %v6863_v63 = vpack.c.bf16 %v1663_v23, %v1663_v23  ;;  %v1556_v0 = vpop.f32.mrf.mxu1  ;;  %2495 = vmatpush.bf16.msra.mxu0 %v5048_v9  ;;  %v5081_v9 = vld [vmem:[#allocation13 + $0x350] sm:$0xf0]  ;;  %v6060_v30 = vld [vmem:[#allocation13 + $0x2b4] sm:$0xf0]  ;;  %v5990_v58 = vld [vmem:[#allocation13 + $0x8c] sm:$0xf] }
 0x25e   :  { %v1544_v3 = vadd.f32 %v1543_v53, %v1531_v60  ;;  %v6865_v5 = vpop.f32.mrf.mxu0  ;;  %v5996_v53 = vld [vmem:[#allocation13 + $0xb4] sm:$0xf0]  ;;  %v1557_v34 = vadd.f32 %v1556_v0, %v797_v43  ;;  %v4704_v60 = vor.u32 %v5984_v54, %v4703_v51  ;;  %v5084_v18 = vor.u32 %v6077_v52, %v5081_v9  ;;  %v4847_v43 = vld [vmem:[#allocation13 + $0x168] sm:$0xf]  ;;  %v5986_v52 = vld [vmem:[#allocation13 + $0x6c] sm:$0xf] }
 0x25f   :  { %2457 = vmatmul.bf16.vlgmr.msrb.gmra.mxu1 %v6863_v63  ;;  %v4752_v4 = vor.u32 %v5996_v53, %v4751_v20  ;;  %v4785_v20 = vld [vmem:[#allocation13 + $0xf8] sm:$0xf0]  ;;  %v6073_v53 = vld [vmem:[#allocation13 + $0x324] sm:$0xf]  ;;  %v4756_v54 = vor.u32 %v5994_v46, %v4753_v47  ;;  %v6022_v46 = vld [vmem:[#allocation13 + $0x18c] sm:$0xf] }
 0x260   :  { %v1652_v14 = vmul.f32 0.5, %v1544_v3  ;;  %2553 = vmatpush.bf16.msrb.mxu1 %v4784_v61  ;;  %v4896_v61 = vor.u32 %v6032_v56, %v4895_v55  ;;  %v6028_v3 = vld [vmem:[#allocation13 + $0x1b4] sm:$0xf0]  ;;  %v4815_v55 = vld [vmem:[#allocation13 + $0x128] sm:$0xf] }
 0x261   :  { %v1519_v49 = vpop.f32.mrf.mxu2  ;;  %2540 = vmatpush.bf16.msrb.mxu0 %v5164_v21  ;;  %v4880_v12 = vor.u32 %v6028_v3, %v4879_v2  ;;  %v5065_v21 = vld [vmem:[#allocation13 + $0x330] sm:$0xf0]  ;;  %v6012_v56 = vld [vmem:[#allocation13 + $0x134] sm:$0xf0]  ;;  %v4991_v3 = vld [vmem:[#allocation13 + $0x288] sm:$0xf] }
 0x262   :  { %6297 = vtanh.f32 %v1652_v14  ;;  %v1532_v22 = vpop.f32.mrf.mxu3  ;;  %v6002_v49 = vld [vmem:[#allocation13 + $0xec] sm:$0xf]  ;;  %v5068_v27 = vor.u32 %v6073_v53, %v5065_v21  ;;  %v6008_v2 = vld [vmem:[#allocation13 + $0x114] sm:$0xf0]  ;;  %v4721_v9 = vld [vmem:[#allocation13 + $0x78] sm:$0xf0] }
 0x263   :  { %v6052_v21 = vld [vmem:[#allocation13 + $0x274] sm:$0xf0]  ;;  %v4865_v47 = vld [vmem:[#allocation13 + $0x198] sm:$0xf0] }
 0x264   :  { %2554 = vmatpush.bf16.msrb.mxu1 %v4768_v15  ;;  %v4863_v15 = vld [vmem:[#allocation13 + $0x188] sm:$0xf] }
 0x265   :  { %v1558_v26 = vpop.f32.mrf.mxu1  ;;  %2541 = vmatpush.bf16.msrb.mxu0 %v5148_v25  ;;  %v4864_v42 = vor.u32 %v6024_v17, %v4863_v15  ;;  %v4788_v25 = vor.u32 %v6002_v49, %v4785_v20  ;;  %v4800_v15 = vor.u32 %v6008_v2, %v4799_v1  ;;  %v4724_v49 = vor.u32 %v5986_v52, %v4721_v9  ;;  %v4975_v20 = vld [vmem:[#allocation13 + $0x268] sm:$0xf]  ;;  %v4833_v52 = vld [vmem:[#allocation13 + $0x158] sm:$0xf0]  ;;  %v6062_v9 = vld [vmem:[#allocation13 + $0x2cc] sm:$0xf] }
 0x266   :  { %v1597_v32 = vpop.f32.mrf.mxu0  ;;  %v6020_v26 = vld [vmem:[#allocation13 + $0x174] sm:$0xf0] }
 0x268   :  { %v6298_v10 = vpop.eup %6297  ;;  %2555 = vmatpush.bf16.msrb.mxu1 %v4752_v4 }
 0x269   :  { %v1660_v38 = vadd.f32 1.0, %v6298_v10  ;;  %v1569_v39 = vpop.f32.mrf.mxu2  ;;  %2542 = vmatpush.bf16.msrb.mxu0 %v5132_v37  ;;  %v4769_v10 = vld [vmem:[#allocation13 + $0xd8] sm:$0xf0]  ;;  %v4848_v37 = vor.u32 %v6020_v26, %v4847_v43  ;;  %v6030_v43 = vld [vmem:[#allocation13 + $0x1cc] sm:$0xf]  ;;  %v4976_v26 = vor.u32 %v6052_v21, %v4975_v20 }
 0x26a   :  { %v1570_v31 = vadd.f32 %v1569_v39, %v1557_v34  ;;  %v1582_v19 = vpop.f32.mrf.mxu3  ;;  %v5040_v39 = vor.u32 %v6068_v33, %v5039_v7  ;;  %v4772_v41 = vor.u32 %v5998_v29, %v4769_v10  ;;  %v6048_v29 = vld [vmem:[#allocation13 + $0x254] sm:$0xf0]  ;;  %v5978_v10 = vld [vmem:[#allocation13 + $0x2c] sm:$0xf] }
 0x26b   :  { %v1664_v44 = vmul.f32 %v1660_v38, %v1652_v14  ;;  %v5976_v14 = vld [vmem:[#allocation13 + $0x14] sm:$0xf0]  ;;  %v6058_v20 = vld [vmem:[#allocation13 + $0x2ac] sm:$0xf] }
 0x26c   :  { %v1583_v48 = vadd.f32 %v1582_v19, %v1570_v31  ;;  %2556 = vmatpush.bf16.msrb.mxu1 %v4736_v35  ;;  %v4672_v24 = vor.u32 %v5976_v14, %v4671_v13  ;;  %v6016_v31 = vld [vmem:[#allocation13 + $0x154] sm:$0xf0]  ;;  %v5023_v19 = vld [vmem:[#allocation13 + $0x2c8] sm:$0xf]  ;;  %v6034_v13 = vld [vmem:[#allocation13 + $0x1ec] sm:$0xf] }
 0x26d   :  { %v6869_v16 = vpack.c.bf16 %v1664_v44, %v1664_v44  ;;  %2543 = vmatpush.bf16.msrb.mxu0 %v5116_v57  ;;  %v6064_v44 = vld [vmem:[#allocation13 + $0x2d4] sm:$0xf0]  ;;  %v5007_v57 = vld [vmem:[#allocation13 + $0x2a8] sm:$0xf]  ;;  %v4913_v14 = vld [vmem:[#allocation13 + $0x1f8] sm:$0xf0] }
 0x26e   :  { %v1596_v23 = vadd.f32 %v6865_v5, %v1583_v48  ;;  %v5052_v48 = vor.u32 %v6069_v36, %v5049_v11  ;;  %v5024_v51 = vor.u32 %v6064_v44, %v5023_v19  ;;  %v5008_v62 = vor.u32 %v6060_v30, %v5007_v57  ;;  %v4881_v11 = vld [vmem:[#allocation13 + $0x1b8] sm:$0xf0]  ;;  %v5974_v19 = vld [vmem:[#allocation13 + $0xc] sm:$0xf] }
 0x26f   :  { %2470 = vmatmul.bf16.vlgmr.msrb.gmra.mxu2 %v6869_v16  ;;  %2509 = vmatmul.bf16.vlgmr.msra.gmra.mxu1 %v6863_v63  ;;  %v4916_v53 = vor.u32 %v6034_v13, %v4913_v14  ;;  %v4673_v44 = vld [vmem:[#allocation13 + $0x18] sm:$0xf0]  ;;  %v4868_v57 = vor.u32 %v6022_v46, %v4865_v47  ;;  %v6018_v30 = vld [vmem:[#allocation13 + $0x16c] sm:$0xf] }
 0x270   :  { %v1653_v59 = vmul.f32 0.5, %v1596_v23  ;;  %2557 = vmatpush.bf16.msrb.mxu1 %v4720_v50  ;;  %2566 = vmatpush.bf16.msrb.mxu2 %v4912_v45  ;;  %v798_v50 = vperm.slane %v6858_v40, 3  ;;  %v4832_v45 = vor.u32 %v6016_v31, %v4831_v28  ;;  %v6044_v31 = vld [vmem:[#allocation13 + $0x234] sm:$0xf0]  ;;  %v6042_v46 = vld [vmem:[#allocation13 + $0x22c] sm:$0xf] }
 0x271   :  { %v1571_v0 = vpop.f32.mrf.mxu2  ;;  %2544 = vmatpush.bf16.msrb.mxu0 %v5100_v6  ;;  %v4945_v47 = vld [vmem:[#allocation13 + $0x238] sm:$0xf0] }
 0x272   :  { %6299 = vtanh.f32 %v1653_v59  ;;  %v1584_v5 = vpop.f32.mrf.mxu3 }
 0x273   :  { %v6056_v5 = vld [vmem:[#allocation13 + $0x294] sm:$0xf0] }
 0x274   :  { %2558 = vmatpush.bf16.msrb.mxu1 %v4704_v60  ;;  %2567 = vmatpush.bf16.msrb.mxu2 %v4896_v61  ;;  %v4816_v61 = vor.u32 %v6012_v56, %v4815_v55  ;;  %v5167_v55 = vld [vmem:[#allocation13 + $0x3e8] sm:$0xf] }
 0x275   :  { %2545 = vmatpush.bf16.msrb.mxu0 %v5084_v18  ;;  %v4992_v18 = vor.u32 %v6056_v5, %v4991_v3  ;;  %v5151_v3 = vld [vmem:[#allocation13 + $0x3c8] sm:$0xf]  ;;  %v6014_v5 = vld [vmem:[#allocation13 + $0x14c] sm:$0xf] }
 0x276   :  { %v4836_v13 = vor.u32 %v6014_v5, %v4833_v52  ;;  %v5105_v5 = vld [vmem:[#allocation13 + $0x378] sm:$0xf0] }
 0x278   :  { %v6300_v22 = vpop.eup %6299  ;;  %2559 = vmatpush.bf16.msrb.mxu1 %v4688_v8  ;;  %2568 = vmatpush.bf16.msrb.mxu2 %v4880_v12 }
 0x279   :  { %v1661_v4 = vadd.f32 1.0, %v6300_v22  ;;  %2546 = vmatpush.bf16.msrb.mxu0 %v5068_v27  ;;  %v5982_v22 = vld [vmem:[#allocation13 + $0x4c] sm:$0xf]  ;;  %v4959_v27 = vld [vmem:[#allocation13 + $0x248] sm:$0xf] }
 0x27b   :  { %v1665_v34 = vmul.f32 %v1661_v4, %v1653_v59  ;;  %v4737_v59 = vld [vmem:[#allocation13 + $0x98] sm:$0xf0] }
 0x27c   :  { %2560 = vmatpush.bf16.msrb.mxu1 %v4672_v24  ;;  %2569 = vmatpush.bf16.msrb.mxu2 %v4864_v42  ;;  %v4740_v0 = vor.u32 %v5990_v58, %v4737_v59  ;;  %v4705_v24 = vld [vmem:[#allocation13 + $0x58] sm:$0xf0]  ;;  %v6066_v59 = vld [vmem:[#allocation13 + $0x2ec] sm:$0xf] }
 0x27d   :  { %v1608_v32 = vpop.f32.mrf.mxu1  ;;  %v6876_v38 = vpack.c.bf16 %v1665_v34, %v1665_v34  ;;  %2547 = vmatpush.bf16.msrb.mxu0 %v5052_v48  ;;  %v4897_v4 = vld [vmem:[#allocation13 + $0x1d8] sm:$0xf0]  ;;  %v4708_v7 = vor.u32 %v5982_v22, %v4705_v24  ;;  %v5119_v24 = vld [vmem:[#allocation13 + $0x388] sm:$0xf] }
 0x27e   :  { %v6874_v35 = vpop.f32.mrf.mxu0  ;;  %v1609_v40 = vadd.f32 %v1608_v32, %v798_v50  ;;  %v4900_v33 = vor.u32 %v6030_v43, %v4897_v4  ;;  %v4689_v34 = vld [vmem:[#allocation13 + $0x38] sm:$0xf0]  ;;  %v6006_v43 = vld [vmem:[#allocation13 + $0x10c] sm:$0xf] }
 0x27f   :  { %2483 = vmatmul.bf16.vlgmr.msrb.gmra.mxu3 %v6876_v38  ;;  %2522 = vmatmul.bf16.vlgmr.msra.gmra.mxu2 %v6869_v16  ;;  %v4849_v58 = vld [vmem:[#allocation13 + $0x178] sm:$0xf0] }
 0x280   :  { %2605 = vmatpush.bf16.msra.mxu1 %v4788_v25  ;;  %2570 = vmatpush.bf16.msrb.mxu2 %v4848_v37  ;;  %v4960_v37 = vor.u32 %v6048_v29, %v4959_v27  ;;  %v4852_v1 = vor.u32 %v6018_v30, %v4849_v58  ;;  %v4801_v4 = vld [vmem:[#allocation13 + $0x118] sm:$0xf0]  ;;  %v6084_v29 = vld [vmem:[#allocation13 + $0x374] sm:$0xf0]  ;;  %v6094_v58 = vld [vmem:[#allocation13 + $0x3cc] sm:$0xf] }
 0x281   :  { %2561 = vmatmul.bf16.vlgmr.msrb.gmra.mxu1 %v6863_v63  ;;  %2579 = vmatpush.bf16.msrb.mxu3 %v5040_v39  ;;  %v4692_v39 = vor.u32 %v5978_v10, %v4689_v34  ;;  %v4804_v27 = vor.u32 %v6006_v43, %v4801_v4  ;;  %v6050_v10 = vld [vmem:[#allocation13 + $0x26c] sm:$0xf]  ;;  %v4977_v34 = vld [vmem:[#allocation13 + $0x278] sm:$0xf0] }
 0x284   :  { %2606 = vmatpush.bf16.msra.mxu1 %v4772_v41  ;;  %2571 = vmatpush.bf16.msrb.mxu2 %v4832_v45  ;;  %v4943_v41 = vld [vmem:[#allocation13 + $0x228] sm:$0xf]  ;;  %v4676_v45 = vor.u32 %v5974_v19, %v4673_v44  ;;  %v6076_v44 = vld [vmem:[#allocation13 + $0x334] sm:$0xf0] }
 0x285   :  { %v1610_v23 = vpop.f32.mrf.mxu1  ;;  %2580 = vmatpush.bf16.msrb.mxu3 %v5024_v51  ;;  %v4944_v50 = vor.u32 %v6044_v31, %v4943_v41  ;;  %v4927_v51 = vld [vmem:[#allocation13 + $0x208] sm:$0xf]  ;;  %v4961_v41 = vld [vmem:[#allocation13 + $0x258] sm:$0xf0] }
 0x286   :  { %v1649_v60 = vpop.f32.mrf.mxu0  ;;  %v6100_v23 = vld [vmem:[#allocation13 + $0x3f4] sm:$0xf0]  ;;  %v5071_v19 = vld [vmem:[#allocation13 + $0x328] sm:$0xf] }
 0x287   :  { %v5041_v60 = vld [vmem:[#allocation13 + $0x2f8] sm:$0xf0] }
 0x288   :  { %2607 = vmatpush.bf16.msra.mxu1 %v4756_v54  ;;  %2572 = vmatpush.bf16.msrb.mxu2 %v4816_v61  ;;  %v6040_v54 = vld [vmem:[#allocation13 + $0x214] sm:$0xf0]  ;;  %v5044_v2 = vor.u32 %v6066_v59, %v5041_v60  ;;  %v5153_v59 = vld [vmem:[#allocation13 + $0x3d8] sm:$0xf0] }
 0x289   :  { %v1621_v6 = vpop.f32.mrf.mxu2  ;;  %2581 = vmatpush.bf16.msrb.mxu3 %v5008_v62  ;;  %v5168_v62 = vor.u32 %v6100_v23, %v5167_v55  ;;  %v4929_v55 = vld [vmem:[#allocation13 + $0x218] sm:$0xf0]  ;;  %v5156_v60 = vor.u32 %v6094_v58, %v5153_v59  ;;  %v5351_v58 = vld [vmem:[#allocation16 + $0x160] sm:$0xf]  ;;  %v6195_v59 = vld [vmem:[#allocation16 + $0x2ec] sm:$0xf0] }
 0x28a   :  { %v1622_v8 = vadd.f32 %v1621_v6, %v1609_v40  ;;  %v1634_v12 = vpop.f32.mrf.mxu3  ;;  %v4928_v40 = vor.u32 %v6040_v54, %v4927_v51  ;;  %v6096_v6 = vld [vmem:[#allocation13 + $0x3d4] sm:$0xf0]  ;;  %v6038_v54 = vld [vmem:[#allocation13 + $0x20c] sm:$0xf] }
 0x28b   :  { %v6072_v51 = vld [vmem:[#allocation13 + $0x314] sm:$0xf0] }
 0x28c   :  { %v1635_v17 = vadd.f32 %v1634_v12, %v1622_v8  ;;  %2608 = vmatpush.bf16.msra.mxu1 %v4740_v0  ;;  %2573 = vmatpush.bf16.msrb.mxu2 %v4800_v15  ;;  %v5025_v8 = vld [vmem:[#allocation13 + $0x2d8] sm:$0xf0]  ;;  %v5152_v12 = vor.u32 %v6096_v6, %v5151_v3  ;;  %v5135_v15 = vld [vmem:[#allocation13 + $0x3a8] sm:$0xf]  ;;  %v6082_v6 = vld [vmem:[#allocation13 + $0x36c] sm:$0xf] }
 0x28d   :  { %2582 = vmatpush.bf16.msrb.mxu3 %v4992_v18  ;;  %v5028_v14 = vor.u32 %v6062_v9, %v5025_v8  ;;  %v6010_v18 = vld [vmem:[#allocation13 + $0x12c] sm:$0xf]  ;;  %v5108_v52 = vor.u32 %v6082_v6, %v5105_v5  ;;  %v5089_v8 = vld [vmem:[#allocation13 + $0x358] sm:$0xf0]  ;;  %v5335_v6 = vld [vmem:[#allocation16 + $0x140] sm:$0xf] }
 0x28e   :  { %v1648_v42 = vadd.f32 %v6874_v35, %v1635_v17  ;;  %v6026_v35 = vld [vmem:[#allocation13 + $0x1ac] sm:$0xf]  ;;  %v6092_v17 = vld [vmem:[#allocation13 + $0x3b4] sm:$0xf0]  ;;  %v6143_v5 = vld [vmem:[#allocation16 + $0x14c] sm:$0xf0] }
 0x28f   :  { %2535 = vmatmul.bf16.vlgmr.msra.gmra.mxu3 %v6876_v38  ;;  %2574 = vmatmul.bf16.vlgmr.msrb.gmra.mxu2 %v6869_v16  ;;  %v4884_v28 = vor.u32 %v6026_v35, %v4881_v11  ;;  %v5136_v21 = vor.u32 %v6092_v17, %v5135_v15  ;;  %v4980_v35 = vor.u32 %v6050_v10, %v4977_v34  ;;  %v5087_v11 = vld [vmem:[#allocation13 + $0x348] sm:$0xf]  ;;  %v6078_v9 = vld [vmem:[#allocation13 + $0x34c] sm:$0xf]  ;;  %v5287_v15 = vld [vmem:[#allocation16 + $0xe0] sm:$0xf] }
 0x290   :  { %v1654_v25 = vmul.f32 0.5, %v1648_v42  ;;  %2609 = vmatpush.bf16.msra.mxu1 %v4724_v49  ;;  %2618 = vmatpush.bf16.msra.mxu2 %v4916_v53  ;;  %v4817_v49 = vld [vmem:[#allocation13 + $0x138] sm:$0xf0]  ;;  %v6088_v42 = vld [vmem:[#allocation13 + $0x394] sm:$0xf0] }
 0x291   :  { %v1623_v32 = vpop.f32.mrf.mxu2  ;;  %2583 = vmatpush.bf16.msrb.mxu3 %v4976_v26  ;;  %v5009_v53 = vld [vmem:[#allocation13 + $0x2b8] sm:$0xf0]  ;;  %v6131_v17 = vld [vmem:[#allocation16 + $0xec] sm:$0xf0] }
 0x292   :  { %6301 = vtanh.f32 %v1654_v25  ;;  %v1636_v36 = vpop.f32.mrf.mxu3  ;;  %v5012_v22 = vor.u32 %v6058_v20, %v5009_v53  ;;  %v4993_v26 = vld [vmem:[#allocation13 + $0x298] sm:$0xf0] }
 0x293   :  { %v5057_v20 = vld [vmem:[#allocation13 + $0x318] sm:$0xf0] }
 0x294   :  { %2610 = vmatpush.bf16.msra.mxu1 %v4708_v7  ;;  %2619 = vmatpush.bf16.msra.mxu2 %v4900_v33  ;;  %v5120_v7 = vor.u32 %v6088_v42, %v5119_v24  ;;  %v5103_v33 = vld [vmem:[#allocation13 + $0x368] sm:$0xf]  ;;  %v6123_v42 = vld [vmem:[#allocation16 + $0xac] sm:$0xf0] }
 0x295   :  { %2584 = vmatpush.bf16.msrb.mxu3 %v4960_v37  ;;  %v5104_v36 = vor.u32 %v6084_v29, %v5103_v33  ;;  %v6080_v37 = vld [vmem:[#allocation13 + $0x354] sm:$0xf0]  ;;  %v5415_v33 = vld [vmem:[#allocation16 + $0x1e0] sm:$0xf]  ;;  %v6163_v29 = vld [vmem:[#allocation16 + $0x1ec] sm:$0xf0] }
 0x296   :  { %v5416_v34 = vor.u32 %v6163_v29, %v5415_v33  ;;  %v6113_v33 = vld [vmem:[#allocation16 + $0x64] sm:$0xf]  ;;  %v5225_v29 = vld [vmem:[#allocation16 + $0x70] sm:$0xf0] }
 0x298   :  { %v6302_v48 = vpop.eup %6301  ;;  %2611 = vmatpush.bf16.msra.mxu1 %v4692_v39  ;;  %2620 = vmatpush.bf16.msra.mxu2 %v4884_v28  ;;  %v6046_v39 = vld [vmem:[#allocation13 + $0x24c] sm:$0xf]  ;;  %v5088_v28 = vor.u32 %v6080_v37, %v5087_v11  ;;  %v6111_v11 = vld [vmem:[#allocation16 + $0x4c] sm:$0xf0]  ;;  %v5399_v37 = vld [vmem:[#allocation16 + $0x1c0] sm:$0xf] }
 0x299   :  { %v1662_v56 = vadd.f32 1.0, %v6302_v48  ;;  %2585 = vmatpush.bf16.msrb.mxu3 %v4944_v50  ;;  %v4964_v31 = vor.u32 %v6046_v39, %v4961_v41  ;;  %v5072_v48 = vor.u32 %v6076_v44, %v5071_v19  ;;  %v4948_v50 = vor.u32 %v6042_v46, %v4945_v47  ;;  %v6159_v39 = vld [vmem:[#allocation16 + $0x1cc] sm:$0xf0]  ;;  %v5191_v41 = vld [vmem:[#allocation16 + $0x20] sm:$0xf] }
 0x29a   :  { %v5383_v19 = vld [vmem:[#allocation16 + $0x1a0] sm:$0xf]  ;;  %v6155_v44 = vld [vmem:[#allocation16 + $0x1ac] sm:$0xf0] }
 0x29b   :  { %v1666_v61 = vmul.f32 %v1662_v56, %v1654_v25  ;;  %v6054_v25 = vld [vmem:[#allocation13 + $0x28c] sm:$0xf]  ;;  %v5384_v47 = vor.u32 %v6155_v44, %v5383_v19  ;;  %v5209_v19 = vld [vmem:[#allocation16 + $0x50] sm:$0xf0]  ;;  %v6157_v44 = vld [vmem:[#allocation16 + $0x1c4] sm:$0xf] }
 0x29c   :  { %2612 = vmatpush.bf16.msra.mxu1 %v4676_v45  ;;  %2621 = vmatpush.bf16.msra.mxu2 %v4868_v57  ;;  %v4996_v32 = vor.u32 %v6054_v25, %v4993_v26  ;;  %v5055_v45 = vld [vmem:[#allocation13 + $0x308] sm:$0xf]  ;;  %v6098_v56 = vld [vmem:[#allocation13 + $0x3ec] sm:$0xf]  ;;  %v5169_v57 = vld [vmem:[#allocation13 + $0x3f8] sm:$0xf0] }
 0x29d   :  { %v6885_v0 = vpack.c.bf16 %v1666_v61, %v1666_v61  ;;  %2586 = vmatpush.bf16.msrb.mxu3 %v4928_v40  ;;  %v5056_v23 = vor.u32 %v6072_v51, %v5055_v45  ;;  %v5172_v30 = vor.u32 %v6098_v56, %v5169_v57  ;;  %v6090_v61 = vld [vmem:[#allocation13 + $0x3ac] sm:$0xf]  ;;  %v5137_v40 = vld [vmem:[#allocation13 + $0x3b8] sm:$0xf0]  ;;  %v5239_v25 = vld [vmem:[#allocation16 + $0x80] sm:$0xf] }
 0x29e   :  { %v6119_v26 = vld [vmem:[#allocation16 + $0x8c] sm:$0xf0]  ;;  %v5367_v45 = vld [vmem:[#allocation16 + $0x180] sm:$0xf] }
 0x29f   :  { %2496 = vmatmul.bf16.vlgmr.msra.gmra.mxu0 %v6885_v0  ;;  %2613 = vmatmul.bf16.vlgmr.msra.gmra.mxu1 %v6863_v63  ;;  %v4820_v63 = vor.u32 %v6010_v18, %v4817_v49  ;;  %v5288_v18 = vor.u32 %v6131_v17, %v5287_v15  ;;  %v6070_v49 = vld [vmem:[#allocation13 + $0x30c] sm:$0xf]  ;;  %v6151_v51 = vld [vmem:[#allocation16 + $0x18c] sm:$0xf0] }
 0x2a0   :  { %2592 = vmatpush.bf16.msra.mxu0 %v5168_v62  ;;  %2622 = vmatpush.bf16.msra.mxu2 %v4852_v1  ;;  %v5140_v62 = vor.u32 %v6090_v61, %v5137_v40  ;;  %v6086_v1 = vld [vmem:[#allocation13 + $0x38c] sm:$0xf]  ;;  %v5060_v53 = vor.u32 %v6070_v49, %v5057_v20  ;;  %v6125_v40 = vld [vmem:[#allocation16 + $0xc4] sm:$0xf]  ;;  %v5511_v49 = vld [vmem:[#allocation16 + $0x2a0] sm:$0xf] }
 0x2a1   :  { %2631 = vmatpush.bf16.msra.mxu3 %v5044_v2  ;;  %v5121_v2 = vld [vmem:[#allocation13 + $0x398] sm:$0xf0]  ;;  %3455 = vmatpush.bf16.msrb.mxu1 %v5288_v18  ;;  %v6139_v18 = vld [vmem:[#allocation16 + $0x12c] sm:$0xf0] }
 0x2a2   :  { %2587 = vmatmul.bf16.vlgmr.msrb.gmra.mxu3 %v6876_v38  ;;  %v5124_v3 = vor.u32 %v6086_v1, %v5121_v2 }
 0x2a4   :  { %2593 = vmatpush.bf16.msra.mxu0 %v5152_v12  ;;  %2623 = vmatpush.bf16.msra.mxu2 %v4836_v13  ;;  %v5092_v12 = vor.u32 %v6078_v9, %v5089_v8  ;;  %v6074_v13 = vld [vmem:[#allocation13 + $0x32c] sm:$0xf]  ;;  %v6191_v8 = vld [vmem:[#allocation16 + $0x2cc] sm:$0xf0] }
 0x2a5   :  { %2632 = vmatpush.bf16.msra.mxu3 %v5028_v14  ;;  %v5073_v14 = vld [vmem:[#allocation13 + $0x338] sm:$0xf0] }
 0x2a8   :  { %2594 = vmatpush.bf16.msra.mxu0 %v5136_v21  ;;  %2624 = vmatpush.bf16.msra.mxu2 %v4820_v63  ;;  %v5271_v21 = vld [vmem:[#allocation16 + $0xc0] sm:$0xf]  ;;  %v6127_v63 = vld [vmem:[#allocation16 + $0xcc] sm:$0xf0] }
 0x2a9   :  { %2633 = vmatpush.bf16.msra.mxu3 %v5012_v22  ;;  %v5255_v22 = vld [vmem:[#allocation16 + $0xa0] sm:$0xf]  ;;  %v5272_v24 = vor.u32 %v6127_v63, %v5271_v21  ;;  %v6187_v21 = vld [vmem:[#allocation16 + $0x2ac] sm:$0xf0]  ;;  %v6117_v63 = vld [vmem:[#allocation16 + $0x84] sm:$0xf] }
 0x2aa   :  { %v5256_v43 = vor.u32 %v6123_v42, %v5255_v22  ;;  %v5241_v22 = vld [vmem:[#allocation16 + $0x90] sm:$0xf0] }
 0x2ab   :  { %3456 = vmatpush.bf16.msrb.mxu1 %v5272_v24  ;;  %v5512_v24 = vor.u32 %v6187_v21, %v5511_v49  ;;  %v5244_v42 = vor.u32 %v6117_v63, %v5241_v22  ;;  %v5545_v21 = vld [vmem:[#allocation16 + $0x2f0] sm:$0xf0] }
 0x2ac   :  { %2595 = vmatpush.bf16.msra.mxu0 %v5120_v7  ;;  %2625 = vmatpush.bf16.msra.mxu2 %v4804_v27  ;;  %v5240_v7 = vor.u32 %v6119_v26, %v5239_v25  ;;  %v5223_v27 = vld [vmem:[#allocation16 + $0x60] sm:$0xf]  ;;  %v6135_v26 = vld [vmem:[#allocation16 + $0x10c] sm:$0xf0] }
 0x2ad   :  { %2634 = vmatpush.bf16.msra.mxu3 %v4996_v32  ;;  %v6115_v32 = vld [vmem:[#allocation16 + $0x6c] sm:$0xf0]  ;;  %v5303_v25 = vld [vmem:[#allocation16 + $0x100] sm:$0xf] }
 0x2ae   :  { %v5224_v10 = vor.u32 %v6115_v32, %v5223_v27  ;;  %v5304_v27 = vor.u32 %v6135_v26, %v5303_v25  ;;  %v6183_v32 = vld [vmem:[#allocation16 + $0x28c] sm:$0xf0] }
 0x2af   :  { %2548 = vmatmul.bf16.vlgmr.msrb.gmra.mxu0 %v6885_v0  ;;  %2626 = vmatmul.bf16.vlgmr.msra.gmra.mxu2 %v6869_v16  ;;  %v4932_v16 = vor.u32 %v6038_v54, %v4929_v55  ;;  %v6129_v54 = vld [vmem:[#allocation16 + $0xe4] sm:$0xf]  ;;  %v5289_v55 = vld [vmem:[#allocation16 + $0xf0] sm:$0xf0] }
 0x2b0   :  { %2596 = vmatpush.bf16.msra.mxu0 %v5104_v36  ;;  %3457 = vmatpush.bf16.msrb.mxu1 %v5256_v43 }
 0x2b1   :  { %2635 = vmatpush.bf16.msra.mxu3 %v4980_v35  ;;  %3468 = vmatpush.bf16.msrb.mxu2 %v5416_v34  ;;  %v5207_v35 = vld [vmem:[#allocation16 + $0x40] sm:$0xf]  ;;  %v5228_v34 = vor.u32 %v6113_v33, %v5225_v29  ;;  %v6189_v33 = vld [vmem:[#allocation16 + $0x2c4] sm:$0xf] }
 0x2b4   :  { %2597 = vmatpush.bf16.msra.mxu0 %v5088_v28  ;;  %3458 = vmatpush.bf16.msrb.mxu1 %v5240_v7  ;;  %v6107_v28 = vld [vmem:[#allocation16 + $0x2c] sm:$0xf0]  ;;  %v5495_v7 = vld [vmem:[#allocation16 + $0x280] sm:$0xf] }
 0x2b5   :  { %2636 = vmatpush.bf16.msra.mxu3 %v4964_v31  ;;  %v5400_v31 = vor.u32 %v6159_v39, %v5399_v37  ;;  %v5192_v46 = vor.u32 %v6107_v28, %v5191_v41  ;;  %v5479_v37 = vld [vmem:[#allocation16 + $0x260] sm:$0xf] }
 0x2b7   :  { %3469 = vmatpush.bf16.msrb.mxu2 %v5400_v31  ;;  %v6109_v31 = vld [vmem:[#allocation16 + $0x44] sm:$0xf] }
 0x2b8   :  { %2598 = vmatpush.bf16.msra.mxu0 %v5072_v48  ;;  %3459 = vmatpush.bf16.msrb.mxu1 %v5224_v10  ;;  %v5175_v48 = vld [vmem:[#allocation16] sm:$0xf]  ;;  %v5496_v10 = vor.u32 %v6183_v32, %v5495_v7  ;;  %v5337_v32 = vld [vmem:[#allocation16 + $0x150] sm:$0xf0] }
 0x2b9   :  { %2637 = vmatpush.bf16.msra.mxu3 %v4948_v50  ;;  %v6103_v50 = vld [vmem:[#allocation16 + $0xc] sm:$0xf0] }
 0x2ba   :  { %v5176_v57 = vor.u32 %v6103_v50, %v5175_v48 }
 0x2bb   :  { %3470 = vmatpush.bf16.msrb.mxu2 %v5384_v47  ;;  %v5401_v47 = vld [vmem:[#allocation16 + $0x1d0] sm:$0xf0] }
 0x2bc   :  { %2599 = vmatpush.bf16.msra.mxu0 %v5056_v23  ;;  %v5543_v23 = vld [vmem:[#allocation16 + $0x2e0] sm:$0xf]  ;;  %v5404_v48 = vor.u32 %v6157_v44, %v5401_v47 }
 0x2bd   :  { %2638 = vmatpush.bf16.msra.mxu3 %v4932_v16  ;;  %v5368_v16 = vor.u32 %v6151_v51, %v5367_v45  ;;  %v5544_v61 = vor.u32 %v6195_v59, %v5543_v23  ;;  %v5463_v45 = vld [vmem:[#allocation16 + $0x240] sm:$0xf]  ;;  %v6175_v51 = vld [vmem:[#allocation16 + $0x24c] sm:$0xf0]  ;;  %v6153_v23 = vld [vmem:[#allocation16 + $0x1a4] sm:$0xf] }
 0x2be   :  { %v5447_v59 = vld [vmem:[#allocation16 + $0x220] sm:$0xf] }
 0x2bf   :  { %2600 = vmatmul.bf16.vlgmr.msra.gmra.mxu0 %v6885_v0  ;;  %3471 = vmatpush.bf16.msrb.mxu2 %v5368_v16 }
 0x2c0   :  { %2644 = vmatpush.bf16.msrb.mxu0 %v5172_v30  ;;  %2639 = vmatmul.bf16.vlgmr.msra.gmra.mxu3 %v6876_v38  ;;  %v5076_v38 = vor.u32 %v6074_v13, %v5073_v14  ;;  %v5292_v30 = vor.u32 %v6129_v54, %v5289_v55  ;;  %v5257_v13 = vld [vmem:[#allocation16 + $0xb0] sm:$0xf0]  ;;  %v5336_v14 = vor.u32 %v6143_v5, %v5335_v6  ;;  %v6105_v55 = vld [vmem:[#allocation16 + $0x24] sm:$0xf] }
 0x2c1   :  { %3481 = vmatpush.bf16.msrb.mxu3 %v5544_v61  ;;  %v5464_v54 = vor.u32 %v6175_v51, %v5463_v45  ;;  %v6149_v6 = vld [vmem:[#allocation16 + $0x184] sm:$0xf]  ;;  %v6215_v51 = vld [vmem:[#allocation16 + $0x38c] sm:$0xf0] }
 0x2c4   :  { %2645 = vmatpush.bf16.msrb.mxu0 %v5156_v60  ;;  %v6147_v60 = vld [vmem:[#allocation16 + $0x16c] sm:$0xf0] }
 0x2c5   :  { %v5352_v1 = vor.u32 %v6147_v60, %v5351_v58  ;;  %v6171_v60 = vld [vmem:[#allocation16 + $0x22c] sm:$0xf0] }
 0x2c7   :  { %3472 = vmatpush.bf16.msrb.mxu2 %v5352_v1  ;;  %v6101_v1 = vld [vmem:[#allocation16 + $0x4] sm:$0xf] }
 0x2c8   :  { %2646 = vmatpush.bf16.msrb.mxu0 %v5140_v62  ;;  %v5273_v62 = vld [vmem:[#allocation16 + $0xd0] sm:$0xf0] }
 0x2c9   :  { %v5276_v2 = vor.u32 %v6125_v40, %v5273_v62  ;;  %v5448_v62 = vor.u32 %v6171_v60, %v5447_v59  ;;  %v5497_v59 = vld [vmem:[#allocation16 + $0x290] sm:$0xf0] }
 0x2cb   :  { %3473 = vmatpush.bf16.msrb.mxu2 %v5336_v14  ;;  %v5671_v14 = vld [vmem:[#allocation16 + $0x3e0] sm:$0xf] }
 0x2cc   :  { %2647 = vmatpush.bf16.msrb.mxu0 %v5124_v3 }
 0x2d0   :  { %2648 = vmatpush.bf16.msrb.mxu0 %v5108_v52  ;;  %v5527_v52 = vld [vmem:[#allocation16 + $0x2c0] sm:$0xf] }
 0x2d1   :  { %v5528_v15 = vor.u32 %v6191_v8, %v5527_v52  ;;  %v5369_v52 = vld [vmem:[#allocation16 + $0x190] sm:$0xf0] }
 0x2d2   :  { %v5372_v8 = vor.u32 %v6149_v6, %v5369_v52 }
 0x2d3   :  { %3482 = vmatpush.bf16.msrb.mxu3 %v5528_v15 }
 0x2d4   :  { %2649 = vmatpush.bf16.msrb.mxu0 %v5092_v12  ;;  %v6121_v12 = vld [vmem:[#allocation16 + $0xa4] sm:$0xf] }
 0x2d5   :  { %v5260_v17 = vor.u32 %v6121_v12, %v5257_v13  ;;  %v5431_v12 = vld [vmem:[#allocation16 + $0x200] sm:$0xf]  ;;  %v6167_v13 = vld [vmem:[#allocation16 + $0x20c] sm:$0xf0] }
 0x2d6   :  { %v5432_v15 = vor.u32 %v6167_v13, %v5431_v12  ;;  %v5591_v12 = vld [vmem:[#allocation16 + $0x340] sm:$0xf]  ;;  %v6207_v13 = vld [vmem:[#allocation16 + $0x34c] sm:$0xf0] }
 0x2d7   :  { %3483 = vmatpush.bf16.msrb.mxu3 %v5512_v24  ;;  %v5655_v24 = vld [vmem:[#allocation16 + $0x3c0] sm:$0xf] }
 0x2d8   :  { %2650 = vmatpush.bf16.msrb.mxu0 %v5076_v38  ;;  %v5319_v38 = vld [vmem:[#allocation16 + $0x120] sm:$0xf] }
 0x2db   :  { %3484 = vmatpush.bf16.msrb.mxu3 %v5496_v10  ;;  %v5529_v10 = vld [vmem:[#allocation16 + $0x2d0] sm:$0xf0] }
 0x2dc   :  { %2651 = vmatpush.bf16.msrb.mxu0 %v5060_v53  ;;  %v6895_v4 = vpop.f32.mrf.mxu1  ;;  %v5320_v53 = vor.u32 %v6139_v18, %v5319_v38  ;;  %v6145_v38 = vld [vmem:[#allocation16 + $0x164] sm:$0xf]  ;;  %v5353_v18 = vld [vmem:[#allocation16 + $0x170] sm:$0xf0] }
 0x2de   :  { %3474 = vmatpush.bf16.msrb.mxu2 %v5320_v53  ;;  %v6193_v53 = vld [vmem:[#allocation16 + $0x2e4] sm:$0xf] }
 0x2df   :  { %2652 = vmatmul.bf16.vlgmr.msrb.gmra.mxu0 %v6885_v0  ;;  %v5208_v0 = vor.u32 %v6111_v11, %v5207_v35  ;;  %v5417_v35 = vld [vmem:[#allocation16 + $0x1f0] sm:$0xf0]  ;;  %v5548_v22 = vor.u32 %v6193_v53, %v5545_v21  ;;  %v5295_v53 = vld [vmem:[#allocation16 + $0xe8] sm:$0xf]  ;;  %v6132_v21 = vld [vmem:[#allocation16 + $0xf4] sm:$0xf0] }
 0x2e1   :  { %3460 = vmatpush.bf16.msrb.mxu1 %v5208_v0  ;;  %v6179_v0 = vld [vmem:[#allocation16 + $0x26c] sm:$0xf0] }
 0x2e2   :  { %3475 = vmatpush.bf16.msrb.mxu2 %v5304_v27  ;;  %v5480_v28 = vor.u32 %v6179_v0, %v5479_v37  ;;  %v6141_v27 = vld [vmem:[#allocation16 + $0x144] sm:$0xf] }
 0x2e3   :  { %v5340_v29 = vor.u32 %v6141_v27, %v5337_v32  ;;  %v6169_v27 = vld [vmem:[#allocation16 + $0x224] sm:$0xf]  ;;  %v5449_v32 = vld [vmem:[#allocation16 + $0x230] sm:$0xf0] }
 0x2e4   :  { %v2460_v36 = vpop.f32.mrf.mxu1  ;;  %3485 = vmatpush.bf16.msrb.mxu3 %v5480_v28  ;;  %v6137_v28 = vld [vmem:[#allocation16 + $0x124] sm:$0xf] }
 0x2e5   :  { %3461 = vmatpush.bf16.msrb.mxu1 %v5192_v46  ;;  %v6161_v36 = vld [vmem:[#allocation16 + $0x1e4] sm:$0xf]  ;;  %v5212_v46 = vor.u32 %v6109_v31, %v5209_v19  ;;  %v5321_v31 = vld [vmem:[#allocation16 + $0x130] sm:$0xf0] }
 0x2e6   :  { %v5420_v11 = vor.u32 %v6161_v36, %v5417_v35  ;;  %v5532_v36 = vor.u32 %v6189_v33, %v5529_v10  ;;  %v5639_v35 = vld [vmem:[#allocation16 + $0x3a0] sm:$0xf]  ;;  %v6185_v19 = vld [vmem:[#allocation16 + $0x2a4] sm:$0xf]  ;;  %v5324_v44 = vor.u32 %v6137_v28, %v5321_v31 }
 0x2e7   :  { %v6165_v28 = vld [vmem:[#allocation16 + $0x204] sm:$0xf] }
 0x2e8   :  { %3520 = vmatpush.bf16.msra.mxu2 %v5420_v11  ;;  %3486 = vmatpush.bf16.msrb.mxu3 %v5464_v54  ;;  %v6219_v11 = vld [vmem:[#allocation16 + $0x3ac] sm:$0xf0] }
 0x2e9   :  { %3462 = vmatpush.bf16.msrb.mxu1 %v5176_v57  ;;  %v5193_v57 = vld [vmem:[#allocation16 + $0x30] sm:$0xf0]  ;;  %v5640_v0 = vor.u32 %v6219_v11, %v5639_v35  ;;  %v6128_v35 = vld [vmem:[#allocation16 + $0xd4] sm:$0xf0] }
 0x2ea   :  { %v5196_v16 = vor.u32 %v6105_v55, %v5193_v57 }
 0x2ec   :  { %v6897_v56 = vpop.f32.mrf.mxu1  ;;  %3521 = vmatpush.bf16.msra.mxu2 %v5404_v48  ;;  %3487 = vmatpush.bf16.msrb.mxu3 %v5448_v62 }
 0x2ed   :  { %3507 = vmatpush.bf16.msra.mxu1 %v5292_v30  ;;  %v5385_v30 = vld [vmem:[#allocation16 + $0x1b0] sm:$0xf0] }
 0x2ee   :  { %v5388_v58 = vor.u32 %v6153_v23, %v5385_v30  ;;  %v6133_v23 = vld [vmem:[#allocation16 + $0x104] sm:$0xf] }
 0x2ef   :  { %v6181_v30 = vld [vmem:[#allocation16 + $0x284] sm:$0xf] }
 0x2f0   :  { %3522 = vmatpush.bf16.msra.mxu2 %v5388_v58  ;;  %3488 = vmatpush.bf16.msrb.mxu3 %v5432_v15  ;;  %v6173_v15 = vld [vmem:[#allocation16 + $0x244] sm:$0xf] }
 0x2f1   :  { %3508 = vmatpush.bf16.msra.mxu1 %v5276_v2  ;;  %v5177_v2 = vld [vmem:[#allocation16 + $0x10] sm:$0xf0] }
 0x2f2   :  { %v6899_v3 = vpop.f32.mrf.mxu2  ;;  %v5180_v5 = vor.u32 %v6101_v1, %v5177_v2  ;;  %v6177_v1 = vld [vmem:[#allocation16 + $0x264] sm:$0xf]  ;;  %v5481_v2 = vld [vmem:[#allocation16 + $0x270] sm:$0xf0] }
 0x2f3   :  { %v5484_v6 = vor.u32 %v6177_v1, %v5481_v2 }
 0x2f4   :  { %v2512_v9 = vpop.f32.mrf.mxu1  ;;  %3523 = vmatpush.bf16.msra.mxu2 %v5372_v8  ;;  %3533 = vmatpush.bf16.msra.mxu3 %v5548_v22  ;;  %v5575_v22 = vld [vmem:[#allocation16 + $0x320] sm:$0xf] }
 0x2f5   :  { %3509 = vmatpush.bf16.msra.mxu1 %v5260_v17  ;;  %v6907_v9 = vld [vmem:[#allocation14] sm:$0xf]  ;;  %v6227_v17 = vld [vmem:[#allocation16 + $0x3ec] sm:$0xf0] }
 0x2f6   :  { %v5672_v49 = vor.u32 %v6227_v17, %v5671_v14  ;;  %v1801_v63 = vperm.slane %v6907_v9, 0  ;;  %v5592_v14 = vor.u32 %v6207_v13, %v5591_v12  ;;  %v5465_v17 = vld [vmem:[#allocation16 + $0x250] sm:$0xf0]  ;;  %v6164_v12 = vld [vmem:[#allocation16 + $0x1f4] sm:$0xf0] }
 0x2f8   :  { %3494 = vmatpush.bf16.msra.mxu0 %v5672_v49  ;;  %3534 = vmatpush.bf16.msra.mxu3 %v5532_v36  ;;  %v5279_v36 = vld [vmem:[#allocation16 + $0xc8] sm:$0xf] }
 0x2f9   :  { %3510 = vmatpush.bf16.msra.mxu1 %v5244_v42  ;;  %v6223_v42 = vld [vmem:[#allocation16 + $0x3cc] sm:$0xf0] }
 0x2fa   :  { %v2473_v20 = vpop.f32.mrf.mxu2  ;;  %v5656_v7 = vor.u32 %v6223_v42, %v5655_v24  ;;  %v6203_v24 = vld [vmem:[#allocation16 + $0x32c] sm:$0xf0] }
 0x2fb   :  { %v5356_v20 = vor.u32 %v6145_v38, %v5353_v18  ;;  %v5468_v18 = vor.u32 %v6173_v15, %v5465_v17  ;;  %v5625_v15 = vld [vmem:[#allocation16 + $0x390] sm:$0xf0] }
 0x2fc   :  { %3495 = vmatpush.bf16.msra.mxu0 %v5656_v7  ;;  %v5576_v7 = vor.u32 %v6203_v24, %v5575_v22  ;;  %v6112_v24 = vld [vmem:[#allocation16 + $0x54] sm:$0xf0] }
 0x2fd   :  { %3511 = vmatpush.bf16.msra.mxu1 %v5228_v34  ;;  %3524 = vmatpush.bf16.msra.mxu2 %v5356_v20  ;;  %v2459_v34 = vadd.f32 %v6895_v4, %v1801_v63  ;;  %v5623_v4 = vld [vmem:[#allocation16 + $0x380] sm:$0xf] }
 0x2fe   :  { %v6901_v43 = vpop.f32.mrf.mxu1  ;;  %v5624_v57 = vor.u32 %v6215_v51, %v5623_v4  ;;  %v5280_v4 = vor.u32 %v6128_v35, %v5279_v36  ;;  %v5263_v51 = vld [vmem:[#allocation16 + $0xa8] sm:$0xf]  ;;  %v6108_v36 = vld [vmem:[#allocation16 + $0x34] sm:$0xf0] }
 0x2ff   :  { %v2472_v37 = vadd.f32 %v6899_v3, %v2459_v34  ;;  %v5296_v34 = vor.u32 %v6132_v21, %v5295_v53  ;;  %v5215_v21 = vld [vmem:[#allocation16 + $0x48] sm:$0xf] }
 0x300   :  { %3496 = vmatpush.bf16.msra.mxu0 %v5640_v0  ;;  %v6199_v0 = vld [vmem:[#allocation16 + $0x30c] sm:$0xf0]  ;;  %v5391_v35 = vld [vmem:[#allocation16 + $0x1a8] sm:$0xf] }
 0x301   :  { %3512 = vmatpush.bf16.msra.mxu1 %v5212_v46  ;;  %3525 = vmatpush.bf16.msra.mxu2 %v5340_v29  ;;  %v5513_v46 = vld [vmem:[#allocation16 + $0x2b0] sm:$0xf0]  ;;  %v5452_v29 = vor.u32 %v6169_v27, %v5449_v32 }
 0x302   :  { %v6903_v39 = vpop.f32.mrf.mxu3  ;;  %v6905_v41 = vpop.f32.mrf.mxu2  ;;  %v5516_v48 = vor.u32 %v6185_v19, %v5513_v46  ;;  %v5433_v19 = vld [vmem:[#allocation16 + $0x210] sm:$0xf0] }
 0x303   :  { %v2485_v47 = vadd.f32 %v6903_v39, %v2472_v37  ;;  %v5500_v39 = vor.u32 %v6181_v30, %v5497_v59  ;;  %v5559_v37 = vld [vmem:[#allocation16 + $0x300] sm:$0xf]  ;;  %v5673_v46 = vld [vmem:[#allocation16 + $0x3f0] sm:$0xf0] }
 0x304   :  { %3535 = vmatpush.bf16.msra.mxu3 %v5516_v48  ;;  %3497 = vmatpush.bf16.msra.mxu0 %v5624_v57  ;;  %v5609_v32 = vld [vmem:[#allocation16 + $0x370] sm:$0xf0] }
 0x305   :  { %3513 = vmatpush.bf16.msra.mxu1 %v5196_v16  ;;  %3526 = vmatpush.bf16.msra.mxu2 %v5324_v44  ;;  %v5305_v16 = vld [vmem:[#allocation16 + $0x110] sm:$0xf0]  ;;  %v6225_v44 = vld [vmem:[#allocation16 + $0x3e4] sm:$0xf] }
 0x306   :  { %v2564_v50 = vpop.f32.mrf.mxu1  ;;  %v5308_v58 = vor.u32 %v6133_v23, %v5305_v16  ;;  %v5676_v48 = vor.u32 %v6225_v44, %v5673_v46  ;;  %v1803_v23 = vperm.slane %v6907_v9, 2  ;;  %v5183_v44 = vld [vmem:[#allocation16 + $0x8] sm:$0xf]  ;;  %v6104_v46 = vld [vmem:[#allocation16 + $0x14] sm:$0xf0] }
 0x308   :  { %3536 = vmatpush.bf16.msra.mxu3 %v5500_v39  ;;  %v6217_v39 = vld [vmem:[#allocation16 + $0x3a4] sm:$0xf]  ;;  %v2563_v1 = vadd.f32 %v6901_v43, %v1803_v23 }
 0x309   :  { %3514 = vmatpush.bf16.msra.mxu1 %v5180_v5  ;;  %3527 = vmatpush.bf16.msra.mxu2 %v5308_v58  ;;  %v1802_v5 = vperm.slane %v6907_v9, 1  ;;  %v5247_v58 = vld [vmem:[#allocation16 + $0x88] sm:$0xf] }
 0x30a   :  { %v2486_v61 = vpop.f32.mrf.mxu3  ;;  %v2525_v40 = vpop.f32.mrf.mxu2 }
 0x30b   :  { %v5607_v61 = vld [vmem:[#allocation16 + $0x360] sm:$0xf]  ;;  %v6211_v40 = vld [vmem:[#allocation16 + $0x36c] sm:$0xf0]  ;;  %v2511_v20 = vadd.f32 %v6897_v56, %v1802_v5  ;;  %v6116_v5 = vld [vmem:[#allocation16 + $0x74] sm:$0xf0] }
 0x30c   :  { %v5608_v62 = vor.u32 %v6211_v40, %v5607_v61  ;;  %3537 = vmatpush.bf16.msra.mxu3 %v5484_v6  ;;  %v5641_v61 = vld [vmem:[#allocation16 + $0x3b0] sm:$0xf0]  ;;  %v5231_v6 = vld [vmem:[#allocation16 + $0x68] sm:$0xf] }
 0x30d   :  { %v2524_v42 = vadd.f32 %v6905_v41, %v2511_v20  ;;  %v5560_v41 = vor.u32 %v6199_v0, %v5559_v37  ;;  %v5644_v40 = vor.u32 %v6217_v39, %v5641_v61  ;;  %v5232_v53 = vor.u32 %v6116_v5, %v5231_v6  ;;  %v6205_v37 = vld [vmem:[#allocation16 + $0x344] sm:$0xf]  ;;  %v5593_v0 = vld [vmem:[#allocation16 + $0x350] sm:$0xf0]  ;;  %v6196_v61 = vld [vmem:[#allocation16 + $0x2f4] sm:$0xf0] }
 0x30e   :  { %3498 = vmatpush.bf16.msra.mxu0 %v5608_v62 }
 0x310   :  { %3538 = vmatpush.bf16.msra.mxu3 %v5468_v18 }
 0x312   :  { %v6910_v25 = vpop.f32.mrf.mxu3  ;;  %v6912_v26 = vpop.f32.mrf.mxu2  ;;  %3499 = vmatpush.bf16.msra.mxu0 %v5592_v14  ;;  %v6213_v14 = vld [vmem:[#allocation16 + $0x384] sm:$0xf] }
 0x313   :  { %v2537_v10 = vadd.f32 %v6910_v25, %v2524_v42  ;;  %v5436_v25 = vor.u32 %v6165_v28, %v5433_v19  ;;  %v2576_v13 = vadd.f32 %v6912_v26, %v2563_v1  ;;  %v5628_v18 = vor.u32 %v6213_v14, %v5625_v15  ;;  %v5407_v42 = vld [vmem:[#allocation16 + $0x1c8] sm:$0xf]  ;;  %v6209_v26 = vld [vmem:[#allocation16 + $0x364] sm:$0xf] }
 0x314   :  { %3539 = vmatpush.bf16.msra.mxu3 %v5452_v29  ;;  %v5216_v29 = vor.u32 %v6112_v24, %v5215_v21  ;;  %v5596_v28 = vor.u32 %v6205_v37, %v5593_v0  ;;  %v6197_v1 = vld [vmem:[#allocation16 + $0x304] sm:$0xf]  ;;  %v5343_v15 = vld [vmem:[#allocation16 + $0x148] sm:$0xf]  ;;  %v6114_v37 = vld [vmem:[#allocation16 + $0x6c] sm:$0xf] }
 0x315   :  { %v5233_v0 = vld [vmem:[#allocation16 + $0x78] sm:$0xf0] }
 0x316   :  { %3500 = vmatpush.bf16.msra.mxu0 %v5576_v7  ;;  %v6160_v7 = vld [vmem:[#allocation16 + $0x1d4] sm:$0xf0] }
 0x318   :  { %3540 = vmatpush.bf16.msra.mxu3 %v5436_v25  ;;  %v5375_v25 = vld [vmem:[#allocation16 + $0x188] sm:$0xf] }
 0x31a   :  { %v2538_v55 = vpop.f32.mrf.mxu3  ;;  %v2577_v3 = vpop.f32.mrf.mxu2  ;;  %3501 = vmatpush.bf16.msra.mxu0 %v5560_v41 }
 0x31b   :  { %v6221_v55 = vld [vmem:[#allocation16 + $0x3c4] sm:$0xf]  ;;  %v5657_v3 = vld [vmem:[#allocation16 + $0x3d0] sm:$0xf0] }
 0x31c   :  { %v2497_v50 = vpop.f32.mrf.mxu0  ;;  %v6917_v45 = vpop.f32.mrf.mxu1  ;;  %v5660_v57 = vor.u32 %v6221_v55, %v5657_v3 }
 0x31d   :  { %v2498_v54 = vadd.f32 %v2497_v50, %v2485_v47 }
 0x31e   :  { %3546 = vmatpush.bf16.msrb.mxu0 %v5676_v48  ;;  %v6152_v48 = vld [vmem:[#allocation16 + $0x194] sm:$0xf0] }
 0x31f   :  { %v2657_v60 = vmul.f32 0.5, %v2498_v54  ;;  %v6124_v54 = vld [vmem:[#allocation16 + $0xb4] sm:$0xf0]  ;;  %v5376_v23 = vor.u32 %v6152_v48, %v5375_v25  ;;  %v5487_v25 = vld [vmem:[#allocation16 + $0x268] sm:$0xf] }
 0x320   :  { %v5264_v30 = vor.u32 %v6124_v54, %v5263_v51  ;;  %v6201_v51 = vld [vmem:[#allocation16 + $0x324] sm:$0xf]  ;;  %v5577_v54 = vld [vmem:[#allocation16 + $0x330] sm:$0xf0] }
 0x321   :  { %6303 = vtanh.f32 %v2657_v60  ;;  %v5580_v55 = vor.u32 %v6201_v51, %v5577_v54  ;;  %v6110_v51 = vld [vmem:[#allocation16 + $0x4c] sm:$0xf]  ;;  %v5217_v54 = vld [vmem:[#allocation16 + $0x58] sm:$0xf0] }
 0x322   :  { %3547 = vmatpush.bf16.msrb.mxu0 %v5660_v57  ;;  %v5184_v57 = vor.u32 %v6104_v46, %v5183_v44 }
 0x324   :  { %v2499_v52 = vpop.f32.mrf.mxu0  ;;  %v2616_v8 = vpop.f32.mrf.mxu1 }
 0x325   :  { %v6920_v38 = vpop.f32.mrf.mxu3  ;;  %v5423_v8 = vld [vmem:[#allocation16 + $0x1e8] sm:$0xf] }
 0x326   :  { %3548 = vmatpush.bf16.msrb.mxu0 %v5644_v40  ;;  %v5424_v43 = vor.u32 %v6164_v12, %v5423_v8  ;;  %v6126_v40 = vld [vmem:[#allocation16 + $0xcc] sm:$0xf] }
 0x327   :  { %v6304_v49 = vpop.eup %6303 }
 0x328   :  { %v2665_v63 = vadd.f32 1.0, %v6304_v49  ;;  %v2589_v49 = vadd.f32 %v6920_v38, %v2576_v13  ;;  %v5612_v38 = vor.u32 %v6209_v26, %v5609_v32  ;;  %v6188_v26 = vld [vmem:[#allocation16 + $0x2b4] sm:$0xf0]  ;;  %v6118_v32 = vld [vmem:[#allocation16 + $0x8c] sm:$0xf] }
 0x32a   :  { %v2669_v33 = vmul.f32 %v2665_v63, %v2657_v60  ;;  %v6120_v60 = vld [vmem:[#allocation16 + $0x94] sm:$0xf0]  ;;  %3549 = vmatpush.bf16.msrb.mxu0 %v5628_v18  ;;  %v5535_v18 = vld [vmem:[#allocation16 + $0x2c8] sm:$0xf] }
 0x32b   :  { %v5248_v2 = vor.u32 %v6120_v60, %v5247_v58  ;;  %v6148_v58 = vld [vmem:[#allocation16 + $0x174] sm:$0xf0] }
 0x32c   :  { %v6925_v56 = vpack.c.bf16 %v2669_v33, %v2669_v33  ;;  %v2549_v11 = vpop.f32.mrf.mxu0 }
 0x32d   :  { %v2550_v31 = vadd.f32 %v2549_v11, %v2537_v10  ;;  %v2590_v47 = vpop.f32.mrf.mxu3  ;;  %v5408_v10 = vor.u32 %v6160_v7, %v5407_v42  ;;  %v6156_v11 = vld [vmem:[#allocation16 + $0x1b4] sm:$0xf0]  ;;  %v5327_v42 = vld [vmem:[#allocation16 + $0x128] sm:$0xf] }
 0x32e   :  { %3463 = vmatmul.bf16.vlgmr.msrb.gmra.mxu1 %v6925_v56  ;;  %3550 = vmatpush.bf16.msrb.mxu0 %v5612_v38  ;;  %v5392_v19 = vor.u32 %v6156_v11, %v5391_v35  ;;  %v6140_v7 = vld [vmem:[#allocation16 + $0x134] sm:$0xf0]  ;;  %v5249_v38 = vld [vmem:[#allocation16 + $0x98] sm:$0xf0]  ;;  %v5503_v35 = vld [vmem:[#allocation16 + $0x288] sm:$0xf] }
 0x32f   :  { %v2658_v50 = vmul.f32 0.5, %v2550_v31  ;;  %3559 = vmatpush.bf16.msrb.mxu1 %v5296_v34  ;;  %v5199_v34 = vld [vmem:[#allocation16 + $0x28] sm:$0xf]  ;;  %v6184_v11 = vld [vmem:[#allocation16 + $0x294] sm:$0xf0] }
 0x330   :  { %v5200_v41 = vor.u32 %v6108_v36, %v5199_v34  ;;  %v5311_v34 = vld [vmem:[#allocation16 + $0x108] sm:$0xf]  ;;  %v6136_v36 = vld [vmem:[#allocation16 + $0x114] sm:$0xf0] }
 0x331   :  { %6305 = vtanh.f32 %v2658_v50  ;;  %v5312_v44 = vor.u32 %v6136_v36, %v5311_v34  ;;  %v5663_v34 = vld [vmem:[#allocation16 + $0x3c8] sm:$0xf]  ;;  %v6224_v36 = vld [vmem:[#allocation16 + $0x3d4] sm:$0xf0] }
 0x332   :  { %v6929_v16 = vpop.f32.mrf.mxu2  ;;  %3551 = vmatpush.bf16.msrb.mxu0 %v5596_v28 }
 0x333   :  { %3560 = vmatpush.bf16.msrb.mxu1 %v5280_v4  ;;  %v5297_v4 = vld [vmem:[#allocation16 + $0xf8] sm:$0xf0] }
 0x334   :  { %v2551_v59 = vpop.f32.mrf.mxu0 }
 0x335   :  { %v5551_v59 = vld [vmem:[#allocation16 + $0x2e8] sm:$0xf] }
 0x336   :  { %3552 = vmatpush.bf16.msrb.mxu0 %v5580_v55  ;;  %v5552_v13 = vor.u32 %v6196_v61, %v5551_v59  ;;  %v6176_v59 = vld [vmem:[#allocation16 + $0x254] sm:$0xf0]  ;;  %v6154_v61 = vld [vmem:[#allocation16 + $0x1ac] sm:$0xf] }
 0x337   :  { %v6306_v62 = vpop.eup %6305  ;;  %3561 = vmatpush.bf16.msrb.mxu1 %v5264_v30  ;;  %v5359_v30 = vld [vmem:[#allocation16 + $0x168] sm:$0xf] }
 0x338   :  { %v2666_v52 = vadd.f32 1.0, %v6306_v62  ;;  %v5281_v62 = vld [vmem:[#allocation16 + $0xd8] sm:$0xf0]  ;;  %v5360_v8 = vor.u32 %v6148_v58, %v5359_v30  ;;  %v5220_v30 = vor.u32 %v6110_v51, %v5217_v54  ;;  %v5631_v51 = vld [vmem:[#allocation16 + $0x388] sm:$0xf] }
 0x339   :  { %v5284_v14 = vor.u32 %v6126_v40, %v5281_v62  ;;  %v5393_v40 = vld [vmem:[#allocation16 + $0x1b8] sm:$0xf0]  ;;  %v6216_v54 = vld [vmem:[#allocation16 + $0x394] sm:$0xf0] }
 0x33a   :  { %v2670_v17 = vmul.f32 %v2666_v52, %v2658_v50  ;;  %v2629_v20 = vpop.f32.mrf.mxu2  ;;  %v6130_v50 = vld [vmem:[#allocation16 + $0xec] sm:$0xf] }
 0x33b   :  { %3562 = vmatpush.bf16.msrb.mxu1 %v5248_v2  ;;  %v5300_v39 = vor.u32 %v6130_v50, %v5297_v4  ;;  %v5561_v2 = vld [vmem:[#allocation16 + $0x310] sm:$0xf0]  ;;  %v6122_v20 = vld [vmem:[#allocation16 + $0xac] sm:$0xf]  ;;  %v6180_v4 = vld [vmem:[#allocation16 + $0x274] sm:$0xf0] }
 0x33c   :  { %v6934_v63 = vpack.c.bf16 %v2670_v17, %v2670_v17  ;;  %v2601_v22 = vpop.f32.mrf.mxu0  ;;  %v5564_v5 = vor.u32 %v6197_v1, %v5561_v2  ;;  %v6144_v17 = vld [vmem:[#allocation16 + $0x154] sm:$0xf0]  ;;  %v5455_v2 = vld [vmem:[#allocation16 + $0x228] sm:$0xf] }
 0x33d   :  { %v2602_v27 = vadd.f32 %v2601_v22, %v2589_v49  ;;  %v6192_v49 = vld [vmem:[#allocation16 + $0x2d4] sm:$0xf0]  ;;  %v5344_v21 = vor.u32 %v6144_v17, %v5343_v15  ;;  %v5377_v15 = vld [vmem:[#allocation16 + $0x198] sm:$0xf0] }
 0x33e   :  { %3476 = vmatmul.bf16.vlgmr.msrb.gmra.mxu2 %v6934_v63  ;;  %3515 = vmatmul.bf16.vlgmr.msra.gmra.mxu1 %v6925_v56  ;;  %v5536_v22 = vor.u32 %v6192_v49, %v5535_v18 }
 0x33f   :  { %v2659_v33 = vmul.f32 0.5, %v2602_v27  ;;  %3563 = vmatpush.bf16.msrb.mxu1 %v5232_v53  ;;  %3572 = vmatpush.bf16.msrb.mxu2 %v5424_v43  ;;  %v5265_v53 = vld [vmem:[#allocation16 + $0xb8] sm:$0xf0]  ;;  %v1804_v43 = vperm.slane %v6907_v9, 3  ;;  %v5519_v27 = vld [vmem:[#allocation16 + $0x2a8] sm:$0xf] }
 0x340   :  { %3553 = vmatpush.bf16.msrb.mxu0 %v5564_v5  ;;  %v5268_v24 = vor.u32 %v6122_v20, %v5265_v53  ;;  %v5520_v9 = vor.u32 %v6188_v26, %v5519_v27  ;;  %v5396_v5 = vor.u32 %v6154_v61, %v5393_v40  ;;  %v5439_v20 = vld [vmem:[#allocation16 + $0x208] sm:$0xf]  ;;  %v6168_v53 = vld [vmem:[#allocation16 + $0x214] sm:$0xf0]  ;;  %v6194_v27 = vld [vmem:[#allocation16 + $0x2ec] sm:$0xf] }
 0x341   :  { %6307 = vtanh.f32 %v2659_v33  ;;  %v5553_v26 = vld [vmem:[#allocation16 + $0x2f8] sm:$0xf0] }
 0x343   :  { %v6938_v31 = vpop.f32.mrf.mxu3  ;;  %3564 = vmatpush.bf16.msrb.mxu1 %v5216_v29  ;;  %3573 = vmatpush.bf16.msrb.mxu2 %v5408_v10  ;;  %v2615_v29 = vadd.f32 %v6917_v45, %v1804_v43  ;;  %v5252_v10 = vor.u32 %v6118_v32, %v5249_v38  ;;  %v5504_v45 = vor.u32 %v6184_v11, %v5503_v35  ;;  %v5679_v43 = vld [vmem:[#allocation16 + $0x3e8] sm:$0xf]  ;;  %v6142_v35 = vld [vmem:[#allocation16 + $0x14c] sm:$0xf]  ;;  %v5345_v11 = vld [vmem:[#allocation16 + $0x158] sm:$0xf0] }
 0x344   :  { %v2603_v47 = vpop.f32.mrf.mxu0  ;;  %v5440_v38 = vor.u32 %v6168_v53, %v5439_v20  ;;  %v6200_v20 = vld [vmem:[#allocation16 + $0x314] sm:$0xf0]  ;;  %v6166_v53 = vld [vmem:[#allocation16 + $0x20c] sm:$0xf] }
 0x345   :  { %v2628_v28 = vadd.f32 %v6929_v16, %v2615_v29  ;;  %v5236_v47 = vor.u32 %v6114_v37, %v5233_v0  ;;  %v6190_v37 = vld [vmem:[#allocation16 + $0x2cc] sm:$0xf]  ;;  %v5537_v0 = vld [vmem:[#allocation16 + $0x2d8] sm:$0xf0] }
 0x347   :  { %v6308_v3 = vpop.eup %6307  ;;  %3565 = vmatpush.bf16.msrb.mxu1 %v5200_v41  ;;  %3574 = vmatpush.bf16.msrb.mxu2 %v5392_v19  ;;  %v6162_v41 = vld [vmem:[#allocation16 + $0x1ec] sm:$0xf]  ;;  %v5425_v19 = vld [vmem:[#allocation16 + $0x1f8] sm:$0xf0]  ;;  %v2641_v46 = vadd.f32 %v6938_v31, %v2628_v28  ;;  %v5471_v31 = vld [vmem:[#allocation16 + $0x248] sm:$0xf]  ;;  %v5664_v28 = vor.u32 %v6224_v36, %v5663_v34 }
 0x348   :  { %v2667_v60 = vadd.f32 1.0, %v6308_v3  ;;  %v5428_v50 = vor.u32 %v6162_v41, %v5425_v19  ;;  %v6158_v3 = vld [vmem:[#allocation16 + $0x1cc] sm:$0xf]  ;;  %v5472_v62 = vor.u32 %v6176_v59, %v5471_v31  ;;  %v5348_v41 = vor.u32 %v6142_v35, %v5345_v11  ;;  %v6212_v59 = vld [vmem:[#allocation16 + $0x374] sm:$0xf0] }
 0x349   :  { %v5540_v19 = vor.u32 %v6190_v37, %v5537_v0  ;;  %v6210_v36 = vld [vmem:[#allocation16 + $0x36c] sm:$0xf]  ;;  %v5617_v35 = vld [vmem:[#allocation16 + $0x378] sm:$0xf0] }
 0x34a   :  { %v2671_v6 = vmul.f32 %v2667_v60, %v2659_v33  ;;  %v5328_v33 = vor.u32 %v6140_v7, %v5327_v42  ;;  %v6106_v60 = vld [vmem:[#allocation16 + $0x2c] sm:$0xf]  ;;  %v5361_v7 = vld [vmem:[#allocation16 + $0x178] sm:$0xf0]  ;;  %v5620_v11 = vor.u32 %v6210_v36, %v5617_v35 }
 0x34b   :  { %v2642_v52 = vpop.f32.mrf.mxu3  ;;  %3566 = vmatpush.bf16.msrb.mxu1 %v5184_v57  ;;  %3575 = vmatpush.bf16.msrb.mxu2 %v5376_v23  ;;  %v5409_v57 = vld [vmem:[#allocation16 + $0x1d8] sm:$0xf0]  ;;  %v5488_v23 = vor.u32 %v6180_v4, %v5487_v25  ;;  %v6146_v42 = vld [vmem:[#allocation16 + $0x16c] sm:$0xf] }
 0x34c   :  { %v6940_v12 = vpack.c.bf16 %v2671_v6, %v2671_v6  ;;  %v5412_v58 = vor.u32 %v6158_v3, %v5409_v57  ;;  %v6172_v52 = vld [vmem:[#allocation16 + $0x234] sm:$0xf0]  ;;  %v6186_v25 = vld [vmem:[#allocation16 + $0x2ac] sm:$0xf]  ;;  %v5313_v3 = vld [vmem:[#allocation16 + $0x118] sm:$0xf0] }
 0x34d   :  { %v5456_v18 = vor.u32 %v6172_v52, %v5455_v2  ;;  %v6182_v57 = vld [vmem:[#allocation16 + $0x28c] sm:$0xf]  ;;  %v5601_v0 = vld [vmem:[#allocation16 + $0x358] sm:$0xf0] }
 0x34e   :  { %3489 = vmatmul.bf16.vlgmr.msrb.gmra.mxu3 %v6940_v12  ;;  %3528 = vmatmul.bf16.vlgmr.msra.gmra.mxu2 %v6934_v63  ;;  %v6174_v2 = vld [vmem:[#allocation16 + $0x24c] sm:$0xf] }
 0x34f   :  { %3611 = vmatpush.bf16.msra.mxu1 %v5300_v39  ;;  %3576 = vmatpush.bf16.msrb.mxu2 %v5360_v8  ;;  %v5201_v39 = vld [vmem:[#allocation16 + $0x38] sm:$0xf0]  ;;  %v6102_v8 = vld [vmem:[#allocation16 + $0xc] sm:$0xf] }
 0x350   :  { %3567 = vmatmul.bf16.vlgmr.msrb.gmra.mxu1 %v6925_v56  ;;  %3585 = vmatpush.bf16.msrb.mxu3 %v5552_v13  ;;  %v5204_v1 = vor.u32 %v6106_v60, %v5201_v39  ;;  %v5185_v13 = vld [vmem:[#allocation16 + $0x18] sm:$0xf0]  ;;  %v6178_v60 = vld [vmem:[#allocation16 + $0x26c] sm:$0xf] }
 0x351   :  { %v5188_v49 = vor.u32 %v6102_v8, %v5185_v13  ;;  %v5489_v39 = vld [vmem:[#allocation16 + $0x278] sm:$0xf0]  ;;  %v5583_v8 = vld [vmem:[#allocation16 + $0x328] sm:$0xf]  ;;  %v6204_v13 = vld [vmem:[#allocation16 + $0x334] sm:$0xf0] }
 0x352   :  { %v5492_v40 = vor.u32 %v6178_v60, %v5489_v39  ;;  %v6206_v37 = vld [vmem:[#allocation16 + $0x34c] sm:$0xf] }
 0x353   :  { %3612 = vmatpush.bf16.msra.mxu1 %v5284_v14  ;;  %3577 = vmatpush.bf16.msrb.mxu2 %v5344_v21  ;;  %v6150_v14 = vld [vmem:[#allocation16 + $0x18c] sm:$0xf] }
 0x354   :  { %3586 = vmatpush.bf16.msrb.mxu3 %v5536_v22  ;;  %v5380_v22 = vor.u32 %v6150_v14, %v5377_v15  ;;  %v6170_v14 = vld [vmem:[#allocation16 + $0x22c] sm:$0xf]  ;;  %v5457_v15 = vld [vmem:[#allocation16 + $0x238] sm:$0xf0] }
 0x355   :  { %v6242_v60 = vld [vmem:[#allocation17 + $0x68] sm:$0xff] }
 0x356   :  { %v6246_v35 = vld [vmem:[#allocation17 + $0x88] sm:$0xff] }
 0x357   :  { %3613 = vmatpush.bf16.msra.mxu1 %v5268_v24  ;;  %3578 = vmatpush.bf16.msrb.mxu2 %v5328_v33  ;;  %v6228_v24 = vld [vmem:[#allocation16 + $0x3f4] sm:$0xf0] }
 0x358   :  { %3587 = vmatpush.bf16.msrb.mxu3 %v5520_v9  ;;  %v5680_v33 = vor.u32 %v6228_v24, %v5679_v43  ;;  %v5364_v9 = vor.u32 %v6146_v42, %v5361_v7  ;;  %v5441_v43 = vld [vmem:[#allocation16 + $0x218] sm:$0xf0]  ;;  %v6222_v7 = vld [vmem:[#allocation16 + $0x3cc] sm:$0xf] }
 0x35b   :  { %3614 = vmatpush.bf16.msra.mxu1 %v5252_v10  ;;  %3579 = vmatpush.bf16.msrb.mxu2 %v5312_v44  ;;  %v5556_v10 = vor.u32 %v6194_v27, %v5553_v26  ;;  %v5647_v44 = vld [vmem:[#allocation16 + $0x3a8] sm:$0xf]  ;;  %v5665_v27 = vld [vmem:[#allocation16 + $0x3d8] sm:$0xf0] }
 0x35c   :  { %v2653_v48 = vpop.f32.mrf.mxu0  ;;  %3588 = vmatpush.bf16.msrb.mxu3 %v5504_v45  ;;  %v6138_v45 = vld [vmem:[#allocation16 + $0x12c] sm:$0xf]  ;;  %v5668_v26 = vor.u32 %v6222_v7, %v5665_v27 }
 0x35d   :  { %v2654_v55 = vadd.f32 %v2653_v48, %v2641_v46  ;;  %v6220_v46 = vld [vmem:[#allocation16 + $0x3b4] sm:$0xf0]  ;;  %v5521_v48 = vld [vmem:[#allocation16 + $0x2b8] sm:$0xf0] }
 0x35e   :  { %3541 = vmatmul.bf16.vlgmr.msra.gmra.mxu3 %v6940_v12  ;;  %3580 = vmatmul.bf16.vlgmr.msrb.gmra.mxu2 %v6934_v63  ;;  %v5524_v4 = vor.u32 %v6186_v25, %v5521_v48  ;;  %v6236_v48 = vld [vmem:[#allocation17 + $0x38] sm:$0xff] }
 0x35f   :  { %v2660_v16 = vmul.f32 0.5, %v2654_v55  ;;  %3615 = vmatpush.bf16.msra.mxu1 %v5236_v47  ;;  %3624 = vmatpush.bf16.msra.mxu2 %v5428_v50  ;;  %v5329_v47 = vld [vmem:[#allocation16 + $0x138] sm:$0xf0]  ;;  %v5648_v50 = vor.u32 %v6220_v46, %v5647_v44  ;;  %v6134_v55 = vld [vmem:[#allocation16 + $0x10c] sm:$0xf] }
 0x360   :  { %3589 = vmatpush.bf16.msrb.mxu3 %v5488_v23  ;;  %v5632_v23 = vor.u32 %v6216_v54, %v5631_v51  ;;  %v6198_v46 = vld [vmem:[#allocation16 + $0x30c] sm:$0xf] }
 0x361   :  { %6309 = vtanh.f32 %v2660_v16  ;;  %v6234_v51 = vld [vmem:[#allocation17 + $0x28] sm:$0xff] }
 0x363   :  { %3616 = vmatpush.bf16.msra.mxu1 %v5220_v30  ;;  %3625 = vmatpush.bf16.msra.mxu2 %v5412_v58  ;;  %v5316_v30 = vor.u32 %v6134_v55, %v5313_v3  ;;  %v5615_v58 = vld [vmem:[#allocation16 + $0x368] sm:$0xf]  ;;  %v6233_v55 = vld [vmem:[#allocation17 + $0x20] sm:$0xff] }
 0x364   :  { %v2655_v6 = vpop.f32.mrf.mxu0  ;;  %3590 = vmatpush.bf16.msrb.mxu3 %v5472_v62  ;;  %v5616_v61 = vor.u32 %v6212_v59, %v5615_v58  ;;  %v5599_v62 = vld [vmem:[#allocation16 + $0x348] sm:$0xf] }
 0x365   :  { %v5473_v6 = vld [vmem:[#allocation16 + $0x258] sm:$0xf0]  ;;  %v6230_v59 = vld [vmem:[#allocation17 + $0x8] sm:$0xff] }
 0x366   :  { %v5476_v52 = vor.u32 %v6174_v2, %v5473_v6  ;;  %v6240_v2 = vld [vmem:[#allocation17 + $0x58] sm:$0xff] }
 0x367   :  { %v6310_v17 = vpop.eup %6309  ;;  %3617 = vmatpush.bf16.msra.mxu1 %v5204_v1  ;;  %3626 = vmatpush.bf16.msra.mxu2 %v5396_v5  ;;  %v6208_v1 = vld [vmem:[#allocation16 + $0x354] sm:$0xf0] }
 0x368   :  { %v2668_v21 = vadd.f32 1.0, %v6310_v17  ;;  %3591 = vmatpush.bf16.msrb.mxu3 %v5456_v18  ;;  %v5600_v5 = vor.u32 %v6208_v1, %v5599_v62  ;;  %v5584_v17 = vor.u32 %v6204_v13, %v5583_v8  ;;  %v5460_v18 = vor.u32 %v6170_v14, %v5457_v15  ;;  %v6252_v6 = vld [vmem:[#allocation17 + $0xb8] sm:$0xff]  ;;  %v6239_v8 = vld [vmem:[#allocation17 + $0x50] sm:$0xff] }
 0x369   :  { %v6251_v13 = vld [vmem:[#allocation17 + $0xb0] sm:$0xff] }
 0x36a   :  { %v2672_v32 = vmul.f32 %v2668_v21, %v2660_v16  ;;  %v5505_v16 = vld [vmem:[#allocation16 + $0x298] sm:$0xf0]  ;;  %v6226_v21 = vld [vmem:[#allocation16 + $0x3ec] sm:$0xf] }
 0x36b   :  { %3618 = vmatpush.bf16.msra.mxu1 %v5188_v49  ;;  %3627 = vmatpush.bf16.msra.mxu2 %v5380_v22  ;;  %v5508_v31 = vor.u32 %v6182_v57, %v5505_v16  ;;  %v5567_v49 = vld [vmem:[#allocation16 + $0x308] sm:$0xf]  ;;  %v5681_v22 = vld [vmem:[#allocation16 + $0x3f8] sm:$0xf0] }
 0x36c   :  { %v6951_v29 = vpack.c.bf16 %v2672_v32, %v2672_v32  ;;  %3592 = vmatpush.bf16.msrb.mxu3 %v5440_v38  ;;  %v5568_v24 = vor.u32 %v6200_v20, %v5567_v49  ;;  %v5684_v42 = vor.u32 %v6226_v21, %v5681_v22  ;;  %v6218_v32 = vld [vmem:[#allocation16 + $0x3ac] sm:$0xf]  ;;  %v5649_v38 = vld [vmem:[#allocation16 + $0x3b8] sm:$0xf0]  ;;  %v6249_v21 = vld [vmem:[#allocation17 + $0xa0] sm:$0xff] }
 0x36d   :  { %v6232_v57 = vld [vmem:[#allocation17 + $0x18] sm:$0xff]  ;;  %v6250_v49 = vld [vmem:[#allocation17 + $0xa8] sm:$0xff] }
 0x36e   :  { %3502 = vmatmul.bf16.vlgmr.msra.gmra.mxu0 %v6951_v29  ;;  %3619 = vmatmul.bf16.vlgmr.msra.gmra.mxu1 %v6925_v56  ;;  %v5332_v56 = vor.u32 %v6138_v45, %v5329_v47  ;;  %v6244_v16 = vld [vmem:[#allocation17 + $0x78] sm:$0xff] }
 0x36f   :  { %3598 = vmatpush.bf16.msra.mxu0 %v5680_v33  ;;  %3628 = vmatpush.bf16.msra.mxu2 %v5364_v9  ;;  %v5652_v33 = vor.u32 %v6218_v32, %v5649_v38  ;;  %v6214_v9 = vld [vmem:[#allocation16 + $0x38c] sm:$0xf]  ;;  %v6247_v38 = vld [vmem:[#allocation17 + $0x90] sm:$0xff] }
 0x370   :  { %3637 = vmatpush.bf16.msra.mxu3 %v5556_v10  ;;  %v5633_v10 = vld [vmem:[#allocation16 + $0x398] sm:$0xf0]  ;;  %3943 = vmatpush.bf16.msrb.mxu1 %v6236_v48  ;;  %v6258_v48 = vld [vmem:[#allocation17 + $0xe8] sm:$0xff] }
 0x371   :  { %3593 = vmatmul.bf16.vlgmr.msrb.gmra.mxu3 %v6940_v12  ;;  %v5636_v34 = vor.u32 %v6214_v9, %v5633_v10 }
 0x373   :  { %3599 = vmatpush.bf16.msra.mxu0 %v5664_v28  ;;  %3629 = vmatpush.bf16.msra.mxu2 %v5348_v41  ;;  %v5604_v28 = vor.u32 %v6206_v37, %v5601_v0  ;;  %v6202_v41 = vld [vmem:[#allocation16 + $0x32c] sm:$0xf] }
 0x374   :  { %3638 = vmatpush.bf16.msra.mxu3 %v5540_v19  ;;  %v5585_v19 = vld [vmem:[#allocation16 + $0x338] sm:$0xf0] }
 0x375   :  { %v5588_v44 = vor.u32 %v6202_v41, %v5585_v19  ;;  %v6245_v41 = vld [vmem:[#allocation17 + $0x80] sm:$0xff]  ;;  %v6260_v19 = vld [vmem:[#allocation17 + $0xf8] sm:$0xff] }
 0x377   :  { %3600 = vmatpush.bf16.msra.mxu0 %v5648_v50  ;;  %3630 = vmatpush.bf16.msra.mxu2 %v5332_v56  ;;  %v6235_v56 = vld [vmem:[#allocation17 + $0x30] sm:$0xff] }
 0x378   :  { %3639 = vmatpush.bf16.msra.mxu3 %v5524_v4  ;;  %3944 = vmatpush.bf16.msrb.mxu1 %v6235_v56 }
 0x37b   :  { %3601 = vmatpush.bf16.msra.mxu0 %v5632_v23  ;;  %3631 = vmatpush.bf16.msra.mxu2 %v5316_v30  ;;  %v6243_v30 = vld [vmem:[#allocation17 + $0x70] sm:$0xff] }
 0x37c   :  { %3640 = vmatpush.bf16.msra.mxu3 %v5508_v31  ;;  %3945 = vmatpush.bf16.msrb.mxu1 %v6234_v51  ;;  %v6257_v51 = vld [vmem:[#allocation17 + $0xe0] sm:$0xff] }
 0x37e   :  { %3554 = vmatmul.bf16.vlgmr.msrb.gmra.mxu0 %v6951_v29  ;;  %3632 = vmatmul.bf16.vlgmr.msra.gmra.mxu2 %v6934_v63  ;;  %v5444_v63 = vor.u32 %v6166_v53, %v5441_v43  ;;  %v6237_v43 = vld [vmem:[#allocation17 + $0x40] sm:$0xff] }
 0x37f   :  { %3602 = vmatpush.bf16.msra.mxu0 %v5616_v61  ;;  %3956 = vmatpush.bf16.msrb.mxu2 %v6244_v16  ;;  %v6229_v61 = vld [vmem:[#allocation17] sm:$0xff] }
 0x380   :  { %3641 = vmatpush.bf16.msra.mxu3 %v5492_v40  ;;  %3946 = vmatpush.bf16.msrb.mxu1 %v6233_v55  ;;  %v6241_v40 = vld [vmem:[#allocation17 + $0x60] sm:$0xff] }
 0x383   :  { %3603 = vmatpush.bf16.msra.mxu0 %v5600_v5  ;;  %3957 = vmatpush.bf16.msrb.mxu2 %v6243_v30  ;;  %v6968_v5 = vld [vmem:[%s6995_s10] sm:$0xf] }
 0x384   :  { %3642 = vmatpush.bf16.msra.mxu3 %v5476_v52  ;;  %3947 = vmatpush.bf16.msrb.mxu1 %v6232_v57  ;;  %v2807_v52 = vperm.slane %v6968_v5, 0  ;;  %v2808_v32 = vperm.slane %v6968_v5, 1 }
 0x387   :  { %3604 = vmatpush.bf16.msra.mxu0 %v5584_v17  ;;  %3958 = vmatpush.bf16.msrb.mxu2 %v6242_v60 }
 0x388   :  { %3643 = vmatpush.bf16.msra.mxu3 %v5460_v18  ;;  %v6238_v18 = vld [vmem:[#allocation17 + $0x48] sm:$0xff] }
 0x38b   :  { %3605 = vmatpush.bf16.msra.mxu0 %v5568_v24  ;;  %3959 = vmatpush.bf16.msrb.mxu2 %v6241_v40 }
 0x38c   :  { %3644 = vmatpush.bf16.msra.mxu3 %v5444_v63 }
 0x38e   :  { %3606 = vmatmul.bf16.vlgmr.msra.gmra.mxu0 %v6951_v29 }
 0x38f   :  { %3650 = vmatpush.bf16.msrb.mxu0 %v5684_v42  ;;  %3645 = vmatmul.bf16.vlgmr.msra.gmra.mxu3 %v6940_v12  ;;  %v5569_v12 = vld [vmem:[#allocation16 + $0x318] sm:$0xf0] }
 0x390   :  { %v5572_v45 = vor.u32 %v6198_v46, %v5569_v12  ;;  %3960 = vmatpush.bf16.msrb.mxu2 %v6240_v2  ;;  %3969 = vmatpush.bf16.msrb.mxu3 %v6252_v6  ;;  %v6253_v2 = vld [vmem:[#allocation17 + $0xc0] sm:$0xff] }
 0x393   :  { %3651 = vmatpush.bf16.msrb.mxu0 %v5668_v26  ;;  %v6248_v26 = vld [vmem:[#allocation17 + $0x98] sm:$0xff] }
 0x394   :  { %3961 = vmatpush.bf16.msrb.mxu2 %v6239_v8  ;;  %3970 = vmatpush.bf16.msrb.mxu3 %v6251_v13 }
 0x397   :  { %3652 = vmatpush.bf16.msrb.mxu0 %v5652_v33 }
 0x398   :  { %3962 = vmatpush.bf16.msrb.mxu2 %v6238_v18  ;;  %3971 = vmatpush.bf16.msrb.mxu3 %v6250_v49 }
 0x39b   :  { %3653 = vmatpush.bf16.msrb.mxu0 %v5636_v34 }
 0x39c   :  { %3963 = vmatpush.bf16.msrb.mxu2 %v6237_v43  ;;  %3972 = vmatpush.bf16.msrb.mxu3 %v6249_v21 }
 0x39f   :  { %3654 = vmatpush.bf16.msrb.mxu0 %v5620_v11 }
 0x3a0   :  { %3973 = vmatpush.bf16.msrb.mxu3 %v6248_v26 }
 0x3a3   :  { %3655 = vmatpush.bf16.msrb.mxu0 %v5604_v28 }
 0x3a4   :  { %3974 = vmatpush.bf16.msrb.mxu3 %v6247_v38 }
 0x3a7   :  { %3656 = vmatpush.bf16.msrb.mxu0 %v5588_v44 }
 0x3a8   :  { %3975 = vmatpush.bf16.msrb.mxu3 %v6246_v35 }
 0x3ab   :  { %3657 = vmatpush.bf16.msrb.mxu0 %v5572_v45  ;;  %v3464_v47 = vpop.f32.mrf.mxu1 }
 0x3ac   :  { %v3465_v17 = vadd.f32 %v3464_v47, %v2807_v52  ;;  %3976 = vmatpush.bf16.msrb.mxu3 %v6245_v41  ;;  %v6259_v47 = vld [vmem:[#allocation17 + $0xf0] sm:$0xff] }
 0x3ae   :  { %3658 = vmatmul.bf16.vlgmr.msrb.gmra.mxu0 %v6951_v29  ;;  %v6231_v29 = vld [vmem:[#allocation17 + $0x10] sm:$0xff] }
 0x3af   :  { %3948 = vmatpush.bf16.msrb.mxu1 %v6231_v29  ;;  %3982 = vmatpush.bf16.msra.mxu0 %v6260_v19 }
 0x3b3   :  { %v3466_v25 = vpop.f32.mrf.mxu1  ;;  %3949 = vmatpush.bf16.msrb.mxu1 %v6230_v59  ;;  %3983 = vmatpush.bf16.msra.mxu0 %v6259_v47 }
 0x3b7   :  { %3950 = vmatpush.bf16.msrb.mxu1 %v6229_v61  ;;  %3984 = vmatpush.bf16.msra.mxu0 %v6258_v48  ;;  %v6255_v61 = vld [vmem:[#allocation17 + $0xd0] sm:$0xff] }
 0x3bb   :  { %v6961_v50 = vpop.f32.mrf.mxu1  ;;  %3985 = vmatpush.bf16.msra.mxu0 %v6257_v51 }
 0x3bc   :  { %v3517_v36 = vadd.f32 %v6961_v50, %v2808_v32  ;;  %v2809_v50 = vperm.slane %v6968_v5, 2 }
 0x3c1   :  { %v3477_v4 = vpop.f32.mrf.mxu2 }
 0x3c2   :  { %v3478_v20 = vadd.f32 %v3477_v4, %v3465_v17 }
 0x3c3   :  { %v3518_v54 = vpop.f32.mrf.mxu1 }
 0x3c9   :  { %v3479_v3 = vpop.f32.mrf.mxu2 }
 0x3cd   :  { %v6963_v23 = vpop.f32.mrf.mxu1 }
 0x3ce   :  { %v3569_v55 = vadd.f32 %v6963_v23, %v2809_v50 }
 0x3d1   :  { %v3490_v31 = vpop.f32.mrf.mxu3  ;;  %v3529_v58 = vpop.f32.mrf.mxu2 }
 0x3d2   :  { %v3491_v53 = vadd.f32 %v3490_v31, %v3478_v20  ;;  %v3530_v37 = vadd.f32 %v3529_v58, %v3517_v36  ;;  %v6256_v31 = vld [vmem:[#allocation17 + $0xd8] sm:$0xff] }
 0x3d3   :  { %3986 = vmatpush.bf16.msra.mxu0 %v6256_v31 }
 0x3d5   :  { %v3570_v39 = vpop.f32.mrf.mxu1 }
 0x3d7   :  { %3987 = vmatpush.bf16.msra.mxu0 %v6255_v61 }
 0x3d9   :  { %v3492_v62 = vpop.f32.mrf.mxu3  ;;  %v3531_v1 = vpop.f32.mrf.mxu2 }
 0x3da   :  { %v6254_v62 = vld [vmem:[#allocation17 + $0xc8] sm:$0xff] }
 0x3db   :  { %3988 = vmatpush.bf16.msra.mxu0 %v6254_v62 }
 0x3df   :  { %3989 = vmatpush.bf16.msra.mxu0 %v6253_v2 }
 0x3e1   :  { %v3542_v14 = vpop.f32.mrf.mxu3  ;;  %v3581_v15 = vpop.f32.mrf.mxu2 }
 0x3e2   :  { %v3543_v28 = vadd.f32 %v3542_v14, %v3530_v37  ;;  %v3582_v57 = vadd.f32 %v3581_v15, %v3569_v55  ;;  %v2810_v14 = vperm.slane %v6968_v5, 3 }
 0x3e9   :  { %v3544_v42 = vpop.f32.mrf.mxu3  ;;  %v3583_v7 = vpop.f32.mrf.mxu2 }
 0x3eb   :  { %v3503_v22 = vpop.f32.mrf.mxu0  ;;  %v6971_v24 = vpop.f32.mrf.mxu1 }
 0x3ec   :  { %v3504_v63 = vadd.f32 %v3503_v22, %v3491_v53  ;;  %v3621_v15 = vadd.f32 %v6971_v24, %v2810_v14  ;;  %v6286_v24 = vld [vmem:[%s6997_s12] ss:$0 sm:$0xff] }
 0x3ee   :  { %v3663_v27 = vmul.f32 0.5, %v3504_v63 }
 0x3f0   :  { %6311 = vtanh.f32 %v3663_v27 }
 0x3f3   :  { %v3505_v33 = vpop.f32.mrf.mxu0  ;;  %v3622_v9 = vpop.f32.mrf.mxu1 }
 0x3f4   :  { %v3594_v10 = vpop.f32.mrf.mxu3 }
 0x3f5   :  { %v3595_v29 = vadd.f32 %v3594_v10, %v3582_v57 }
 0x3f6   :  { %v6312_v34 = vpop.eup %6311 }
 0x3f7   :  { %v3671_v11 = vadd.f32 1.0, %v6312_v34 }
 0x3f9   :  { %v3675_v0 = vmul.f32 %v3671_v11, %v3663_v27 }
 0x3fb   :  { %v3679_v44 = vpack.c.bf16 %v3675_v0, %v3675_v0  ;;  %v3555_v46 = vpop.f32.mrf.mxu0 }
 0x3fc   :  { %v3556_v12 = vadd.f32 %v3555_v46, %v3543_v28  ;;  %v3596_v45 = vpop.f32.mrf.mxu3 }
 0x3fd   :  { %3951 = vmatmul.bf16.vlgmr.msrb.gmra.mxu1 %v3679_v44 }
 0x3fe   :  { %v3664_v25 = vmul.f32 0.5, %v3556_v12 }
 0x400   :  { %6313 = vtanh.f32 %v3664_v25 }
 0x401   :  { %v3633_v56 = vpop.f32.mrf.mxu2 }
 0x402   :  { %v3634_v17 = vadd.f32 %v3633_v56, %v3621_v15 }
 0x403   :  { %v3557_v4 = vpop.f32.mrf.mxu0 }
 0x406   :  { %v6314_v54 = vpop.eup %6313 }
 0x407   :  { %v3672_v3 = vadd.f32 1.0, %v6314_v54 }
 0x409   :  { %v3676_v16 = vmul.f32 %v3672_v3, %v3664_v25  ;;  %v3635_v30 = vpop.f32.mrf.mxu2 }
 0x40b   :  { %v3680_v58 = vpack.c.bf16 %v3676_v16, %v3676_v16  ;;  %v3607_v59 = vpop.f32.mrf.mxu0 }
 0x40c   :  { %v3608_v60 = vadd.f32 %v3607_v59, %v3595_v29 }
 0x40d   :  { %3964 = vmatmul.bf16.vlgmr.msrb.gmra.mxu2 %v3680_v58 }
 0x40e   :  { %v3665_v39 = vmul.f32 0.5, %v3608_v60 }
 0x410   :  { %6315 = vtanh.f32 %v3665_v39 }
 0x412   :  { %v3646_v40 = vpop.f32.mrf.mxu3 }
 0x413   :  { %v3609_v1 = vpop.f32.mrf.mxu0  ;;  %v3647_v18 = vadd.f32 %v3646_v40, %v3634_v17 }
 0x416   :  { %v6316_v23 = vpop.eup %6315 }
 0x417   :  { %v3673_v6 = vadd.f32 1.0, %v6316_v23 }
 0x419   :  { %v3677_v52 = vmul.f32 %v3673_v6, %v3665_v39 }
 0x41a   :  { %v3648_v8 = vpop.f32.mrf.mxu3 }
 0x41b   :  { %v3681_v13 = vpack.c.bf16 %v3677_v52, %v3677_v52 }
 0x41d   :  { %3977 = vmatmul.bf16.vlgmr.msrb.gmra.mxu3 %v3681_v13 }
 0x42b   :  { %v3659_v49 = vpop.f32.mrf.mxu0 }
 0x42c   :  { %v3660_v20 = vadd.f32 %v3659_v49, %v3647_v18 }
 0x42e   :  { %v3666_v53 = vmul.f32 0.5, %v3660_v20 }
 0x430   :  { %6317 = vtanh.f32 %v3666_v53 }
 0x433   :  { %v3661_v43 = vpop.f32.mrf.mxu0 }
 0x436   :  { %v6318_v21 = vpop.eup %6317 }
 0x437   :  { %v3674_v22 = vadd.f32 1.0, %v6318_v21 }
 0x439   :  { %v3678_v63 = vmul.f32 %v3674_v22, %v3666_v53 }
 0x43b   :  { %v3682_v42 = vpack.c.bf16 %v3678_v63, %v3678_v63 }
 0x43d   :  { %3990 = vmatmul.bf16.vlgmr.msra.gmra.mxu0 %v3682_v42 }
 0x47a   :  { %v3952_v7 = vpop.f32.mrf.mxu1 }
 0x47b   :  { %v3953_v33 = vadd.f32 %v6286_v24, %v3952_v7 }
 0x482   :  { %v3954_v27 = vpop.f32.mrf.mxu1 }
 0x490   :  { %v3965_v26 = vpop.f32.mrf.mxu2 }
 0x491   :  { %v3966_v9 = vadd.f32 %v3965_v26, %v3953_v33 }
 0x498   :  { %v3967_v32 = vpop.f32.mrf.mxu2 }
 0x4a0   :  { %v3978_v38 = vpop.f32.mrf.mxu3 }
 0x4a1   :  { %v3979_v10 = vadd.f32 %v3978_v38, %v3966_v9 }
 0x4a8   :  { %v3980_v5 = vpop.f32.mrf.mxu3 }
 0x4ba   :  { %v3991_v34 = vpop.f32.mrf.mxu0 }
 0x4bb   :  { %v3992_v36 = vadd.f32 %v3991_v34, %v3979_v10 }
 0x4bd   :  { %3995 = vst [vmem:[#allocation19] sm:$0xff] %v3992_v36 }
 0x4be   :  { %4006 = dma.vmem_to_hbm [thread:$0]  %s4002_s22, 128, %s4004_s0, [#allocation4]  }
 0x4c2   :  { %v3993_v35 = vpop.f32.mrf.mxu0 }
 0x4c3   :  { %6595 = dma.done.wait [#allocation4], 128  }
 0x4c4   :  { %6596 = vsyncadd [#allocation4], 4294967168 }
 0x4c5   :  { %4011 = vsyncpa [#allocation3], 1 }
 0x4c6   :  { %4012 = vsyncpa [#allocation6], 1 }
 0x4c7   :  { %4013 = vsyncpa [#allocation9], 1 }
 0x4c8   :  { %4014 = vsyncpa [#allocation12], 1 }
 0x4c9   :  { %4015 = vsyncpa [#allocation15], 1 }
 0x4ca   :  { %4016 = vsyncpa [#allocation18], 1 }
 0x4cb   :  { %4017 = vsyncpa [#allocation4], 1 }

</bundles_post_ra>
